<compile_context>
chip_gen: v7x
topology: tpu7x:2x2x1
jax: 0.10.0
libtpu: 0.0.40
codegen_flags: <defaults>
</compile_context>

<pallas_src>
import jax
import jax.numpy as jnp
from jax.experimental import pallas as pl
from jax.experimental.pallas import tpu as pltpu


# ----------------------------------------------------------------------------
# Network configuration (PyTorch Encoder) + channel padding for lane density.
# ----------------------------------------------------------------------------
# (C_in, C_out, kernel, stride, pad)
CONV_CFG = [
    (3,   32, 4, 2, 1),
    (32,  64, 4, 2, 1),
    (64, 128, 4, 2, 1),
    (128, 256, 4, 2, 1),
    (256, 512, 3, 1, 1),
    (512, 512, 3, 1, 1),
]
# Layers 1-4 run as im2col + Pallas matmul; zero-pad channels so K and C_out
# are multiples of 128 (zero weights / zero biases -> numerically identical).
CIN_PAD = [8, 128, 128, 128]      # layer-1 K = 4*4*8 = 128, others 4*4*128 = 2048
COUT_PAD = [128, 128, 128, 256]


# ----------------------------------------------------------------------------
# Pallas kernels
# ----------------------------------------------------------------------------
def _mm_bias_relu_kernel(x_ref, w_ref, b_ref, o_ref):
    """(M, K) @ (K, C) + b, ReLU.  bf16 inputs, f32 accumulate, bf16 out."""
    acc = jnp.dot(x_ref[...], w_ref[...], preferred_element_type=jnp.float32)
    o_ref[...] = jnp.maximum(acc + b_ref[...], 0.0).astype(o_ref.dtype)


def matmul_bias_relu(x, w, b):
    M, _ = x.shape
    C = w.shape[1]
    return pl.pallas_call(
        _mm_bias_relu_kernel,
        out_shape=jax.ShapeDtypeStruct((M, C), jnp.bfloat16),
        in_specs=[pl.BlockSpec(memory_space=pltpu.MemorySpace.VMEM)] * 3,
        out_specs=pl.BlockSpec(memory_space=pltpu.MemorySpace.VMEM),
    )(x, w, b)


def _conv3x3_same(x, w_ref, b_ref, acc_ref):
    """3x3 / stride 1 / pad 1 conv on an NHWC value via per-tap MXU matmuls.

    x: (N, H, W, Cin) bf16 value.     w_ref: (9, Cin, Cout) bf16 (tap-major).
    b_ref: (1, 1, 1, Cout) f32.       acc_ref: (N, H, W, Cout) f32 scratch.
    Returns ReLU(conv(x) + b) as an f32 value.  Boundary taps are handled by
    accumulating into static sub-slices of the scratch ref (no padding needed).
    """
    N, H, W, Cin = x.shape
    Cout = acc_ref.shape[-1]
    acc_ref[...] = jnp.zeros_like(acc_ref)
    for di in range(3):
        ho0, ho1 = max(0, 1 - di), min(H, H + 1 - di)
        if ho1 <= ho0:
            continue
        for dj in range(3):
            wo0, wo1 = max(0, 1 - dj), min(W, W + 1 - dj)
            if wo1 <= wo0:
                continue
            hi0, hi1 = ho0 + di - 1, ho1 + di - 1
            wi0, wi1 = wo0 + dj - 1, wo1 + dj - 1
            hh, ww = hi1 - hi0, wi1 - wi0
            xs = x[:, hi0:hi1, wi0:wi1, :].reshape(N * hh * ww, Cin)
            part = jnp.dot(xs, w_ref[3 * di + dj],
                           preferred_element_type=jnp.float32)
            acc_ref[:, ho0:ho1, wo0:wo1, :] += part.reshape(N, hh, ww, Cout)
    return jnp.maximum(acc_ref[...] + b_ref[...], 0.0)


def _tail_kernel(x_ref, w5_ref, b5_ref, w6_ref, b6_ref, fcw_ref, fcb_ref,
                 o_ref, acc5_ref, acc6_ref):
    """Fused conv5+ReLU -> conv6+ReLU -> AdaptiveAvgPool2d((1,1)) -> Flatten
    -> Linear(512, 2) -> F.normalize(dim=1).  Everything stays in VMEM."""
    y5 = _conv3x3_same(x_ref[...], w5_ref, b5_ref, acc5_ref)              # f32
    y6 = _conv3x3_same(y5.astype(jnp.bfloat16), w6_ref, b6_ref, acc6_ref)  # f32
    N, H, W, _ = y6.shape
    pooled = jnp.sum(jnp.sum(y6, axis=2), axis=1) * (1.0 / (H * W))       # (N, 512)
    z = jnp.dot(pooled, fcw_ref[...], preferred_element_type=jnp.float32)
    z = z + fcb_ref[...]
    norm = jnp.sqrt(jnp.sum(z * z, axis=1, keepdims=True))
    o_ref[...] = z / jnp.maximum(norm, 1e-12)      # F.normalize(dim=1), eps=1e-12


def fused_tail(x, w5, b5, w6, b6, fc_w, fc_b):
    N, Hf, Wf, _ = x.shape
    c5 = w5.shape[-1]
    c6 = w6.shape[-1]
    return pl.pallas_call(
        _tail_kernel,
        out_shape=jax.ShapeDtypeStruct((N, fc_w.shape[1]), jnp.float32),
        in_specs=[pl.BlockSpec(memory_space=pltpu.MemorySpace.VMEM)] * 7,
        out_specs=pl.BlockSpec(memory_space=pltpu.MemorySpace.VMEM),
        scratch_shapes=[pltpu.VMEM((N, Hf, Wf, c5), jnp.float32),
                        pltpu.VMEM((N, Hf, Wf, c6), jnp.float32)],
    )(x, w5, b5, w6, b6, fc_w, fc_b)


# ----------------------------------------------------------------------------
# XLA glue: NHWC im2col for the stride-2 4x4 conv layers
# ----------------------------------------------------------------------------
def im2col_nhwc(x, k, stride, pad):
    """(N, H, W, C) -> (N*Ho*Wo, k*k*C); patch taps in (kh, kw, C) order so the
    channel axis stays dense on the 128-lane axis."""
    N, H, W, C = x.shape
    xp = jnp.pad(x, ((0, 0), (pad, pad), (pad, pad), (0, 0)))
    Ho = (H + 2 * pad - k) // stride + 1
    Wo = (W + 2 * pad - k) // stride + 1
    taps = []
    for di in range(k):
        for dj in range(k):
            taps.append(xp[:, di:di + (Ho - 1) * stride + 1:stride,
                           dj:dj + (Wo - 1) * stride + 1:stride, :])
    patches = jnp.stack(taps, axis=3)                 # (N, Ho, Wo, k*k, C)
    return patches.reshape(N * Ho * Wo, k * k * C), Ho, Wo


# ----------------------------------------------------------------------------
# Parameters: PyTorch-default-style init + one-time repack for the kernels
# ----------------------------------------------------------------------------
def init_params(key):
    """Uniform(+-1/sqrt(fan_in)) init, PyTorch weight layout (C_out, C_in, kh, kw)."""
    params = {"convs": []}
    for (c_in, c_out, k, _, _) in CONV_CFG:
        key, kw_, kb_ = jax.random.split(key, 3)
        bound = 1.0 / jnp.sqrt(c_in * k * k)
        w = jax.random.uniform(kw_, (c_out, c_in, k, k), jnp.float32, -bound, bound)
        b = jax.random.uniform(kb_, (c_out,), jnp.float32, -bound, bound)
        params["convs"].append((w, b))
    key, kw_, kb_ = jax.random.split(key, 3)
    bound = 1.0 / jnp.sqrt(512.0)
    params["fc_w"] = jax.random.uniform(kw_, (512, 2), jnp.float32, -bound, bound)
    params["fc_b"] = jax.random.uniform(kb_, (2,), jnp.float32, -bound, bound)
    return params


def pack_params(params):
    """One-time repack: (kh, kw, Cin)-ordered matmul weights, zero channel
    padding for lane density, bf16 for the MXU (biases stay f32)."""
    packed = {"convs": []}
    for idx, (w, b) in enumerate(params["convs"]):
        c_out, c_in, kh, kw = w.shape
        if idx < 4:   # im2col + matmul path
            cin_p, cout_p = CIN_PAD[idx], COUT_PAD[idx]
            wp = jnp.pad(w, ((0, cout_p - c_out), (0, cin_p - c_in), (0, 0), (0, 0)))
            w_mat = jnp.transpose(wp, (2, 3, 1, 0)).reshape(kh * kw * cin_p, cout_p)
            b_row = jnp.pad(b, (0, cout_p - c_out)).reshape(1, cout_p)
            packed["convs"].append((w_mat.astype(jnp.bfloat16),
                                    b_row.astype(jnp.float32)))
        else:         # fused-tail path: tap-major (9, Cin, Cout)
            w_taps = jnp.transpose(w, (2, 3, 1, 0)).reshape(kh * kw, c_in, c_out)
            packed["convs"].append((w_taps.astype(jnp.bfloat16),
                                    b.reshape(1, 1, 1, c_out).astype(jnp.float32)))
    packed["fc_w"] = params["fc_w"].astype(jnp.float32)
    packed["fc_b"] = params["fc_b"].reshape(1, -1).astype(jnp.float32)
    return packed


# ----------------------------------------------------------------------------
# Forward pass
# ----------------------------------------------------------------------------
@jax.jit
def encoder_forward(packed, x_nchw):
    N = x_nchw.shape[0]
    x = jnp.transpose(x_nchw, (0, 2, 3, 1))                     # NHWC, once, up front
    x = jnp.pad(x, ((0, 0), (0, 0), (0, 0), (0, CIN_PAD[0] - x.shape[3])))
    h = x.astype(jnp.bfloat16)
    for idx in range(4):                                        # strided 4x4 convs
        w_mat, b_row = packed["convs"][idx]
        _, _, k, s, p = CONV_CFG[idx]
        cols, Ho, Wo = im2col_nhwc(h, k, s, p)
        h = matmul_bias_relu(cols, w_mat, b_row).reshape(N, Ho, Wo, -1)
    w5, b5 = packed["convs"][4]
    w6, b6 = packed["convs"][5]
    return fused_tail(h, w5, b5, w6, b6, packed["fc_w"], packed["fc_b"])


if __name__ == "__main__":
    key = jax.random.PRNGKey(0)
    k_param, k_x = jax.random.split(key)
    params = init_params(k_param)
    packed = pack_params(params)
    x = jax.random.normal(k_x, (2, 3, 16, 16), jnp.float32)     # NCHW, like PyTorch

    z = encoder_forward(packed, x)
    jax.block_until_ready(z)
    assert z.shape == (2, 2)
    # unit-norm check of F.normalize(dim=1)
    norms = jnp.sqrt(jnp.sum(z * z, axis=1))
    assert bool(jnp.all(jnp.abs(norms - 1.0) < 1e-4))
    print("KERNEL_OK")
</pallas_src>

<mosaic_0001>
module attributes {stable_mosaic.version = 11 : i64} {
  func.func @_mm_bias_relu_kernel(%arg0: memref<128x128xbf16, #tpu.memory_space<vmem>>, %arg1: memref<128x128xbf16, #tpu.memory_space<vmem>>, %arg2: memref<1x128xf32, #tpu.memory_space<vmem>>, %arg3: memref<128x128xbf16, #tpu.memory_space<vmem>>) attributes {dimension_semantics = [], scalar_prefetch = 0 : i64, scratch_operands = 0 : i64, tpu.core_type = #tpu.core_type<tc>} {
    %c0 = arith.constant 0 : index
    %c0_0 = arith.constant 0 : index
    %0 = vector.load %arg0[%c0, %c0_0] : memref<128x128xbf16, #tpu.memory_space<vmem>>, vector<128x128xbf16>
    %c0_1 = arith.constant 0 : index
    %c0_2 = arith.constant 0 : index
    %1 = vector.load %arg1[%c0_1, %c0_2] : memref<128x128xbf16, #tpu.memory_space<vmem>>, vector<128x128xbf16>
    %cst = arith.constant dense<0.000000e+00> : vector<128x128xf32>
    %2 = tpu.matmul %0, %1, %cst {dimension_numbers = #tpu.dot_dimension_numbers<[1], [0], [0], [1], [0, 0, 1, 1], [], []>} : vector<128x128xbf16>, vector<128x128xbf16>, vector<128x128xf32> -> vector<128x128xf32>
    %c0_3 = arith.constant 0 : index
    %c0_4 = arith.constant 0 : index
    %3 = vector.load %arg2[%c0_3, %c0_4] : memref<1x128xf32, #tpu.memory_space<vmem>>, vector<1x128xf32>
    %4 = vector.broadcast %3 : vector<1x128xf32> to vector<128x128xf32>
    %5 = arith.addf %2, %4 : vector<128x128xf32>
    %cst_5 = arith.constant 0.000000e+00 : f32
    %6 = vector.broadcast %cst_5 : f32 to vector<128x128xf32>
    %7 = arith.maximumf %5, %6 : vector<128x128xf32>
    %8 = arith.truncf %7 : vector<128x128xf32> to vector<128x128xbf16>
    %c0_6 = arith.constant 0 : index
    %c0_7 = arith.constant 0 : index
    %9 = vector.load %arg3[%c0_6, %c0_7] : memref<128x128xbf16, #tpu.memory_space<vmem>>, vector<128x128xbf16>
    tpu.vector_store %arg3[%c0_6, %c0_7], %8 {strides = array<i32>} : memref<128x128xbf16, #tpu.memory_space<vmem>>, vector<128x128xbf16>,
    return
  }
}

module attributes {stable_mosaic.version = 11 : i64} {
  func.func @_mm_bias_relu_kernel(%arg0: memref<32x2048xbf16, #tpu.memory_space<vmem>>, %arg1: memref<2048x128xbf16, #tpu.memory_space<vmem>>, %arg2: memref<1x128xf32, #tpu.memory_space<vmem>>, %arg3: memref<32x128xbf16, #tpu.memory_space<vmem>>) attributes {dimension_semantics = [], scalar_prefetch = 0 : i64, scratch_operands = 0 : i64, tpu.core_type = #tpu.core_type<tc>} {
    %c0 = arith.constant 0 : index
    %c0_0 = arith.constant 0 : index
    %0 = vector.load %arg0[%c0, %c0_0] : memref<32x2048xbf16, #tpu.memory_space<vmem>>, vector<32x2048xbf16>
    %c0_1 = arith.constant 0 : index
    %c0_2 = arith.constant 0 : index
    %1 = vector.load %arg1[%c0_1, %c0_2] : memref<2048x128xbf16, #tpu.memory_space<vmem>>, vector<2048x128xbf16>
    %cst = arith.constant dense<0.000000e+00> : vector<32x128xf32>
    %2 = tpu.matmul %0, %1, %cst {dimension_numbers = #tpu.dot_dimension_numbers<[1], [0], [0], [1], [0, 0, 1, 1], [], []>} : vector<32x2048xbf16>, vector<2048x128xbf16>, vector<32x128xf32> -> vector<32x128xf32>
    %c0_3 = arith.constant 0 : index
    %c0_4 = arith.constant 0 : index
    %3 = vector.load %arg2[%c0_3, %c0_4] : memref<1x128xf32, #tpu.memory_space<vmem>>, vector<1x128xf32>
    %4 = vector.broadcast %3 : vector<1x128xf32> to vector<32x128xf32>
    %5 = arith.addf %2, %4 : vector<32x128xf32>
    %cst_5 = arith.constant 0.000000e+00 : f32
    %6 = vector.broadcast %cst_5 : f32 to vector<32x128xf32>
    %7 = arith.maximumf %5, %6 : vector<32x128xf32>
    %8 = arith.truncf %7 : vector<32x128xf32> to vector<32x128xbf16>
    %c0_6 = arith.constant 0 : index
    %c0_7 = arith.constant 0 : index
    %9 = vector.load %arg3[%c0_6, %c0_7] : memref<32x128xbf16, #tpu.memory_space<vmem>>, vector<32x128xbf16>
    tpu.vector_store %arg3[%c0_6, %c0_7], %8 {strides = array<i32>} : memref<32x128xbf16, #tpu.memory_space<vmem>>, vector<32x128xbf16>,
    return
  }
}

module attributes {stable_mosaic.version = 11 : i64} {
  func.func @_mm_bias_relu_kernel(%arg0: memref<8x2048xbf16, #tpu.memory_space<vmem>>, %arg1: memref<2048x128xbf16, #tpu.memory_space<vmem>>, %arg2: memref<1x128xf32, #tpu.memory_space<vmem>>, %arg3: memref<8x128xbf16, #tpu.memory_space<vmem>>) attributes {dimension_semantics = [], scalar_prefetch = 0 : i64, scratch_operands = 0 : i64, tpu.core_type = #tpu.core_type<tc>} {
    %c0 = arith.constant 0 : index
    %c0_0 = arith.constant 0 : index
    %0 = vector.load %arg0[%c0, %c0_0] : memref<8x2048xbf16, #tpu.memory_space<vmem>>, vector<8x2048xbf16>
    %c0_1 = arith.constant 0 : index
    %c0_2 = arith.constant 0 : index
    %1 = vector.load %arg1[%c0_1, %c0_2] : memref<2048x128xbf16, #tpu.memory_space<vmem>>, vector<2048x128xbf16>
    %cst = arith.constant dense<0.000000e+00> : vector<8x128xf32>
    %2 = tpu.matmul %0, %1, %cst {dimension_numbers = #tpu.dot_dimension_numbers<[1], [0], [0], [1], [0, 0, 1, 1], [], []>} : vector<8x2048xbf16>, vector<2048x128xbf16>, vector<8x128xf32> -> vector<8x128xf32>
    %c0_3 = arith.constant 0 : index
    %c0_4 = arith.constant 0 : index
    %3 = vector.load %arg2[%c0_3, %c0_4] : memref<1x128xf32, #tpu.memory_space<vmem>>, vector<1x128xf32>
    %4 = vector.broadcast %3 : vector<1x128xf32> to vector<8x128xf32>
    %5 = arith.addf %2, %4 : vector<8x128xf32>
    %cst_5 = arith.constant 0.000000e+00 : f32
    %6 = vector.broadcast %cst_5 : f32 to vector<8x128xf32>
    %7 = arith.maximumf %5, %6 : vector<8x128xf32>
    %8 = arith.truncf %7 : vector<8x128xf32> to vector<8x128xbf16>
    %c0_6 = arith.constant 0 : index
    %c0_7 = arith.constant 0 : index
    %9 = vector.load %arg3[%c0_6, %c0_7] : memref<8x128xbf16, #tpu.memory_space<vmem>>, vector<8x128xbf16>
    tpu.vector_store %arg3[%c0_6, %c0_7], %8 {strides = array<i32>} : memref<8x128xbf16, #tpu.memory_space<vmem>>, vector<8x128xbf16>,
    return
  }
}

module attributes {stable_mosaic.version = 11 : i64} {
  func.func @_mm_bias_relu_kernel(%arg0: memref<2x2048xbf16, #tpu.memory_space<vmem>>, %arg1: memref<2048x256xbf16, #tpu.memory_space<vmem>>, %arg2: memref<1x256xf32, #tpu.memory_space<vmem>>, %arg3: memref<2x256xbf16, #tpu.memory_space<vmem>>) attributes {dimension_semantics = [], scalar_prefetch = 0 : i64, scratch_operands = 0 : i64, tpu.core_type = #tpu.core_type<tc>} {
    %c0 = arith.constant 0 : index
    %c0_0 = arith.constant 0 : index
    %0 = vector.load %arg0[%c0, %c0_0] : memref<2x2048xbf16, #tpu.memory_space<vmem>>, vector<2x2048xbf16>
    %c0_1 = arith.constant 0 : index
    %c0_2 = arith.constant 0 : index
    %1 = vector.load %arg1[%c0_1, %c0_2] : memref<2048x256xbf16, #tpu.memory_space<vmem>>, vector<2048x256xbf16>
    %cst = arith.constant dense<0.000000e+00> : vector<2x256xf32>
    %2 = tpu.matmul %0, %1, %cst {dimension_numbers = #tpu.dot_dimension_numbers<[1], [0], [0], [1], [0, 0, 1, 1], [], []>} : vector<2x2048xbf16>, vector<2048x256xbf16>, vector<2x256xf32> -> vector<2x256xf32>
    %c0_3 = arith.constant 0 : index
    %c0_4 = arith.constant 0 : index
    %3 = vector.load %arg2[%c0_3, %c0_4] : memref<1x256xf32, #tpu.memory_space<vmem>>, vector<1x256xf32>
    %4 = vector.broadcast %3 : vector<1x256xf32> to vector<2x256xf32>
    %5 = arith.addf %2, %4 : vector<2x256xf32>
    %cst_5 = arith.constant 0.000000e+00 : f32
    %6 = vector.broadcast %cst_5 : f32 to vector<2x256xf32>
    %7 = arith.maximumf %5, %6 : vector<2x256xf32>
    %8 = arith.truncf %7 : vector<2x256xf32> to vector<2x256xbf16>
    %c0_6 = arith.constant 0 : index
    %c0_7 = arith.constant 0 : index
    %9 = vector.load %arg3[%c0_6, %c0_7] : memref<2x256xbf16, #tpu.memory_space<vmem>>, vector<2x256xbf16>
    tpu.vector_store %arg3[%c0_6, %c0_7], %8 {strides = array<i32>} : memref<2x256xbf16, #tpu.memory_space<vmem>>, vector<2x256xbf16>,
    return
  }
}

module attributes {stable_mosaic.version = 11 : i64} {
  func.func @_tail_kernel(%arg0: memref<2x1x1x256xbf16, #tpu.memory_space<vmem>>, %arg1: memref<9x256x512xbf16, #tpu.memory_space<vmem>>, %arg2: memref<1x1x1x512xf32, #tpu.memory_space<vmem>>, %arg3: memref<9x512x512xbf16, #tpu.memory_space<vmem>>, %arg4: memref<1x1x1x512xf32, #tpu.memory_space<vmem>>, %arg5: memref<512x2xf32, #tpu.memory_space<vmem>>, %arg6: memref<1x2xf32, #tpu.memory_space<vmem>>, %arg7: memref<2x2xf32, #tpu.memory_space<vmem>>, %arg8: memref<2x1x1x512xf32, #tpu.memory_space<vmem>>, %arg9: memref<2x1x1x512xf32, #tpu.memory_space<vmem>>) attributes {dimension_semantics = [], scalar_prefetch = 0 : i64, scratch_operands = 2 : i64, tpu.core_type = #tpu.core_type<tc>} {
    %c0 = arith.constant 0 : index
    %c0_0 = arith.constant 0 : index
    %c0_1 = arith.constant 0 : index
    %c0_2 = arith.constant 0 : index
    %0 = vector.load %arg0[%c0, %c0_0, %c0_1, %c0_2] : memref<2x1x1x256xbf16, #tpu.memory_space<vmem>>, vector<2x1x1x256xbf16>
    %cst = arith.constant 0.000000e+00 : f32
    %1 = vector.broadcast %cst : f32 to vector<2x1x1x512xf32>
    %c0_3 = arith.constant 0 : index
    %c0_4 = arith.constant 0 : index
    %c0_5 = arith.constant 0 : index
    %c0_6 = arith.constant 0 : index
    %2 = vector.load %arg8[%c0_3, %c0_4, %c0_5, %c0_6] : memref<2x1x1x512xf32, #tpu.memory_space<vmem>>, vector<2x1x1x512xf32>
    tpu.vector_store %arg8[%c0_3, %c0_4, %c0_5, %c0_6], %1 {strides = array<i32>} : memref<2x1x1x512xf32, #tpu.memory_space<vmem>>, vector<2x1x1x512xf32>,
    %3 = vector.shape_cast %0 : vector<2x1x1x256xbf16> to vector<2x256xbf16>
    %c4 = arith.constant 4 : index
    %c0_7 = arith.constant 0 : index
    %c0_8 = arith.constant 0 : index
    %4 = vector.load %arg1[%c4, %c0_7, %c0_8] : memref<9x256x512xbf16, #tpu.memory_space<vmem>>, vector<1x256x512xbf16>
    %5 = vector.shape_cast %4 : vector<1x256x512xbf16> to vector<256x512xbf16>
    %cst_9 = arith.constant dense<0.000000e+00> : vector<2x512xf32>
    %6 = tpu.matmul %3, %5, %cst_9 {dimension_numbers = #tpu.dot_dimension_numbers<[1], [0], [0], [1], [0, 0, 1, 1], [], []>} : vector<2x256xbf16>, vector<256x512xbf16>, vector<2x512xf32> -> vector<2x512xf32>
    %c0_10 = arith.constant 0 : index
    %c0_11 = arith.constant 0 : index
    %c0_12 = arith.constant 0 : index
    %c0_13 = arith.constant 0 : index
    %7 = vector.load %arg8[%c0_10, %c0_11, %c0_12, %c0_13] : memref<2x1x1x512xf32, #tpu.memory_space<vmem>>, vector<2x1x1x512xf32>
    %8 = vector.shape_cast %6 : vector<2x512xf32> to vector<2x1x1x512xf32>
    %9 = arith.addf %7, %8 : vector<2x1x1x512xf32>
    %c0_14 = arith.constant 0 : index
    %c0_15 = arith.constant 0 : index
    %c0_16 = arith.constant 0 : index
    %c0_17 = arith.constant 0 : index
    %10 = vector.load %arg8[%c0_14, %c0_15, %c0_16, %c0_17] : memref<2x1x1x512xf32, #tpu.memory_space<vmem>>, vector<2x1x1x512xf32>
    tpu.vector_store %arg8[%c0_14, %c0_15, %c0_16, %c0_17], %9 {strides = array<i32>} : memref<2x1x1x512xf32, #tpu.memory_space<vmem>>, vector<2x1x1x512xf32>,
    %c0_18 = arith.constant 0 : index
    %c0_19 = arith.constant 0 : index
    %c0_20 = arith.constant 0 : index
    %c0_21 = arith.constant 0 : index
    %11 = vector.load %arg8[%c0_18, %c0_19, %c0_20, %c0_21] : memref<2x1x1x512xf32, #tpu.memory_space<vmem>>, vector<2x1x1x512xf32>
    %c0_22 = arith.constant 0 : index
    %c0_23 = arith.constant 0 : index
    %c0_24 = arith.constant 0 : index
    %c0_25 = arith.constant 0 : index
    %12 = vector.load %arg2[%c0_22, %c0_23, %c0_24, %c0_25] : memref<1x1x1x512xf32, #tpu.memory_space<vmem>>, vector<1x1x1x512xf32>
    %13 = vector.broadcast %12 : vector<1x1x1x512xf32> to vector<2x1x1x512xf32>
    %14 = arith.addf %11, %13 : vector<2x1x1x512xf32>
    %cst_26 = arith.constant 0.000000e+00 : f32
    %15 = vector.broadcast %cst_26 : f32 to vector<2x1x1x512xf32>
    %16 = arith.maximumf %14, %15 : vector<2x1x1x512xf32>
    %17 = arith.truncf %16 : vector<2x1x1x512xf32> to vector<2x1x1x512xbf16>
    %cst_27 = arith.constant 0.000000e+00 : f32
    %18 = vector.broadcast %cst_27 : f32 to vector<2x1x1x512xf32>
    %c0_28 = arith.constant 0 : index
    %c0_29 = arith.constant 0 : index
    %c0_30 = arith.constant 0 : index
    %c0_31 = arith.constant 0 : index
    %19 = vector.load %arg9[%c0_28, %c0_29, %c0_30, %c0_31] : memref<2x1x1x512xf32, #tpu.memory_space<vmem>>, vector<2x1x1x512xf32>
    tpu.vector_store %arg9[%c0_28, %c0_29, %c0_30, %c0_31], %18 {strides = array<i32>} : memref<2x1x1x512xf32, #tpu.memory_space<vmem>>, vector<2x1x1x512xf32>,
    %20 = vector.shape_cast %17 : vector<2x1x1x512xbf16> to vector<2x512xbf16>
    %c4_32 = arith.constant 4 : index
    %c0_33 = arith.constant 0 : index
    %c0_34 = arith.constant 0 : index
    %21 = vector.load %arg3[%c4_32, %c0_33, %c0_34] : memref<9x512x512xbf16, #tpu.memory_space<vmem>>, vector<1x512x512xbf16>
    %22 = vector.shape_cast %21 : vector<1x512x512xbf16> to vector<512x512xbf16>
    %cst_35 = arith.constant dense<0.000000e+00> : vector<2x512xf32>
    %23 = tpu.matmul %20, %22, %cst_35 {dimension_numbers = #tpu.dot_dimension_numbers<[1], [0], [0], [1], [0, 0, 1, 1], [], []>} : vector<2x512xbf16>, vector<512x512xbf16>, vector<2x512xf32> -> vector<2x512xf32>
    %c0_36 = arith.constant 0 : index
    %c0_37 = arith.constant 0 : index
    %c0_38 = arith.constant 0 : index
    %c0_39 = arith.constant 0 : index
    %24 = vector.load %arg9[%c0_36, %c0_37, %c0_38, %c0_39] : memref<2x1x1x512xf32, #tpu.memory_space<vmem>>, vector<2x1x1x512xf32>
    %25 = vector.shape_cast %23 : vector<2x512xf32> to vector<2x1x1x512xf32>
    %26 = arith.addf %24, %25 : vector<2x1x1x512xf32>
    %c0_40 = arith.constant 0 : index
    %c0_41 = arith.constant 0 : index
    %c0_42 = arith.constant 0 : index
    %c0_43 = arith.constant 0 : index
    %27 = vector.load %arg9[%c0_40, %c0_41, %c0_42, %c0_43] : memref<2x1x1x512xf32, #tpu.memory_space<vmem>>, vector<2x1x1x512xf32>
    tpu.vector_store %arg9[%c0_40, %c0_41, %c0_42, %c0_43], %26 {strides = array<i32>} : memref<2x1x1x512xf32, #tpu.memory_space<vmem>>, vector<2x1x1x512xf32>,
    %c0_44 = arith.constant 0 : index
    %c0_45 = arith.constant 0 : index
    %c0_46 = arith.constant 0 : index
    %c0_47 = arith.constant 0 : index
    %28 = vector.load %arg9[%c0_44, %c0_45, %c0_46, %c0_47] : memref<2x1x1x512xf32, #tpu.memory_space<vmem>>, vector<2x1x1x512xf32>
    %c0_48 = arith.constant 0 : index
    %c0_49 = arith.constant 0 : index
    %c0_50 = arith.constant 0 : index
    %c0_51 = arith.constant 0 : index
    %29 = vector.load %arg4[%c0_48, %c0_49, %c0_50, %c0_51] : memref<1x1x1x512xf32, #tpu.memory_space<vmem>>, vector<1x1x1x512xf32>
    %30 = vector.broadcast %29 : vector<1x1x1x512xf32> to vector<2x1x1x512xf32>
    %31 = arith.addf %28, %30 : vector<2x1x1x512xf32>
    %cst_52 = arith.constant 0.000000e+00 : f32
    %32 = vector.broadcast %cst_52 : f32 to vector<2x1x1x512xf32>
    %33 = arith.maximumf %31, %32 : vector<2x1x1x512xf32>
    %cst_53 = arith.constant dense<0.000000e+00> : vector<2x1x512xf32>
    %34 = vector.multi_reduction <add>, %33, %cst_53 [2] : vector<2x1x1x512xf32> to vector<2x1x512xf32>
    %cst_54 = arith.constant dense<0.000000e+00> : vector<2x512xf32>
    %35 = vector.multi_reduction <add>, %34, %cst_54 [1] : vector<2x1x512xf32> to vector<2x512xf32>
    %cst_55 = arith.constant 1.000000e+00 : f32
    %36 = vector.broadcast %cst_55 : f32 to vector<2x512xf32>
    %37 = arith.mulf %35, %36 : vector<2x512xf32>
    %c0_56 = arith.constant 0 : index
    %c0_57 = arith.constant 0 : index
    %38 = vector.load %arg5[%c0_56, %c0_57] : memref<512x2xf32, #tpu.memory_space<vmem>>, vector<512x2xf32>
    %cst_58 = arith.constant dense<0.000000e+00> : vector<2x2xf32>
    %39 = tpu.matmul %37, %38, %cst_58 {dimension_numbers = #tpu.dot_dimension_numbers<[1], [0], [0], [1], [0, 0, 1, 1], [], []>} : vector<2x512xf32>, vector<512x2xf32>, vector<2x2xf32> -> vector<2x2xf32>
    %c0_59 = arith.constant 0 : index
    %c0_60 = arith.constant 0 : index
    %40 = vector.load %arg6[%c0_59, %c0_60] : memref<1x2xf32, #tpu.memory_space<vmem>>, vector<1x2xf32>
    %41 = vector.broadcast %40 : vector<1x2xf32> to vector<2x2xf32>
    %42 = arith.addf %39, %41 : vector<2x2xf32>
    %43 = arith.mulf %42, %42 : vector<2x2xf32>
    %cst_61 = arith.constant dense<0.000000e+00> : vector<2xf32>
    %44 = vector.multi_reduction <add>, %43, %cst_61 [1] : vector<2x2xf32> to vector<2xf32>
    %45 = vector.shape_cast %44 : vector<2xf32> to vector<2x1xf32>
    %46 = math.sqrt %45 : vector<2x1xf32>
    %cst_62 = arith.constant 9.99999996E-13 : f32
    %47 = vector.broadcast %cst_62 : f32 to vector<2x1xf32>
    %48 = arith.maximumf %46, %47 : vector<2x1xf32>
    %49 = vector.broadcast %48 : vector<2x1xf32> to vector<2x2xf32>
    %50 = arith.divf %42, %49 : vector<2x2xf32>
    %c0_63 = arith.constant 0 : index
    %c0_64 = arith.constant 0 : index
    %51 = vector.load %arg7[%c0_63, %c0_64] : memref<2x2xf32, #tpu.memory_space<vmem>>, vector<2x2xf32>
    tpu.vector_store %arg7[%c0_63, %c0_64], %50 {strides = array<i32>} : memref<2x2xf32, #tpu.memory_space<vmem>>, vector<2x2xf32>,
    return
  }
}

</mosaic_0001>

<bundles_post_ra>
// kernel: encoder_forward.5
= control target key start
LH: loop header
LB: loop body
LE: loop exit
PB: predicated region body
PF: predicated region fallthrough
CT: control target
= control target key end

     0   :  { %8 = vsyncpa [#allocation3], 0  ;;  %s699_s0 = inlined_call_operand.vmem [shape: bf16[128,128], index: 0, kind: input, shape index: {}]   ;;  %s700_s1 = inlined_call_operand.hbm [shape: bf16[128,128], index: 1, kind: input, shape index: {}]   ;;  %s701_s2 = inlined_call_operand.hbm [shape: f32[1,128], index: 2, kind: input, shape index: {}]   ;;  %s702_s3 = inlined_call_operand.vmem [shape: bf16[128,128], index: 3, kind: output, shape index: {}]  }
   0x1   :  { %9 = vsyncpa [#allocation5], 0  ;;  %s603_s12 = smov [#allocation2]   ;;  %s555_s16 = scalar_lea.hbm %s700_s1, 1024 }
   0x2   :  { %s17_s13 = sshll.u32 %s603_s12, 4  ;;  %p556_p0 = scmp.ne.s32.totalorder %s700_s1, %s555_s16  ;;  %s18_s13 = int_to_ptr.vmem [resolvable:$true] %s17_s13 }
   0x3   :  { %p559_p1 = scmp.lt.u32.totalorder %s555_s16, %s700_s1 }
   0x5   :  { %p561_p2 = pnand %p559_p1, %p556_p0 }
   0x7   :  { %564 = shalt.err (!%p561_p2)
}
   0x8   :  { %s565_s21 = scalar_lea.vmem %s18_s13, 1024  ;;  %p570_p4 = scmp.lt.s32.totalorder %s18_s13, %s18_s13 }
   0x9   :  { %p566_p3 = scmp.ne.s32.totalorder %s18_s13, %s565_s21  ;;  %p571_p5 = scmp.lt.s32.totalorder %s565_s21, %s565_s21 }
   0xb   :  { %p572_p6 = por %p571_p5, %p570_p4 }
   0xd   :  { %p573_p7 = pnand %p572_p6, %p566_p3 }
   0xf   :  { %576 = shalt.err (!%p573_p7)
}
  0x10   :  { %s604_s22 = smov 64   ;;  %s605_s23 = smov 4  }
  0x11   :  { %23 = dma.hbm_to_vmem [thread:$0]  %s700_s1, 1024, %s18_s13, [#allocation3], %s604_s22, %s604_s22, %s605_s23  }
  0x12   :  { %s606_s26 = smov [#allocation4]   ;;  %s577_s30 = scalar_lea.hbm %s701_s2, 16 }
  0x13   :  { %s30_s27 = sshll.u32 %s606_s26, 4  ;;  %p578_p8 = scmp.ne.s32.totalorder %s701_s2, %s577_s30  ;;  %s31_s27 = int_to_ptr.vmem [resolvable:$true] %s30_s27 }
  0x14   :  { %p581_p9 = scmp.lt.u32.totalorder %s577_s30, %s701_s2 }
  0x16   :  { %p583_p10 = pnand %p581_p9, %p578_p8 }
  0x18   :  { %586 = shalt.err (!%p583_p10)
}
  0x19   :  { %s587_s8 = scalar_lea.vmem %s31_s27, 16  ;;  %s591_s1 = scalar_lea.vmem %s31_s27, 32 }
  0x1a   :  { %p588_p11 = scmp.ne.s32.totalorder %s31_s27, %s587_s8  ;;  %p592_p12 = scmp.lt.s32.totalorder %s31_s27, %s31_s27 }
  0x1b   :  { %p593_p13 = scmp.lt.s32.totalorder %s591_s1, %s587_s8 }
  0x1d   :  { %p594_p0 = por %p593_p13, %p592_p12 }
  0x1f   :  { %p595_p1 = pnand %p594_p0, %p588_p11 }
  0x21   :  { %598 = shalt.err (!%p595_p1)
}
  0x22   :  { %33 = dma.hbm_to_vmem [thread:$0]  %s701_s2, 16, %s31_s27, [#allocation5]  }
  0x23   :  { %599 = dma.done.wait [#allocation3], 1024  }
  0x24   :  { %600 = vsyncadd [#allocation3], 4294966272 }
  0x25   :  { %601 = dma.done.wait [#allocation5], 16  }
  0x26   :  { %602 = vsyncadd [#allocation5], 4294967280  ;;  %v539_v0 = vld [vmem:[#allocation2] sm:$0xff]   ;;  %v540_v1 = vld [vmem:[#allocation2 + $0x8] sm:$0xff]  }
  0x27   :  { %487 = vmatprep.subr.bf16.mxu0 %v539_v0  ;;  %519 = vmatprep.subr.bf16.mxu1 %v539_v0  ;;  %v541_v2 = vld [vmem:[#allocation2 + $0x10] sm:$0xff]   ;;  %v542_v3 = vld [vmem:[#allocation2 + $0x18] sm:$0xff]   ;;  %v547_v4 = vld [vmem:[%s699_s0] sm:$0xff]  }
  0x28   :  { %488 = vmatpush3.bf16.msra.mxu0 %v539_v0  ;;  %527 = vmatpush3.bf16.msra.mxu1 %v539_v0  ;;  %v548_v5 = vld [vmem:[%s699_s0 + $0x20] sm:$0xff]   ;;  %v544_v7 = vld [vmem:[#allocation2 + $0x28] sm:$0xff]   ;;  %v545_v8 = vld [vmem:[#allocation2 + $0x30] sm:$0xff]  }
  0x29   :  { %489 = vmatprep.subr.bf16.mxu0 %v540_v1  ;;  %520 = vmatprep.subr.bf16.mxu1 %v540_v1  ;;  %v543_v6 = vld [vmem:[#allocation2 + $0x20] sm:$0xff]   ;;  %v546_v9 = vld [vmem:[#allocation2 + $0x38] sm:$0xff]   ;;  %v549_v10 = vld [vmem:[%s699_s0 + $0x8] sm:$0xff]  }
  0x2a   :  { %503 = vmatprep.mubr.bf16.mxu0 %v547_v4  ;;  %511 = vmatprep.mubr.bf16.mxu1 %v548_v5  ;;  %v550_v11 = vld [vmem:[%s699_s0 + $0x28] sm:$0xff]   ;;  %v551_v12 = vld [vmem:[%s699_s0 + $0x10] sm:$0xff]   ;;  %v553_v14 = vld [vmem:[%s699_s0 + $0x18] sm:$0xff]  }
  0x2b   :  { %v552_v13 = vld [vmem:[%s699_s0 + $0x30] sm:$0xff]   ;;  %v554_v15 = vld [vmem:[%s699_s0 + $0x38] sm:$0xff]   ;;  %v375_v16 = vld [vmem:[#allocation4] ss:$0 sm:$0xff] }
  0x2c   :  { %490 = vmatpush3.bf16.msra.mxu0 %v540_v1  ;;  %528 = vmatpush3.bf16.msra.mxu1 %v540_v1 }
  0x2d   :  { %491 = vmatprep.subr.bf16.mxu0 %v541_v2  ;;  %521 = vmatprep.subr.bf16.mxu1 %v541_v2 }
  0x30   :  { %492 = vmatpush3.bf16.msra.mxu0 %v541_v2  ;;  %529 = vmatpush3.bf16.msra.mxu1 %v541_v2 }
  0x31   :  { %493 = vmatprep.subr.bf16.mxu0 %v542_v3  ;;  %522 = vmatprep.subr.bf16.mxu1 %v542_v3 }
  0x34   :  { %494 = vmatpush3.bf16.msra.mxu0 %v542_v3  ;;  %530 = vmatpush3.bf16.msra.mxu1 %v542_v3 }
  0x35   :  { %495 = vmatprep.subr.bf16.mxu0 %v543_v6  ;;  %523 = vmatprep.subr.bf16.mxu1 %v543_v6 }
  0x38   :  { %496 = vmatpush3.bf16.msra.mxu0 %v543_v6  ;;  %531 = vmatpush3.bf16.msra.mxu1 %v543_v6 }
  0x39   :  { %497 = vmatprep.subr.bf16.mxu0 %v544_v7  ;;  %524 = vmatprep.subr.bf16.mxu1 %v544_v7 }
  0x3c   :  { %498 = vmatpush3.bf16.msra.mxu0 %v544_v7  ;;  %532 = vmatpush3.bf16.msra.mxu1 %v544_v7 }
  0x3d   :  { %499 = vmatprep.subr.bf16.mxu0 %v545_v8  ;;  %525 = vmatprep.subr.bf16.mxu1 %v545_v8 }
  0x40   :  { %500 = vmatpush3.bf16.msra.mxu0 %v545_v8  ;;  %533 = vmatpush3.bf16.msra.mxu1 %v545_v8 }
  0x41   :  { %501 = vmatprep.subr.bf16.mxu0 %v546_v9  ;;  %526 = vmatprep.subr.bf16.mxu1 %v546_v9 }
  0x44   :  { %502 = vmatpush3.bf16.msra.mxu0 %v546_v9  ;;  %534 = vmatpush3.bf16.msra.mxu1 %v546_v9 }
  0x47   :  { %504 = vmatmul.mubr.bf16.vlgmr.msra.gmra.mrb[0].mxu0 %v549_v10  ;;  %512 = vmatmul.mubr.bf16.vlgmr.msra.gmra.mrb[0].mxu1 %v550_v11 }
  0x48   :  { %507 = vmatprep.mubr.bf16.mxu0 %v551_v12  ;;  %515 = vmatprep.mubr.bf16.mxu1 %v552_v13 }
  0x4f   :  { %508 = vmatmul.mubr.bf16.gmra.mrb[4].mxu0 %v553_v14  ;;  %516 = vmatmul.mubr.bf16.gmra.mrb[4].mxu1 %v554_v15 }
 0x11a   :  { %v505_v17 = vpop.f32.mrb[0].mxu0  ;;  %v513_v18 = vpop.f32.mrb[0].mxu1 }
 0x11b   :  { %v219_v19 = vadd.f32 %v505_v17, %v375_v16  ;;  %v251_v20 = vadd.f32 %v513_v18, %v375_v16  ;;  %v210_v21 = vpop.f32.mrb[1].mxu0  ;;  %v242_v22 = vpop.f32.mrb[1].mxu1 }
 0x11c   :  { %v211_v23 = vadd.f32 %v375_v16, %v210_v21  ;;  %v243_v24 = vadd.f32 %v375_v16, %v242_v22  ;;  %v506_v25 = vpop.f32.mrb[2].mxu0  ;;  %v514_v26 = vpop.f32.mrb[2].mxu1 }
 0x11d   :  { %v222_v27 = vadd.f32 %v506_v25, %v375_v16  ;;  %v254_v28 = vadd.f32 %v514_v26, %v375_v16  ;;  %v213_v29 = vpop.f32.mrb[3].mxu0  ;;  %v245_v30 = vpop.f32.mrb[3].mxu1  ;;  %v275_v33 = vmax.f32 %v219_v19, 0.0  ;;  %v283_v34 = vmax.f32 %v251_v20, 0.0 }
 0x11e   :  { %v214_v31 = vadd.f32 %v375_v16, %v213_v29  ;;  %v246_v32 = vadd.f32 %v375_v16, %v245_v30  ;;  %v273_v37 = vmax.f32 %v211_v23, 0.0  ;;  %v281_v38 = vmax.f32 %v243_v24, 0.0 }
 0x11f   :  { %v276_v35 = vmax.f32 %v222_v27, 0.0  ;;  %v284_v36 = vmax.f32 %v254_v28, 0.0 }
 0x120   :  { %v274_v39 = vmax.f32 %v214_v31, 0.0  ;;  %v282_v40 = vmax.f32 %v246_v32, 0.0 }
 0x121   :  { %v432_v41 = vpack.c.bf16 %v276_v35, %v275_v33  ;;  %v452_v42 = vpack.c.bf16 %v284_v36, %v283_v34 }
 0x122   :  { %v427_v43 = vpack.c.bf16 %v274_v39, %v273_v37  ;;  %v447_v44 = vpack.c.bf16 %v282_v40, %v281_v38  ;;  %v509_v45 = vpop.f32.mrb[4].mxu0  ;;  %v517_v46 = vpop.f32.mrb[4].mxu1 }
 0x123   :  { %464 = vst [vmem:[%s702_s3 + $0x8] sm:$0xff] %v432_v41   ;;  %468 = vst [vmem:[%s702_s3 + $0x28] sm:$0xff] %v452_v42   ;;  %v235_v47 = vadd.f32 %v509_v45, %v375_v16  ;;  %v267_v48 = vadd.f32 %v517_v46, %v375_v16  ;;  %v226_v49 = vpop.f32.mrb[5].mxu0  ;;  %v258_v50 = vpop.f32.mrb[5].mxu1 }
 0x124   :  { %428 = vst [vmem:[%s702_s3] sm:$0xff] %v427_v43   ;;  %467 = vst [vmem:[%s702_s3 + $0x20] sm:$0xff] %v447_v44   ;;  %v227_v51 = vadd.f32 %v375_v16, %v226_v49  ;;  %v259_v52 = vadd.f32 %v375_v16, %v258_v50  ;;  %v510_v53 = vpop.f32.mrb[6].mxu0  ;;  %v518_v54 = vpop.f32.mrb[6].mxu1 }
 0x125   :  { %v238_v55 = vadd.f32 %v510_v53, %v375_v16  ;;  %v270_v56 = vadd.f32 %v518_v54, %v375_v16  ;;  %v229_v57 = vpop.f32.mrb[7].mxu0  ;;  %v261_v58 = vpop.f32.mrb[7].mxu1  ;;  %v279_v61 = vmax.f32 %v235_v47, 0.0  ;;  %v287_v62 = vmax.f32 %v267_v48, 0.0 }
 0x126   :  { %v230_v59 = vadd.f32 %v375_v16, %v229_v57  ;;  %v262_v60 = vadd.f32 %v375_v16, %v261_v58  ;;  %v277_v1 = vmax.f32 %v227_v51, 0.0  ;;  %v285_v2 = vmax.f32 %v259_v52, 0.0 }
 0x127   :  { %v280_v63 = vmax.f32 %v238_v55, 0.0  ;;  %v288_v0 = vmax.f32 %v270_v56, 0.0 }
 0x128   :  { %v278_v3 = vmax.f32 %v230_v59, 0.0  ;;  %v286_v4 = vmax.f32 %v262_v60, 0.0 }
 0x129   :  { %v442_v5 = vpack.c.bf16 %v280_v63, %v279_v61  ;;  %v462_v6 = vpack.c.bf16 %v288_v0, %v287_v62 }
 0x12a   :  { %v437_v7 = vpack.c.bf16 %v278_v3, %v277_v1  ;;  %v457_v8 = vpack.c.bf16 %v286_v4, %v285_v2 }
 0x12b   :  { %466 = vst [vmem:[%s702_s3 + $0x18] sm:$0xff] %v442_v5   ;;  %470 = vst [vmem:[%s702_s3 + $0x38] sm:$0xff] %v462_v6  }
 0x12c   :  { %465 = vst [vmem:[%s702_s3 + $0x10] sm:$0xff] %v437_v7   ;;  %469 = vst [vmem:[%s702_s3 + $0x30] sm:$0xff] %v457_v8  }
 0x12d   :  { %373 = vsyncpa [#allocation3], 1 }
 0x12e   :  { %374 = vsyncpa [#allocation5], 1 }

// kernel: encoder_forward.6
= control target key start
LH: loop header
LB: loop body
LE: loop exit
PB: predicated region body
PF: predicated region fallthrough
CT: control target
= control target key end

     0   :  { %8 = vsyncpa [#allocation3], 0  ;;  %s2232_s12 = smov [#allocation2]   ;;  %s2372_s0 = inlined_call_operand.vmem [shape: bf16[32,2048], index: 0, kind: input, shape index: {}]   ;;  %s2373_s1 = inlined_call_operand.hbm [shape: bf16[2048,128], index: 1, kind: input, shape index: {}]   ;;  %s2374_s2 = inlined_call_operand.vmem [shape: f32[1,128], index: 2, kind: input, shape index: {}]   ;;  %s2375_s3 = inlined_call_operand.vmem [shape: bf16[32,128], index: 3, kind: output, shape index: {}]  }
   0x1   :  { %s16_s13 = sshll.u32 %s2232_s12, 4  ;;  %s2208_s16 = scalar_lea.hbm %s2373_s1, 16384  ;;  %s17_s13 = int_to_ptr.vmem [resolvable:$true] %s16_s13 }
   0x2   :  { %p2209_p0 = scmp.ne.s32.totalorder %s2373_s1, %s2208_s16  ;;  %p2212_p1 = scmp.lt.u32.totalorder %s2208_s16, %s2373_s1 }
   0x4   :  { %p2214_p2 = pnand %p2212_p1, %p2209_p0 }
   0x6   :  { %2217 = shalt.err (!%p2214_p2)
}
   0x7   :  { %s2218_s21 = scalar_lea.vmem %s17_s13, 16384  ;;  %p2223_p4 = scmp.lt.s32.totalorder %s17_s13, %s17_s13 }
   0x8   :  { %p2219_p3 = scmp.ne.s32.totalorder %s17_s13, %s2218_s21  ;;  %p2224_p5 = scmp.lt.s32.totalorder %s2218_s21, %s2218_s21 }
   0xa   :  { %p2225_p6 = por %p2224_p5, %p2223_p4 }
   0xc   :  { %p2226_p7 = pnand %p2225_p6, %p2219_p3 }
   0xe   :  { %2229 = shalt.err (!%p2226_p7)
}
   0xf   :  { %s2233_s22 = smov 64   ;;  %s2234_s23 = smov 4  }
  0x10   :  { %22 = dma.hbm_to_vmem [thread:$0]  %s2373_s1, 16384, %s17_s13, [#allocation3], %s2233_s22, %s2233_s22, %s2234_s23  }
  0x11   :  { %2230 = dma.done.wait [#allocation3], 16384  }
  0x12   :  { %2231 = vsyncadd [#allocation3], 4294950912  ;;  %v2080_v0 = vld [vmem:[#allocation2 + $0x40] sm:$0xff]   ;;  %v2084_v4 = vld [vmem:[#allocation2 + $0x48] sm:$0xff]  }
  0x13   :  { %v2081_v1 = vld [vmem:[#allocation2 + $0xc0] sm:$0xff]   ;;  %1853 = vmatprep.subr.bf16.mxu0 %v2080_v0  ;;  %v2085_v5 = vld [vmem:[#allocation2 + $0xc8] sm:$0xff]   ;;  %v2088_v8 = vld [vmem:[#allocation2 + $0x50] sm:$0xff]  }
  0x14   :  { %v2082_v2 = vld [vmem:[#allocation2] sm:$0xff]   ;;  %1881 = vmatprep.subr.bf16.mxu1 %v2081_v1  ;;  %v2086_v6 = vld [vmem:[#allocation2 + $0x8] sm:$0xff]   ;;  %v2089_v9 = vld [vmem:[#allocation2 + $0xd0] sm:$0xff]  }
  0x15   :  { %v2083_v3 = vld [vmem:[#allocation2 + $0x80] sm:$0xff]   ;;  %1854 = vmatpush3.bf16.msra.mxu0 %v2082_v2  ;;  %v2087_v7 = vld [vmem:[#allocation2 + $0x88] sm:$0xff]   ;;  %v2090_v10 = vld [vmem:[#allocation2 + $0x10] sm:$0xff]  }
  0x16   :  { %1882 = vmatpush3.bf16.msra.mxu1 %v2083_v3  ;;  %1855 = vmatprep.subr.bf16.mxu0 %v2084_v4  ;;  %v2091_v11 = vld [vmem:[#allocation2 + $0x90] sm:$0xff]   ;;  %v2092_v12 = vld [vmem:[#allocation2 + $0x58] sm:$0xff]   ;;  %v2096_v16 = vld [vmem:[#allocation2 + $0x60] sm:$0xff]  }
  0x17   :  { %1883 = vmatprep.subr.bf16.mxu1 %v2085_v5  ;;  %v2093_v13 = vld [vmem:[#allocation2 + $0xd8] sm:$0xff]   ;;  %v2097_v17 = vld [vmem:[#allocation2 + $0xe0] sm:$0xff]   ;;  %v2100_v20 = vld [vmem:[#allocation2 + $0x68] sm:$0xff]  }
  0x18   :  { %v2094_v14 = vld [vmem:[#allocation2 + $0x18] sm:$0xff]   ;;  %v2098_v18 = vld [vmem:[#allocation2 + $0x20] sm:$0xff]   ;;  %v2101_v21 = vld [vmem:[#allocation2 + $0xe8] sm:$0xff]  }
  0x19   :  { %1856 = vmatpush3.bf16.msra.mxu0 %v2086_v6  ;;  %v2095_v15 = vld [vmem:[#allocation2 + $0x98] sm:$0xff]   ;;  %v2099_v19 = vld [vmem:[#allocation2 + $0xa0] sm:$0xff]   ;;  %v2102_v22 = vld [vmem:[#allocation2 + $0x28] sm:$0xff]  }
  0x1a   :  { %1884 = vmatpush3.bf16.msra.mxu1 %v2087_v7  ;;  %1857 = vmatprep.subr.bf16.mxu0 %v2088_v8  ;;  %v2103_v23 = vld [vmem:[#allocation2 + $0xa8] sm:$0xff]   ;;  %v2104_v24 = vld [vmem:[#allocation2 + $0x70] sm:$0xff]   ;;  %v2108_v28 = vld [vmem:[#allocation2 + $0x78] sm:$0xff]  }
  0x1b   :  { %1885 = vmatprep.subr.bf16.mxu1 %v2089_v9  ;;  %v2105_v25 = vld [vmem:[#allocation2 + $0xf0] sm:$0xff]   ;;  %v2109_v29 = vld [vmem:[#allocation2 + $0xf8] sm:$0xff]   ;;  %v29_v32 = vld [vmem:[%s2372_s0] sm:$0xff] }
  0x1c   :  { %v2106_v26 = vld [vmem:[#allocation2 + $0x30] sm:$0xff]   ;;  %v2110_v30 = vld [vmem:[#allocation2 + $0x38] sm:$0xff]   ;;  %v37_v33 = vld [vmem:[%s2372_s0 + $0x40] sm:$0xff] }
  0x1d   :  { %1858 = vmatpush3.bf16.msra.mxu0 %v2090_v10  ;;  %v2107_v27 = vld [vmem:[#allocation2 + $0xb0] sm:$0xff]   ;;  %v2111_v31 = vld [vmem:[#allocation2 + $0xb8] sm:$0xff]   ;;  %v30_v34 = vld [vmem:[%s2372_s0 + $0x8] sm:$0xff]  ;;  %v1674_v35 = vcombine.low %v29_v32, %v37_v33  ;;  %v1675_v36 = vcombine.high %v29_v32, %v37_v33 }
  0x1e   :  { %1886 = vmatpush3.bf16.msra.mxu1 %v2091_v11  ;;  %1859 = vmatprep.subr.bf16.mxu0 %v2092_v12  ;;  %v38_v37 = vld [vmem:[%s2372_s0 + $0x48] sm:$0xff]  ;;  %v2112_v40 = vld [vmem:[#allocation2 + $0x140] sm:$0xff]   ;;  %v2120_v48 = vld [vmem:[#allocation2 + $0x150] sm:$0xff]  }
  0x1f   :  { %1887 = vmatprep.subr.bf16.mxu1 %v2093_v13  ;;  %v1676_v38 = vcombine.low %v30_v34, %v38_v37  ;;  %v1677_v39 = vcombine.high %v30_v34, %v38_v37  ;;  %1284 = vmatprep.mubr.bf16.mxu0 %v1675_v36  ;;  %v2113_v41 = vld [vmem:[#allocation2 + $0x1c0] sm:$0xff]   ;;  %v2116_v44 = vld [vmem:[#allocation2 + $0x148] sm:$0xff]   ;;  %v2121_v49 = vld [vmem:[#allocation2 + $0x1d0] sm:$0xff]  }
  0x20   :  { %v2114_v42 = vld [vmem:[#allocation2 + $0x100] sm:$0xff]   ;;  %v2117_v45 = vld [vmem:[#allocation2 + $0x1c8] sm:$0xff]   ;;  %v2122_v50 = vld [vmem:[#allocation2 + $0x110] sm:$0xff]  }
  0x21   :  { %1860 = vmatpush3.bf16.msra.mxu0 %v2094_v14  ;;  %1333 = vmatprep.mubr.bf16.mxu1 %v1677_v39  ;;  %v2115_v43 = vld [vmem:[#allocation2 + $0x180] sm:$0xff]   ;;  %v2118_v46 = vld [vmem:[#allocation2 + $0x108] sm:$0xff]   ;;  %v2123_v51 = vld [vmem:[#allocation2 + $0x190] sm:$0xff]  }
  0x22   :  { %1888 = vmatpush3.bf16.msra.mxu1 %v2095_v15  ;;  %1861 = vmatprep.subr.bf16.mxu0 %v2096_v16  ;;  %v2119_v47 = vld [vmem:[#allocation2 + $0x188] sm:$0xff]   ;;  %v2124_v52 = vld [vmem:[#allocation2 + $0x158] sm:$0xff]   ;;  %v2128_v56 = vld [vmem:[#allocation2 + $0x160] sm:$0xff]  }
  0x23   :  { %1889 = vmatprep.subr.bf16.mxu1 %v2097_v17  ;;  %v2125_v53 = vld [vmem:[#allocation2 + $0x1d8] sm:$0xff]   ;;  %v2129_v57 = vld [vmem:[#allocation2 + $0x1e0] sm:$0xff]   ;;  %v2132_v60 = vld [vmem:[#allocation2 + $0x168] sm:$0xff]  }
  0x24   :  { %v2126_v54 = vld [vmem:[#allocation2 + $0x118] sm:$0xff]   ;;  %v2130_v58 = vld [vmem:[#allocation2 + $0x120] sm:$0xff]   ;;  %v2133_v61 = vld [vmem:[#allocation2 + $0x1e8] sm:$0xff]  }
  0x25   :  { %1862 = vmatpush3.bf16.msra.mxu0 %v2098_v18  ;;  %v2127_v55 = vld [vmem:[#allocation2 + $0x198] sm:$0xff]   ;;  %v2131_v59 = vld [vmem:[#allocation2 + $0x1a0] sm:$0xff]   ;;  %v2134_v1 = vld [vmem:[#allocation2 + $0x128] sm:$0xff]  }
  0x26   :  { %1890 = vmatpush3.bf16.msra.mxu1 %v2099_v19  ;;  %1863 = vmatprep.subr.bf16.mxu0 %v2100_v20  ;;  %v45_v62 = vld [vmem:[%s2372_s0 + $0x80] sm:$0xff]  ;;  %v2135_v3 = vld [vmem:[#allocation2 + $0x1a8] sm:$0xff]   ;;  %v2136_v8 = vld [vmem:[#allocation2 + $0x170] sm:$0xff]  }
  0x27   :  { %1891 = vmatprep.subr.bf16.mxu1 %v2101_v21  ;;  %v53_v63 = vld [vmem:[%s2372_s0 + $0xc0] sm:$0xff]  ;;  %v46_v4 = vld [vmem:[%s2372_s0 + $0x88] sm:$0xff]  ;;  %v2137_v9 = vld [vmem:[#allocation2 + $0x1f0] sm:$0xff]  }
  0x28   :  { %v1691_v0 = vcombine.high %v45_v62, %v53_v63  ;;  %v1690_v2 = vcombine.low %v45_v62, %v53_v63  ;;  %v54_v5 = vld [vmem:[%s2372_s0 + $0xc8] sm:$0xff]  ;;  %v2138_v10 = vld [vmem:[#allocation2 + $0x130] sm:$0xff]   ;;  %v2140_v12 = vld [vmem:[#allocation2 + $0x178] sm:$0xff]  }
  0x29   :  { %1864 = vmatpush3.bf16.msra.mxu0 %v2102_v22  ;;  %v1693_v6 = vcombine.high %v46_v4, %v54_v5  ;;  %v1692_v7 = vcombine.low %v46_v4, %v54_v5  ;;  %v2139_v11 = vld [vmem:[#allocation2 + $0x1b0] sm:$0xff]   ;;  %v2141_v13 = vld [vmem:[#allocation2 + $0x1f8] sm:$0xff]   ;;  %v34_v4 = vld [vmem:[%s2372_s0 + $0x28] sm:$0xff] }
  0x2a   :  { %1892 = vmatpush3.bf16.msra.mxu1 %v2103_v23  ;;  %1865 = vmatprep.subr.bf16.mxu0 %v2104_v24  ;;  %v2142_v14 = vld [vmem:[#allocation2 + $0x138] sm:$0xff]   ;;  %v31_v16 = vld [vmem:[%s2372_s0 + $0x10] sm:$0xff]  ;;  %v2144_v24 = vld [vmem:[#allocation2 + $0x240] sm:$0xff]  }
  0x2b   :  { %1893 = vmatprep.subr.bf16.mxu1 %v2105_v25  ;;  %v2143_v15 = vld [vmem:[#allocation2 + $0x1b8] sm:$0xff]   ;;  %v39_v17 = vld [vmem:[%s2372_s0 + $0x50] sm:$0xff]  ;;  %v2145_v25 = vld [vmem:[#allocation2 + $0x2c0] sm:$0xff]  }
  0x2c   :  { %v32_v18 = vld [vmem:[%s2372_s0 + $0x18] sm:$0xff]  ;;  %v1678_v20 = vcombine.low %v31_v16, %v39_v17  ;;  %v1679_v21 = vcombine.high %v31_v16, %v39_v17  ;;  %v47_v32 = vld [vmem:[%s2372_s0 + $0x90] sm:$0xff]  ;;  %v42_v5 = vld [vmem:[%s2372_s0 + $0x68] sm:$0xff] }
  0x2d   :  { %1866 = vmatpush3.bf16.msra.mxu0 %v2106_v26  ;;  %v40_v19 = vld [vmem:[%s2372_s0 + $0x58] sm:$0xff]  ;;  %v2146_v26 = vld [vmem:[#allocation2 + $0x200] sm:$0xff]   ;;  %v55_v33 = vld [vmem:[%s2372_s0 + $0xd0] sm:$0xff] }
  0x2e   :  { %1894 = vmatpush3.bf16.msra.mxu1 %v2107_v27  ;;  %1867 = vmatprep.subr.bf16.mxu0 %v2108_v28  ;;  %v1680_v22 = vcombine.low %v32_v18, %v40_v19  ;;  %v1681_v23 = vcombine.high %v32_v18, %v40_v19  ;;  %v2147_v27 = vld [vmem:[#allocation2 + $0x280] sm:$0xff]   ;;  %v2148_v28 = vld [vmem:[#allocation2 + $0x248] sm:$0xff]   ;;  %v1695_v34 = vcombine.high %v47_v32, %v55_v33  ;;  %v2152_v36 = vld [vmem:[#allocation2 + $0x250] sm:$0xff]  }
  0x2f   :  { %1895 = vmatprep.subr.bf16.mxu1 %v2109_v29  ;;  %v2149_v29 = vld [vmem:[#allocation2 + $0x2c8] sm:$0xff]   ;;  %v2153_v37 = vld [vmem:[#allocation2 + $0x2d0] sm:$0xff]   ;;  %v56_v39 = vld [vmem:[%s2372_s0 + $0xd8] sm:$0xff] }
  0x30   :  { %v2174_v62 = vld [vmem:[#allocation2 + $0x238] sm:$0xff]   ;;  %v49_v16 = vld [vmem:[%s2372_s0 + $0xa0] sm:$0xff] }
  0x31   :  { %1868 = vmatpush3.bf16.msra.mxu0 %v2110_v30  ;;  %v2150_v30 = vld [vmem:[#allocation2 + $0x208] sm:$0xff]   ;;  %v2175_v63 = vld [vmem:[#allocation2 + $0x2b8] sm:$0xff]   ;;  %v57_v17 = vld [vmem:[%s2372_s0 + $0xe0] sm:$0xff] }
  0x32   :  { %1896 = vmatpush3.bf16.msra.mxu1 %v2111_v31  ;;  %1909 = vmatprep.subr.bf16.mxu0 %v2112_v40  ;;  %v2151_v31 = vld [vmem:[#allocation2 + $0x288] sm:$0xff]   ;;  %v1699_v18 = vcombine.high %v49_v16, %v57_v17  ;;  %v1698_v19 = vcombine.low %v49_v16, %v57_v17 }
  0x33   :  { %1937 = vmatprep.subr.bf16.mxu1 %v2113_v41  ;;  %v2154_v41 = vld [vmem:[#allocation2 + $0x210] sm:$0xff]  }
  0x34   :  { %1285 = vmatmul.mubr.bf16.vlgmr.msra.gmra.mrb[0].mxu0 %v1674_v35  ;;  %v1694_v35 = vcombine.low %v47_v32, %v55_v33  ;;  %v2192_v32 = vld [vmem:[#allocation2 + $0x360] sm:$0xff]  }
  0x35   :  { %1334 = vmatmul.mubr.bf16.vlgmr.msra.gmra.mrb[0].mxu1 %v1676_v38  ;;  %1910 = vmatpush3.bf16.msra.mxu0 %v2114_v42  ;;  %v48_v38 = vld [vmem:[%s2372_s0 + $0x98] sm:$0xff]  ;;  %v2193_v33 = vld [vmem:[#allocation2 + $0x3e0] sm:$0xff]  }
  0x36   :  { %1938 = vmatpush3.bf16.msra.mxu1 %v2115_v43  ;;  %1911 = vmatprep.subr.bf16.mxu0 %v2116_v44  ;;  %v1697_v40 = vcombine.high %v48_v38, %v56_v39  ;;  %v1696_v42 = vcombine.low %v48_v38, %v56_v39  ;;  %v2155_v43 = vld [vmem:[#allocation2 + $0x290] sm:$0xff]   ;;  %v2156_v44 = vld [vmem:[#allocation2 + $0x258] sm:$0xff]   ;;  %v2198_v38 = vld [vmem:[#allocation2 + $0x328] sm:$0xff]  }
  0x37   :  { %1939 = vmatprep.subr.bf16.mxu1 %v2117_v45  ;;  %1292 = vmatprep.mubr.bf16.mxu0 %v1691_v0  ;;  %v2157_v45 = vld [vmem:[#allocation2 + $0x2d8] sm:$0xff]   ;;  %v33_v0 = vld [vmem:[%s2372_s0 + $0x20] sm:$0xff]  ;;  %v2199_v39 = vld [vmem:[#allocation2 + $0x3a8] sm:$0xff]  }
  0x38   :  { %1341 = vmatprep.mubr.bf16.mxu1 %v1693_v6  ;;  %v1684_v6 = vcombine.low %v34_v4, %v42_v5 }
  0x39   :  { %1912 = vmatpush3.bf16.msra.mxu0 %v2118_v46  ;;  %v2158_v46 = vld [vmem:[#allocation2 + $0x218] sm:$0xff]  }
  0x3a   :  { %1940 = vmatpush3.bf16.msra.mxu1 %v2119_v47  ;;  %1913 = vmatprep.subr.bf16.mxu0 %v2120_v48  ;;  %v2159_v47 = vld [vmem:[#allocation2 + $0x298] sm:$0xff]   ;;  %v2160_v48 = vld [vmem:[#allocation2 + $0x260] sm:$0xff]  }
  0x3b   :  { %1941 = vmatprep.subr.bf16.mxu1 %v2121_v49  ;;  %v2161_v49 = vld [vmem:[#allocation2 + $0x2e0] sm:$0xff]  }
  0x3c   :  { %1293 = vmatmul.mubr.bf16.gmra.mrb[4].mxu0 %v1690_v2 }
  0x3d   :  { %1914 = vmatpush3.bf16.msra.mxu0 %v2122_v50  ;;  %1342 = vmatmul.mubr.bf16.gmra.mrb[4].mxu1 %v1692_v7  ;;  %v2162_v50 = vld [vmem:[#allocation2 + $0x220] sm:$0xff]   ;;  %v1685_v7 = vcombine.high %v34_v4, %v42_v5 }
  0x3e   :  { %1942 = vmatpush3.bf16.msra.mxu1 %v2123_v51  ;;  %1915 = vmatprep.subr.bf16.mxu0 %v2124_v52  ;;  %v2163_v51 = vld [vmem:[#allocation2 + $0x2a0] sm:$0xff]   ;;  %v2164_v52 = vld [vmem:[#allocation2 + $0x268] sm:$0xff]  }
  0x3f   :  { %1943 = vmatprep.subr.bf16.mxu1 %v2125_v53  ;;  %1382 = vmatprep.mubr.bf16.mxu0 %v1679_v21  ;;  %v2165_v53 = vld [vmem:[#allocation2 + $0x2e8] sm:$0xff]   ;;  %v2185_v21 = vld [vmem:[#allocation2 + $0x3d0] sm:$0xff]  }
  0x40   :  { %1431 = vmatprep.mubr.bf16.mxu1 %v1681_v23  ;;  %v58_v23 = vld [vmem:[%s2372_s0 + $0xe8] sm:$0xff] }
  0x41   :  { %1916 = vmatpush3.bf16.msra.mxu0 %v2126_v54  ;;  %v2166_v54 = vld [vmem:[#allocation2 + $0x228] sm:$0xff]  }
  0x42   :  { %1944 = vmatpush3.bf16.msra.mxu1 %v2127_v55  ;;  %1917 = vmatprep.subr.bf16.mxu0 %v2128_v56  ;;  %v2167_v55 = vld [vmem:[#allocation2 + $0x2a8] sm:$0xff]   ;;  %v2168_v56 = vld [vmem:[#allocation2 + $0x270] sm:$0xff]  }
  0x43   :  { %1945 = vmatprep.subr.bf16.mxu1 %v2129_v57  ;;  %v2169_v57 = vld [vmem:[#allocation2 + $0x2f0] sm:$0xff]  }
  0x45   :  { %1918 = vmatpush3.bf16.msra.mxu0 %v2130_v58  ;;  %v2170_v58 = vld [vmem:[#allocation2 + $0x230] sm:$0xff]  }
  0x46   :  { %1946 = vmatpush3.bf16.msra.mxu1 %v2131_v59  ;;  %1919 = vmatprep.subr.bf16.mxu0 %v2132_v60  ;;  %v2171_v59 = vld [vmem:[#allocation2 + $0x2b0] sm:$0xff]   ;;  %v2172_v60 = vld [vmem:[#allocation2 + $0x278] sm:$0xff]  }
  0x47   :  { %1947 = vmatprep.subr.bf16.mxu1 %v2133_v61  ;;  %v2173_v61 = vld [vmem:[#allocation2 + $0x2f8] sm:$0xff]  }
  0x49   :  { %1920 = vmatpush3.bf16.msra.mxu0 %v2134_v1  ;;  %v41_v1 = vld [vmem:[%s2372_s0 + $0x60] sm:$0xff] }
  0x4a   :  { %1948 = vmatpush3.bf16.msra.mxu1 %v2135_v3  ;;  %1921 = vmatprep.subr.bf16.mxu0 %v2136_v8  ;;  %v1682_v2 = vcombine.low %v33_v0, %v41_v1  ;;  %v1683_v3 = vcombine.high %v33_v0, %v41_v1  ;;  %v2176_v8 = vld [vmem:[#allocation2 + $0x340] sm:$0xff]  }
  0x4b   :  { %1949 = vmatprep.subr.bf16.mxu1 %v2137_v9  ;;  %v2177_v9 = vld [vmem:[#allocation2 + $0x3c0] sm:$0xff]  }
  0x4d   :  { %1922 = vmatpush3.bf16.msra.mxu0 %v2138_v10  ;;  %v2178_v10 = vld [vmem:[#allocation2 + $0x300] sm:$0xff]  }
  0x4e   :  { %1950 = vmatpush3.bf16.msra.mxu1 %v2139_v11  ;;  %1923 = vmatprep.subr.bf16.mxu0 %v2140_v12  ;;  %v2179_v11 = vld [vmem:[#allocation2 + $0x380] sm:$0xff]   ;;  %v2180_v12 = vld [vmem:[#allocation2 + $0x348] sm:$0xff]  }
  0x4f   :  { %1951 = vmatprep.subr.bf16.mxu1 %v2141_v13  ;;  %v2181_v13 = vld [vmem:[#allocation2 + $0x3c8] sm:$0xff]  }
  0x51   :  { %1924 = vmatpush3.bf16.msra.mxu0 %v2142_v14  ;;  %v2182_v14 = vld [vmem:[#allocation2 + $0x308] sm:$0xff]  }
  0x52   :  { %1952 = vmatpush3.bf16.msra.mxu1 %v2143_v15  ;;  %1965 = vmatprep.subr.bf16.mxu0 %v2144_v24  ;;  %v2183_v15 = vld [vmem:[#allocation2 + $0x388] sm:$0xff]  }
  0x53   :  { %1993 = vmatprep.subr.bf16.mxu1 %v2145_v25  ;;  %v2186_v25 = vld [vmem:[#allocation2 + $0x310] sm:$0xff]  }
  0x54   :  { %1383 = vmatmul.mubr.bf16.vlgmr.msra.gmra.mrb[8].mxu0 %v1678_v20  ;;  %v2184_v20 = vld [vmem:[#allocation2 + $0x350] sm:$0xff]  }
  0x55   :  { %1432 = vmatmul.mubr.bf16.vlgmr.msra.gmra.mrb[8].mxu1 %v1680_v22  ;;  %1966 = vmatpush3.bf16.msra.mxu0 %v2146_v26  ;;  %v50_v22 = vld [vmem:[%s2372_s0 + $0xa8] sm:$0xff] }
  0x56   :  { %1994 = vmatpush3.bf16.msra.mxu1 %v2147_v27  ;;  %1967 = vmatprep.subr.bf16.mxu0 %v2148_v28  ;;  %v1701_v24 = vcombine.high %v50_v22, %v58_v23  ;;  %v1700_v26 = vcombine.low %v50_v22, %v58_v23  ;;  %v2187_v27 = vld [vmem:[#allocation2 + $0x390] sm:$0xff]   ;;  %v2188_v28 = vld [vmem:[#allocation2 + $0x358] sm:$0xff]  }
  0x57   :  { %1995 = vmatprep.subr.bf16.mxu1 %v2149_v29  ;;  %1390 = vmatprep.mubr.bf16.mxu0 %v1695_v34  ;;  %v2189_v29 = vld [vmem:[#allocation2 + $0x3d8] sm:$0xff]   ;;  %v2194_v34 = vld [vmem:[#allocation2 + $0x320] sm:$0xff]  }
  0x58   :  { %1439 = vmatprep.mubr.bf16.mxu1 %v1697_v40  ;;  %v2200_v40 = vld [vmem:[#allocation2 + $0x370] sm:$0xff]  }
  0x59   :  { %1968 = vmatpush3.bf16.msra.mxu0 %v2150_v30  ;;  %v2190_v30 = vld [vmem:[#allocation2 + $0x318] sm:$0xff]  }
  0x5a   :  { %1996 = vmatpush3.bf16.msra.mxu1 %v2151_v31  ;;  %1969 = vmatprep.subr.bf16.mxu0 %v2152_v36  ;;  %v2191_v31 = vld [vmem:[#allocation2 + $0x398] sm:$0xff]   ;;  %v2196_v36 = vld [vmem:[#allocation2 + $0x368] sm:$0xff]  }
  0x5b   :  { %1997 = vmatprep.subr.bf16.mxu1 %v2153_v37  ;;  %v2197_v37 = vld [vmem:[#allocation2 + $0x3e8] sm:$0xff]  }
  0x5c   :  { %1391 = vmatmul.mubr.bf16.gmra.mrb[12].mxu0 %v1694_v35  ;;  %v2195_v35 = vld [vmem:[#allocation2 + $0x3a0] sm:$0xff]  }
  0x5d   :  { %1970 = vmatpush3.bf16.msra.mxu0 %v2154_v41  ;;  %1440 = vmatmul.mubr.bf16.gmra.mrb[12].mxu1 %v1696_v42  ;;  %v2201_v41 = vld [vmem:[#allocation2 + $0x3f0] sm:$0xff]  }
  0x5e   :  { %1998 = vmatpush3.bf16.msra.mxu1 %v2155_v43  ;;  %1971 = vmatprep.subr.bf16.mxu0 %v2156_v44  ;;  %v2202_v42 = vld [vmem:[#allocation2 + $0x330] sm:$0xff]   ;;  %v2204_v44 = vld [vmem:[#allocation2 + $0x378] sm:$0xff]  }
  0x5f   :  { %1999 = vmatprep.subr.bf16.mxu1 %v2157_v45  ;;  %1480 = vmatprep.mubr.bf16.mxu0 %v1683_v3  ;;  %v2203_v43 = vld [vmem:[#allocation2 + $0x3b0] sm:$0xff]   ;;  %v2205_v45 = vld [vmem:[#allocation2 + $0x3f8] sm:$0xff]  }
  0x60   :  { %1529 = vmatprep.mubr.bf16.mxu1 %v1685_v7 }
  0x61   :  { %1972 = vmatpush3.bf16.msra.mxu0 %v2158_v46  ;;  %v2206_v46 = vld [vmem:[#allocation2 + $0x338] sm:$0xff]  }
  0x62   :  { %2000 = vmatpush3.bf16.msra.mxu1 %v2159_v47  ;;  %1973 = vmatprep.subr.bf16.mxu0 %v2160_v48  ;;  %v2207_v47 = vld [vmem:[#allocation2 + $0x3b8] sm:$0xff]   ;;  %v35_v48 = vld [vmem:[%s2372_s0 + $0x30] sm:$0xff] }
  0x63   :  { %2001 = vmatprep.subr.bf16.mxu1 %v2161_v49  ;;  %v43_v49 = vld [vmem:[%s2372_s0 + $0x70] sm:$0xff] }
  0x65   :  { %1974 = vmatpush3.bf16.msra.mxu0 %v2162_v50  ;;  %v36_v50 = vld [vmem:[%s2372_s0 + $0x38] sm:$0xff] }
  0x66   :  { %2002 = vmatpush3.bf16.msra.mxu1 %v2163_v51  ;;  %1975 = vmatprep.subr.bf16.mxu0 %v2164_v52  ;;  %v1686_v51 = vcombine.low %v35_v48, %v43_v49  ;;  %v1687_v52 = vcombine.high %v35_v48, %v43_v49 }
  0x67   :  { %2003 = vmatprep.subr.bf16.mxu1 %v2165_v53  ;;  %v44_v53 = vld [vmem:[%s2372_s0 + $0x78] sm:$0xff] }
  0x69   :  { %1976 = vmatpush3.bf16.msra.mxu0 %v2166_v54  ;;  %v51_v54 = vld [vmem:[%s2372_s0 + $0xb0] sm:$0xff] }
  0x6a   :  { %2004 = vmatpush3.bf16.msra.mxu1 %v2167_v55  ;;  %1977 = vmatprep.subr.bf16.mxu0 %v2168_v56  ;;  %v59_v55 = vld [vmem:[%s2372_s0 + $0xf0] sm:$0xff]  ;;  %v1688_v56 = vcombine.low %v36_v50, %v44_v53 }
  0x6b   :  { %2005 = vmatprep.subr.bf16.mxu1 %v2169_v57  ;;  %v1689_v57 = vcombine.high %v36_v50, %v44_v53 }
  0x6d   :  { %1978 = vmatpush3.bf16.msra.mxu0 %v2170_v58  ;;  %v1703_v58 = vcombine.high %v51_v54, %v59_v55 }
  0x6e   :  { %2006 = vmatpush3.bf16.msra.mxu1 %v2171_v59  ;;  %1979 = vmatprep.subr.bf16.mxu0 %v2172_v60  ;;  %v52_v59 = vld [vmem:[%s2372_s0 + $0xb8] sm:$0xff] }
  0x6f   :  { %2007 = vmatprep.subr.bf16.mxu1 %v2173_v61  ;;  %v60_v60 = vld [vmem:[%s2372_s0 + $0xf8] sm:$0xff] }
  0x70   :  { %v1705_v61 = vcombine.high %v52_v59, %v60_v60 }
  0x71   :  { %1980 = vmatpush3.bf16.msra.mxu0 %v2174_v62  ;;  %v1702_v62 = vcombine.low %v51_v54, %v59_v55 }
  0x72   :  { %2008 = vmatpush3.bf16.msra.mxu1 %v2175_v63  ;;  %2021 = vmatprep.subr.bf16.mxu0 %v2176_v8  ;;  %v1704_v63 = vcombine.low %v52_v59, %v60_v60 }
  0x73   :  { %2049 = vmatprep.subr.bf16.mxu1 %v2177_v9 }
  0x74   :  { %1481 = vmatmul.mubr.bf16.vlgmr.msra.gmra.mrb[16].mxu0 %v1682_v2  ;;  %v1673_v2 = vld [vmem:[%s2374_s2] ss:$0 sm:$0xff] }
  0x75   :  { %1530 = vmatmul.mubr.bf16.vlgmr.msra.gmra.mrb[16].mxu1 %v1684_v6  ;;  %2022 = vmatpush3.bf16.msra.mxu0 %v2178_v10 }
  0x76   :  { %2050 = vmatpush3.bf16.msra.mxu1 %v2179_v11  ;;  %2023 = vmatprep.subr.bf16.mxu0 %v2180_v12 }
  0x77   :  { %2051 = vmatprep.subr.bf16.mxu1 %v2181_v13  ;;  %1488 = vmatprep.mubr.bf16.mxu0 %v1699_v18 }
  0x78   :  { %1537 = vmatprep.mubr.bf16.mxu1 %v1701_v24 }
  0x79   :  { %2024 = vmatpush3.bf16.msra.mxu0 %v2182_v14 }
  0x7a   :  { %2052 = vmatpush3.bf16.msra.mxu1 %v2183_v15  ;;  %2025 = vmatprep.subr.bf16.mxu0 %v2184_v20 }
  0x7b   :  { %2053 = vmatprep.subr.bf16.mxu1 %v2185_v21 }
  0x7c   :  { %1489 = vmatmul.mubr.bf16.gmra.mrb[20].mxu0 %v1698_v19 }
  0x7d   :  { %2026 = vmatpush3.bf16.msra.mxu0 %v2186_v25  ;;  %1538 = vmatmul.mubr.bf16.gmra.mrb[20].mxu1 %v1700_v26 }
  0x7e   :  { %2054 = vmatpush3.bf16.msra.mxu1 %v2187_v27  ;;  %2027 = vmatprep.subr.bf16.mxu0 %v2188_v28 }
  0x7f   :  { %2055 = vmatprep.subr.bf16.mxu1 %v2189_v29  ;;  %1578 = vmatprep.mubr.bf16.mxu0 %v1687_v52 }
  0x80   :  { %1627 = vmatprep.mubr.bf16.mxu1 %v1689_v57 }
  0x81   :  { %2028 = vmatpush3.bf16.msra.mxu0 %v2190_v30 }
  0x82   :  { %2056 = vmatpush3.bf16.msra.mxu1 %v2191_v31  ;;  %2029 = vmatprep.subr.bf16.mxu0 %v2192_v32 }
  0x83   :  { %2057 = vmatprep.subr.bf16.mxu1 %v2193_v33 }
  0x85   :  { %2030 = vmatpush3.bf16.msra.mxu0 %v2194_v34 }
  0x86   :  { %2058 = vmatpush3.bf16.msra.mxu1 %v2195_v35  ;;  %2031 = vmatprep.subr.bf16.mxu0 %v2196_v36 }
  0x87   :  { %2059 = vmatprep.subr.bf16.mxu1 %v2197_v37 }
  0x89   :  { %2032 = vmatpush3.bf16.msra.mxu0 %v2198_v38 }
  0x8a   :  { %2060 = vmatpush3.bf16.msra.mxu1 %v2199_v39  ;;  %2033 = vmatprep.subr.bf16.mxu0 %v2200_v40 }
  0x8b   :  { %2061 = vmatprep.subr.bf16.mxu1 %v2201_v41 }
  0x8d   :  { %2034 = vmatpush3.bf16.msra.mxu0 %v2202_v42 }
  0x8e   :  { %2062 = vmatpush3.bf16.msra.mxu1 %v2203_v43  ;;  %2035 = vmatprep.subr.bf16.mxu0 %v2204_v44 }
  0x8f   :  { %2063 = vmatprep.subr.bf16.mxu1 %v2205_v45 }
  0x91   :  { %2036 = vmatpush3.bf16.msra.mxu0 %v2206_v46 }
  0x92   :  { %2064 = vmatpush3.bf16.msra.mxu1 %v2207_v47 }
  0x94   :  { %1579 = vmatmul.mubr.bf16.vlgmr.msra.gmra.mrb[24].mxu0 %v1686_v51 }
  0x95   :  { %1628 = vmatmul.mubr.bf16.vlgmr.msra.gmra.mrb[24].mxu1 %v1688_v56  ;;  %1586 = vmatprep.mubr.bf16.mxu0 %v1703_v58 }
  0x96   :  { %1635 = vmatprep.mubr.bf16.mxu1 %v1705_v61 }
  0x9c   :  { %1587 = vmatmul.mubr.bf16.gmra.mrb[28].mxu0 %v1702_v62 }
  0x9d   :  { %1636 = vmatmul.mubr.bf16.gmra.mrb[28].mxu1 %v1704_v63 }
 0x107   :  { %v1869_v0 = vpop.f32.mrb[0].mxu0 }
 0x108   :  { %v1897_v1 = vpop.f32.mrb[0].mxu1  ;;  %v1870_v3 = vpop.f32.mrb[1].mxu0 }
 0x109   :  { %v1871_v4 = vadd.f32 %v1870_v3, %v1869_v0  ;;  %v1898_v5 = vpop.f32.mrb[1].mxu1  ;;  %v1872_v6 = vpop.f32.mrb[2].mxu0 }
 0x10a   :  { %v1899_v7 = vadd.f32 %v1898_v5, %v1897_v1  ;;  %v1900_v8 = vpop.f32.mrb[2].mxu1  ;;  %v1873_v9 = vpop.f32.mrb[3].mxu0 }
 0x10b   :  { %v1287_v10 = vadd.f32 %v1871_v4, %v1673_v2  ;;  %v1874_v11 = vadd.f32 %v1873_v9, %v1872_v6  ;;  %v1901_v12 = vpop.f32.mrb[3].mxu1 }
 0x10c   :  { %v1902_v13 = vadd.f32 %v1901_v12, %v1900_v8 }
 0x10d   :  { %v1336_v14 = vadd.f32 %v1899_v7, %v1287_v10  ;;  %v1290_v15 = vadd.f32 %v1874_v11, %v1673_v2 }
 0x10f   :  { %v1339_v16 = vadd.f32 %v1902_v13, %v1290_v15  ;;  %v1875_v17 = vpop.f32.mrb[4].mxu0 }
 0x110   :  { %v1876_v18 = vpop.f32.mrb[5].mxu0  ;;  %v1903_v21 = vpop.f32.mrb[4].mxu1 }
 0x111   :  { %v1877_v19 = vadd.f32 %v1876_v18, %v1875_v17  ;;  %v1878_v20 = vpop.f32.mrb[6].mxu0  ;;  %v1904_v25 = vpop.f32.mrb[5].mxu1 }
 0x112   :  { %v1879_v22 = vpop.f32.mrb[7].mxu0  ;;  %v1905_v26 = vadd.f32 %v1904_v25, %v1903_v21  ;;  %v1906_v27 = vpop.f32.mrb[6].mxu1 }
 0x113   :  { %v1295_v23 = vadd.f32 %v1877_v19, %v1673_v2  ;;  %v1880_v24 = vadd.f32 %v1879_v22, %v1878_v20  ;;  %v1907_v29 = vpop.f32.mrb[7].mxu1 }
 0x114   :  { %v1908_v31 = vadd.f32 %v1907_v29, %v1906_v27 }
 0x115   :  { %v1298_v28 = vadd.f32 %v1880_v24, %v1673_v2  ;;  %v1344_v30 = vadd.f32 %v1905_v26, %v1295_v23 }
 0x117   :  { %v1347_v32 = vadd.f32 %v1908_v31, %v1298_v28 }
 0x127   :  { %v1925_v33 = vpop.f32.mrb[8].mxu0 }
 0x128   :  { %v1953_v34 = vpop.f32.mrb[8].mxu1  ;;  %v1926_v35 = vpop.f32.mrb[9].mxu0 }
 0x129   :  { %v1954_v36 = vpop.f32.mrb[9].mxu1  ;;  %v1927_v37 = vadd.f32 %v1926_v35, %v1925_v33  ;;  %v1928_v39 = vpop.f32.mrb[10].mxu0 }
 0x12a   :  { %v1955_v38 = vadd.f32 %v1954_v36, %v1953_v34  ;;  %v1956_v40 = vpop.f32.mrb[10].mxu1  ;;  %v1929_v41 = vpop.f32.mrb[11].mxu0 }
 0x12b   :  { %v1957_v42 = vpop.f32.mrb[11].mxu1  ;;  %v1385_v43 = vadd.f32 %v1927_v37, %v1336_v14  ;;  %v1930_v44 = vadd.f32 %v1929_v41, %v1928_v39 }
 0x12c   :  { %v1958_v45 = vadd.f32 %v1957_v42, %v1956_v40 }
 0x12d   :  { %v1434_v46 = vadd.f32 %v1955_v38, %v1385_v43  ;;  %v1388_v47 = vadd.f32 %v1930_v44, %v1339_v16 }
 0x12f   :  { %v1437_v48 = vadd.f32 %v1958_v45, %v1388_v47  ;;  %v1931_v49 = vpop.f32.mrb[12].mxu0 }
 0x130   :  { %v1932_v50 = vpop.f32.mrb[13].mxu0  ;;  %v1959_v55 = vpop.f32.mrb[12].mxu1 }
 0x131   :  { %v1933_v51 = vadd.f32 %v1932_v50, %v1931_v49  ;;  %v1934_v52 = vpop.f32.mrb[14].mxu0  ;;  %v1960_v57 = vpop.f32.mrb[13].mxu1 }
 0x132   :  { %v1935_v53 = vpop.f32.mrb[15].mxu0  ;;  %v1961_v59 = vadd.f32 %v1960_v57, %v1959_v55  ;;  %v1962_v60 = vpop.f32.mrb[14].mxu1 }
 0x133   :  { %v1393_v54 = vadd.f32 %v1933_v51, %v1344_v30  ;;  %v1936_v56 = vadd.f32 %v1935_v53, %v1934_v52  ;;  %v1963_v61 = vpop.f32.mrb[15].mxu1 }
 0x134   :  { %v1964_v63 = vadd.f32 %v1963_v61, %v1962_v60 }
 0x135   :  { %v1396_v58 = vadd.f32 %v1936_v56, %v1347_v32  ;;  %v1442_v62 = vadd.f32 %v1961_v59, %v1393_v54 }
 0x137   :  { %v1445_v0 = vadd.f32 %v1964_v63, %v1396_v58 }
 0x147   :  { %v1981_v1 = vpop.f32.mrb[16].mxu0 }
 0x148   :  { %v2009_v2 = vpop.f32.mrb[16].mxu1  ;;  %v1982_v3 = vpop.f32.mrb[17].mxu0 }
 0x149   :  { %v1983_v4 = vadd.f32 %v1982_v3, %v1981_v1  ;;  %v2010_v5 = vpop.f32.mrb[17].mxu1  ;;  %v1984_v6 = vpop.f32.mrb[18].mxu0 }
 0x14a   :  { %v2011_v7 = vadd.f32 %v2010_v5, %v2009_v2  ;;  %v2012_v8 = vpop.f32.mrb[18].mxu1  ;;  %v1985_v9 = vpop.f32.mrb[19].mxu0 }
 0x14b   :  { %v1483_v10 = vadd.f32 %v1983_v4, %v1434_v46  ;;  %v1986_v11 = vadd.f32 %v1985_v9, %v1984_v6  ;;  %v2013_v12 = vpop.f32.mrb[19].mxu1 }
 0x14c   :  { %v2014_v13 = vadd.f32 %v2013_v12, %v2012_v8 }
 0x14d   :  { %v1532_v14 = vadd.f32 %v2011_v7, %v1483_v10  ;;  %v1486_v15 = vadd.f32 %v1986_v11, %v1437_v48 }
 0x14f   :  { %v1535_v16 = vadd.f32 %v2014_v13, %v1486_v15  ;;  %v1987_v17 = vpop.f32.mrb[20].mxu0 }
 0x150   :  { %v1988_v18 = vpop.f32.mrb[21].mxu0  ;;  %v2015_v21 = vpop.f32.mrb[20].mxu1 }
 0x151   :  { %v1989_v19 = vadd.f32 %v1988_v18, %v1987_v17  ;;  %v1990_v20 = vpop.f32.mrb[22].mxu0  ;;  %v2016_v25 = vpop.f32.mrb[21].mxu1 }
 0x152   :  { %v1991_v22 = vpop.f32.mrb[23].mxu0  ;;  %v2017_v26 = vadd.f32 %v2016_v25, %v2015_v21  ;;  %v2018_v27 = vpop.f32.mrb[22].mxu1 }
 0x153   :  { %v1491_v23 = vadd.f32 %v1989_v19, %v1442_v62  ;;  %v1992_v24 = vadd.f32 %v1991_v22, %v1990_v20  ;;  %v2019_v29 = vpop.f32.mrb[23].mxu1 }
 0x154   :  { %v2020_v31 = vadd.f32 %v2019_v29, %v2018_v27 }
 0x155   :  { %v1494_v28 = vadd.f32 %v1992_v24, %v1445_v0  ;;  %v1540_v30 = vadd.f32 %v2017_v26, %v1491_v23 }
 0x157   :  { %v1543_v32 = vadd.f32 %v2020_v31, %v1494_v28 }
 0x167   :  { %v2037_v33 = vpop.f32.mrb[24].mxu0 }
 0x168   :  { %v2065_v34 = vpop.f32.mrb[24].mxu1  ;;  %v2038_v35 = vpop.f32.mrb[25].mxu0 }
 0x169   :  { %v2039_v36 = vadd.f32 %v2038_v35, %v2037_v33  ;;  %v2066_v37 = vpop.f32.mrb[25].mxu1  ;;  %v2040_v38 = vpop.f32.mrb[26].mxu0 }
 0x16a   :  { %v2067_v39 = vadd.f32 %v2066_v37, %v2065_v34  ;;  %v2068_v40 = vpop.f32.mrb[26].mxu1  ;;  %v2041_v41 = vpop.f32.mrb[27].mxu0 }
 0x16b   :  { %v1581_v42 = vadd.f32 %v2039_v36, %v1532_v14  ;;  %v2042_v43 = vadd.f32 %v2041_v41, %v2040_v38  ;;  %v2069_v44 = vpop.f32.mrb[27].mxu1 }
 0x16c   :  { %v2070_v45 = vadd.f32 %v2069_v44, %v2068_v40 }
 0x16d   :  { %v1630_v46 = vadd.f32 %v2067_v39, %v1581_v42  ;;  %v1584_v47 = vadd.f32 %v2042_v43, %v1535_v16 }
 0x16f   :  { %v1633_v48 = vadd.f32 %v2070_v45, %v1584_v47  ;;  %v2043_v49 = vpop.f32.mrb[28].mxu0  ;;  %v1644_v52 = vmax.f32 %v1630_v46, 0.0 }
 0x170   :  { %v2071_v50 = vpop.f32.mrb[28].mxu1  ;;  %v2044_v51 = vpop.f32.mrb[29].mxu0 }
 0x171   :  { %v1645_v53 = vmax.f32 %v1633_v48, 0.0  ;;  %v2045_v54 = vadd.f32 %v2044_v51, %v2043_v49  ;;  %v2072_v55 = vpop.f32.mrb[29].mxu1  ;;  %v2046_v56 = vpop.f32.mrb[30].mxu0 }
 0x172   :  { %v2073_v57 = vadd.f32 %v2072_v55, %v2071_v50  ;;  %v2074_v58 = vpop.f32.mrb[30].mxu1  ;;  %v2047_v59 = vpop.f32.mrb[31].mxu0 }
 0x173   :  { %v1845_v60 = vpack.c.bf16 %v1645_v53, %v1644_v52  ;;  %v1589_v61 = vadd.f32 %v2045_v54, %v1540_v30  ;;  %v2048_v62 = vadd.f32 %v2047_v59, %v2046_v56  ;;  %v2075_v63 = vpop.f32.mrb[31].mxu1 }
 0x174   :  { %v2076_v0 = vadd.f32 %v2075_v63, %v2074_v58 }
 0x175   :  { %1846 = vst [vmem:[%s2375_s3] sm:$0xff] %v1845_v60   ;;  %v1638_v1 = vadd.f32 %v2073_v57, %v1589_v61  ;;  %v1592_v2 = vadd.f32 %v2048_v62, %v1543_v32 }
 0x177   :  { %v1641_v3 = vadd.f32 %v2076_v0, %v1592_v2  ;;  %v1646_v4 = vmax.f32 %v1638_v1, 0.0 }
 0x179   :  { %v1647_v5 = vmax.f32 %v1641_v3, 0.0 }
 0x17b   :  { %v1850_v6 = vpack.c.bf16 %v1647_v5, %v1646_v4 }
 0x17d   :  { %1852 = vst [vmem:[%s2375_s3 + $0x8] sm:$0xff] %v1850_v6  }
 0x17e   :  { %1672 = vsyncpa [#allocation3], 1 }

// kernel: encoder_forward.7
= control target key start
LH: loop header
LB: loop body
LE: loop exit
PB: predicated region body
PF: predicated region fallthrough
CT: control target
= control target key end

     0   :  { %s2336_s1 = inlined_call_operand.vmem [shape: bf16[2048,128], index: 1, kind: input, shape index: {}]   ;;  %s2337_s0 = inlined_call_operand.vmem [shape: bf16[8,2048], index: 0, kind: input, shape index: {}]   ;;  %s2338_s2 = inlined_call_operand.vmem [shape: f32[1,128], index: 2, kind: input, shape index: {}]   ;;  %s2339_s3 = inlined_call_operand.vmem [shape: bf16[8,128], index: 3, kind: output, shape index: {}]  }
   0x1   :  { %v1758_v0 = vld [vmem:[%s2336_s1 + $0x40] sm:$0xff]   ;;  %v1762_v4 = vld [vmem:[%s2336_s1 + $0x48] sm:$0xff]   ;;  %v1766_v8 = vld [vmem:[%s2336_s1 + $0x50] sm:$0xff]  }
   0x2   :  { %v1759_v1 = vld [vmem:[%s2336_s1 + $0xc0] sm:$0xff]   ;;  %1582 = vmatprep.subr.bf16.mxu0 %v1758_v0  ;;  %v1763_v5 = vld [vmem:[%s2336_s1 + $0xc8] sm:$0xff]   ;;  %v1767_v9 = vld [vmem:[%s2336_s1 + $0xd0] sm:$0xff]  }
   0x3   :  { %v1760_v2 = vld [vmem:[%s2336_s1] sm:$0xff]   ;;  %1604 = vmatprep.subr.bf16.mxu1 %v1759_v1  ;;  %v1764_v6 = vld [vmem:[%s2336_s1 + $0x8] sm:$0xff]   ;;  %v1768_v10 = vld [vmem:[%s2336_s1 + $0x10] sm:$0xff]  }
   0x4   :  { %v1761_v3 = vld [vmem:[%s2336_s1 + $0x80] sm:$0xff]   ;;  %1583 = vmatpush3.bf16.msra.mxu0 %v1760_v2  ;;  %v1765_v7 = vld [vmem:[%s2336_s1 + $0x88] sm:$0xff]   ;;  %v1769_v11 = vld [vmem:[%s2336_s1 + $0x90] sm:$0xff]  }
   0x5   :  { %1605 = vmatpush3.bf16.msra.mxu1 %v1761_v3  ;;  %1584 = vmatprep.subr.bf16.mxu0 %v1762_v4  ;;  %v1770_v12 = vld [vmem:[%s2336_s1 + $0x58] sm:$0xff]   ;;  %v1774_v16 = vld [vmem:[%s2336_s1 + $0x60] sm:$0xff]   ;;  %v1778_v20 = vld [vmem:[%s2336_s1 + $0x68] sm:$0xff]  }
   0x6   :  { %1606 = vmatprep.subr.bf16.mxu1 %v1763_v5  ;;  %v1771_v13 = vld [vmem:[%s2336_s1 + $0xd8] sm:$0xff]   ;;  %v1775_v17 = vld [vmem:[%s2336_s1 + $0xe0] sm:$0xff]   ;;  %v1779_v21 = vld [vmem:[%s2336_s1 + $0xe8] sm:$0xff]  }
   0x7   :  { %v1772_v14 = vld [vmem:[%s2336_s1 + $0x18] sm:$0xff]   ;;  %v1776_v18 = vld [vmem:[%s2336_s1 + $0x20] sm:$0xff]   ;;  %v1780_v22 = vld [vmem:[%s2336_s1 + $0x28] sm:$0xff]  }
   0x8   :  { %1585 = vmatpush3.bf16.msra.mxu0 %v1764_v6  ;;  %v1773_v15 = vld [vmem:[%s2336_s1 + $0x98] sm:$0xff]   ;;  %v1777_v19 = vld [vmem:[%s2336_s1 + $0xa0] sm:$0xff]   ;;  %v1781_v23 = vld [vmem:[%s2336_s1 + $0xa8] sm:$0xff]  }
   0x9   :  { %1607 = vmatpush3.bf16.msra.mxu1 %v1765_v7  ;;  %1586 = vmatprep.subr.bf16.mxu0 %v1766_v8  ;;  %v1782_v24 = vld [vmem:[%s2336_s1 + $0x70] sm:$0xff]   ;;  %v1786_v28 = vld [vmem:[%s2336_s1 + $0x78] sm:$0xff]   ;;  %v15_v32 = vld [vmem:[%s2337_s0] sm:$0xff] }
   0xa   :  { %1608 = vmatprep.subr.bf16.mxu1 %v1767_v9  ;;  %v1783_v25 = vld [vmem:[%s2336_s1 + $0xf0] sm:$0xff]   ;;  %v1787_v29 = vld [vmem:[%s2336_s1 + $0xf8] sm:$0xff]   ;;  %v16_v33 = vld [vmem:[%s2337_s0 + $0x8] sm:$0xff]  ;;  %v1438_v34 = vcombine.low %v15_v32, %v15_v32  ;;  %v1439_v35 = vcombine.high %v15_v32, %v15_v32 }
   0xb   :  { %v1784_v26 = vld [vmem:[%s2336_s1 + $0x30] sm:$0xff]   ;;  %v1788_v30 = vld [vmem:[%s2336_s1 + $0x38] sm:$0xff]   ;;  %v1440_v36 = vcombine.low %v16_v33, %v16_v33  ;;  %v1441_v37 = vcombine.high %v16_v33, %v16_v33  ;;  %v1794_v38 = vld [vmem:[%s2336_s1 + $0x140] sm:$0xff]  }
   0xc   :  { %1587 = vmatpush3.bf16.msra.mxu0 %v1768_v10  ;;  %v1785_v27 = vld [vmem:[%s2336_s1 + $0xb0] sm:$0xff]   ;;  %v1789_v31 = vld [vmem:[%s2336_s1 + $0xb8] sm:$0xff]   ;;  %v1795_v39 = vld [vmem:[%s2336_s1 + $0x1c0] sm:$0xff]   ;;  %1142 = vmatprep.mubr.bf16.mxu0 %v1439_v35 }
   0xd   :  { %1609 = vmatpush3.bf16.msra.mxu1 %v1769_v11  ;;  %1588 = vmatprep.subr.bf16.mxu0 %v1770_v12  ;;  %v1796_v40 = vld [vmem:[%s2336_s1 + $0x100] sm:$0xff]   ;;  %v1798_v42 = vld [vmem:[%s2336_s1 + $0x148] sm:$0xff]   ;;  %v1802_v46 = vld [vmem:[%s2336_s1 + $0x150] sm:$0xff]  }
   0xe   :  { %1610 = vmatprep.subr.bf16.mxu1 %v1771_v13  ;;  %1182 = vmatprep.mubr.bf16.mxu1 %v1441_v37  ;;  %v1797_v41 = vld [vmem:[%s2336_s1 + $0x180] sm:$0xff]   ;;  %v1799_v43 = vld [vmem:[%s2336_s1 + $0x1c8] sm:$0xff]   ;;  %v1803_v47 = vld [vmem:[%s2336_s1 + $0x1d0] sm:$0xff]  }
   0xf   :  { %v1800_v44 = vld [vmem:[%s2336_s1 + $0x108] sm:$0xff]   ;;  %v1804_v48 = vld [vmem:[%s2336_s1 + $0x110] sm:$0xff]   ;;  %v1806_v50 = vld [vmem:[%s2336_s1 + $0x158] sm:$0xff]  }
  0x10   :  { %1589 = vmatpush3.bf16.msra.mxu0 %v1772_v14  ;;  %v1801_v45 = vld [vmem:[%s2336_s1 + $0x188] sm:$0xff]   ;;  %v1805_v49 = vld [vmem:[%s2336_s1 + $0x190] sm:$0xff]   ;;  %v1807_v51 = vld [vmem:[%s2336_s1 + $0x1d8] sm:$0xff]  }
  0x11   :  { %1611 = vmatpush3.bf16.msra.mxu1 %v1773_v15  ;;  %1590 = vmatprep.subr.bf16.mxu0 %v1774_v16  ;;  %v1808_v52 = vld [vmem:[%s2336_s1 + $0x118] sm:$0xff]   ;;  %v1810_v54 = vld [vmem:[%s2336_s1 + $0x160] sm:$0xff]   ;;  %v1814_v58 = vld [vmem:[%s2336_s1 + $0x168] sm:$0xff]  }
  0x12   :  { %1612 = vmatprep.subr.bf16.mxu1 %v1775_v17  ;;  %v1809_v53 = vld [vmem:[%s2336_s1 + $0x198] sm:$0xff]   ;;  %v1811_v55 = vld [vmem:[%s2336_s1 + $0x1e0] sm:$0xff]   ;;  %v1815_v59 = vld [vmem:[%s2336_s1 + $0x1e8] sm:$0xff]  }
  0x13   :  { %v1812_v56 = vld [vmem:[%s2336_s1 + $0x120] sm:$0xff]   ;;  %v1816_v60 = vld [vmem:[%s2336_s1 + $0x128] sm:$0xff]   ;;  %v1818_v62 = vld [vmem:[%s2336_s1 + $0x170] sm:$0xff]  }
  0x14   :  { %1591 = vmatpush3.bf16.msra.mxu0 %v1776_v18  ;;  %v1813_v57 = vld [vmem:[%s2336_s1 + $0x1a0] sm:$0xff]   ;;  %v1817_v61 = vld [vmem:[%s2336_s1 + $0x1a8] sm:$0xff]   ;;  %v1819_v63 = vld [vmem:[%s2336_s1 + $0x1f0] sm:$0xff]  }
  0x15   :  { %1613 = vmatpush3.bf16.msra.mxu1 %v1777_v19  ;;  %1592 = vmatprep.subr.bf16.mxu0 %v1778_v20  ;;  %v1820_v0 = vld [vmem:[%s2336_s1 + $0x130] sm:$0xff]   ;;  %v1822_v2 = vld [vmem:[%s2336_s1 + $0x178] sm:$0xff]   ;;  %v1830_v12 = vld [vmem:[%s2336_s1 + $0x240] sm:$0xff]  }
  0x16   :  { %1614 = vmatprep.subr.bf16.mxu1 %v1779_v21  ;;  %v1821_v1 = vld [vmem:[%s2336_s1 + $0x1b0] sm:$0xff]   ;;  %v1823_v3 = vld [vmem:[%s2336_s1 + $0x1f8] sm:$0xff]   ;;  %v1831_v13 = vld [vmem:[%s2336_s1 + $0x2c0] sm:$0xff]  }
  0x17   :  { %v1824_v4 = vld [vmem:[%s2336_s1 + $0x138] sm:$0xff]   ;;  %v17_v6 = vld [vmem:[%s2337_s0 + $0x10] sm:$0xff]  ;;  %v1832_v14 = vld [vmem:[%s2336_s1 + $0x200] sm:$0xff]  }
  0x18   :  { %1593 = vmatpush3.bf16.msra.mxu0 %v1780_v22  ;;  %v1825_v5 = vld [vmem:[%s2336_s1 + $0x1b8] sm:$0xff]   ;;  %v1442_v7 = vcombine.low %v17_v6, %v17_v6  ;;  %v1443_v8 = vcombine.high %v17_v6, %v17_v6  ;;  %v1833_v15 = vld [vmem:[%s2336_s1 + $0x280] sm:$0xff]   ;;  %v1834_v16 = vld [vmem:[%s2336_s1 + $0x248] sm:$0xff]  }
  0x19   :  { %1615 = vmatpush3.bf16.msra.mxu1 %v1781_v23  ;;  %1594 = vmatprep.subr.bf16.mxu0 %v1782_v24  ;;  %v18_v9 = vld [vmem:[%s2337_s0 + $0x18] sm:$0xff]  ;;  %v1835_v17 = vld [vmem:[%s2336_s1 + $0x2c8] sm:$0xff]   ;;  %v1838_v20 = vld [vmem:[%s2336_s1 + $0x250] sm:$0xff]  }
  0x1a   :  { %1616 = vmatprep.subr.bf16.mxu1 %v1783_v25  ;;  %v1444_v10 = vcombine.low %v18_v9, %v18_v9  ;;  %v1445_v11 = vcombine.high %v18_v9, %v18_v9  ;;  %v1836_v18 = vld [vmem:[%s2336_s1 + $0x208] sm:$0xff]   ;;  %v1839_v21 = vld [vmem:[%s2336_s1 + $0x2d0] sm:$0xff]   ;;  %v1842_v24 = vld [vmem:[%s2336_s1 + $0x258] sm:$0xff]  }
  0x1b   :  { %v1837_v19 = vld [vmem:[%s2336_s1 + $0x288] sm:$0xff]   ;;  %v1840_v22 = vld [vmem:[%s2336_s1 + $0x210] sm:$0xff]   ;;  %v1843_v25 = vld [vmem:[%s2336_s1 + $0x2d8] sm:$0xff]  }
  0x1c   :  { %1595 = vmatpush3.bf16.msra.mxu0 %v1784_v26  ;;  %v1841_v23 = vld [vmem:[%s2336_s1 + $0x290] sm:$0xff]   ;;  %v1844_v26 = vld [vmem:[%s2336_s1 + $0x218] sm:$0xff]   ;;  %v1850_v32 = vld [vmem:[%s2336_s1 + $0x268] sm:$0xff]  }
  0x1d   :  { %1617 = vmatpush3.bf16.msra.mxu1 %v1785_v27  ;;  %1596 = vmatprep.subr.bf16.mxu0 %v1786_v28  ;;  %v1845_v27 = vld [vmem:[%s2336_s1 + $0x298] sm:$0xff]   ;;  %v1846_v28 = vld [vmem:[%s2336_s1 + $0x260] sm:$0xff]   ;;  %v1851_v33 = vld [vmem:[%s2336_s1 + $0x2e8] sm:$0xff]  }
  0x1e   :  { %1618 = vmatprep.subr.bf16.mxu1 %v1787_v29  ;;  %v1847_v29 = vld [vmem:[%s2336_s1 + $0x2e0] sm:$0xff]   ;;  %v1853_v35 = vld [vmem:[%s2336_s1 + $0x2a8] sm:$0xff]   ;;  %v1855_v37 = vld [vmem:[%s2336_s1 + $0x2f0] sm:$0xff]  }
  0x1f   :  { %v1886_v6 = vld [vmem:[%s2336_s1 + $0x368] sm:$0xff]  }
  0x20   :  { %1597 = vmatpush3.bf16.msra.mxu0 %v1788_v30  ;;  %v1848_v30 = vld [vmem:[%s2336_s1 + $0x220] sm:$0xff]   ;;  %v1889_v9 = vld [vmem:[%s2336_s1 + $0x3a8] sm:$0xff]  }
  0x21   :  { %1619 = vmatpush3.bf16.msra.mxu1 %v1789_v31  ;;  %1626 = vmatprep.subr.bf16.mxu0 %v1794_v38  ;;  %v1849_v31 = vld [vmem:[%s2336_s1 + $0x2a0] sm:$0xff]   ;;  %v1856_v38 = vld [vmem:[%s2336_s1 + $0x230] sm:$0xff]  }
  0x22   :  { %1648 = vmatprep.subr.bf16.mxu1 %v1795_v39  ;;  %v1857_v39 = vld [vmem:[%s2336_s1 + $0x2b0] sm:$0xff]  }
  0x23   :  { %1143 = vmatmul.mubr.bf16.vlgmr.msra.gmra.mrb[0].mxu0 %v1438_v34  ;;  %v1852_v34 = vld [vmem:[%s2336_s1 + $0x228] sm:$0xff]  }
  0x24   :  { %1183 = vmatmul.mubr.bf16.vlgmr.msra.gmra.mrb[0].mxu1 %v1440_v36  ;;  %1627 = vmatpush3.bf16.msra.mxu0 %v1796_v40  ;;  %v1854_v36 = vld [vmem:[%s2336_s1 + $0x270] sm:$0xff]   ;;  %v1858_v40 = vld [vmem:[%s2336_s1 + $0x278] sm:$0xff]  }
  0x25   :  { %1649 = vmatpush3.bf16.msra.mxu1 %v1797_v41  ;;  %1628 = vmatprep.subr.bf16.mxu0 %v1798_v42  ;;  %v1859_v41 = vld [vmem:[%s2336_s1 + $0x2f8] sm:$0xff]  }
  0x26   :  { %1650 = vmatprep.subr.bf16.mxu1 %v1799_v43  ;;  %1222 = vmatprep.mubr.bf16.mxu0 %v1443_v8  ;;  %v1860_v42 = vld [vmem:[%s2336_s1 + $0x238] sm:$0xff]   ;;  %v1888_v8 = vld [vmem:[%s2336_s1 + $0x328] sm:$0xff]  }
  0x27   :  { %1262 = vmatprep.mubr.bf16.mxu1 %v1445_v11  ;;  %v1861_v43 = vld [vmem:[%s2336_s1 + $0x2b8] sm:$0xff]   ;;  %v1891_v11 = vld [vmem:[%s2336_s1 + $0x3f0] sm:$0xff]  }
  0x28   :  { %1629 = vmatpush3.bf16.msra.mxu0 %v1800_v44  ;;  %v19_v44 = vld [vmem:[%s2337_s0 + $0x20] sm:$0xff] }
  0x29   :  { %1651 = vmatpush3.bf16.msra.mxu1 %v1801_v45  ;;  %1630 = vmatprep.subr.bf16.mxu0 %v1802_v46  ;;  %v20_v45 = vld [vmem:[%s2337_s0 + $0x28] sm:$0xff]  ;;  %v1446_v46 = vcombine.low %v19_v44, %v19_v44 }
  0x2a   :  { %1652 = vmatprep.subr.bf16.mxu1 %v1803_v47  ;;  %v1447_v47 = vcombine.high %v19_v44, %v19_v44 }
  0x2c   :  { %1631 = vmatpush3.bf16.msra.mxu0 %v1804_v48  ;;  %v1448_v48 = vcombine.low %v20_v45, %v20_v45 }
  0x2d   :  { %1653 = vmatpush3.bf16.msra.mxu1 %v1805_v49  ;;  %1632 = vmatprep.subr.bf16.mxu0 %v1806_v50  ;;  %v1449_v49 = vcombine.high %v20_v45, %v20_v45  ;;  %v1866_v50 = vld [vmem:[%s2336_s1 + $0x340] sm:$0xff]  }
  0x2e   :  { %1654 = vmatprep.subr.bf16.mxu1 %v1807_v51  ;;  %v1867_v51 = vld [vmem:[%s2336_s1 + $0x3c0] sm:$0xff]  }
  0x30   :  { %1633 = vmatpush3.bf16.msra.mxu0 %v1808_v52  ;;  %v1868_v52 = vld [vmem:[%s2336_s1 + $0x300] sm:$0xff]  }
  0x31   :  { %1655 = vmatpush3.bf16.msra.mxu1 %v1809_v53  ;;  %1634 = vmatprep.subr.bf16.mxu0 %v1810_v54  ;;  %v1869_v53 = vld [vmem:[%s2336_s1 + $0x380] sm:$0xff]   ;;  %v1870_v54 = vld [vmem:[%s2336_s1 + $0x348] sm:$0xff]  }
  0x32   :  { %1656 = vmatprep.subr.bf16.mxu1 %v1811_v55  ;;  %v1871_v55 = vld [vmem:[%s2336_s1 + $0x3c8] sm:$0xff]  }
  0x34   :  { %1635 = vmatpush3.bf16.msra.mxu0 %v1812_v56  ;;  %v1872_v56 = vld [vmem:[%s2336_s1 + $0x308] sm:$0xff]  }
  0x35   :  { %1657 = vmatpush3.bf16.msra.mxu1 %v1813_v57  ;;  %1636 = vmatprep.subr.bf16.mxu0 %v1814_v58  ;;  %v1873_v57 = vld [vmem:[%s2336_s1 + $0x388] sm:$0xff]   ;;  %v1874_v58 = vld [vmem:[%s2336_s1 + $0x350] sm:$0xff]  }
  0x36   :  { %1658 = vmatprep.subr.bf16.mxu1 %v1815_v59  ;;  %v1875_v59 = vld [vmem:[%s2336_s1 + $0x3d0] sm:$0xff]  }
  0x38   :  { %1637 = vmatpush3.bf16.msra.mxu0 %v1816_v60  ;;  %v1876_v60 = vld [vmem:[%s2336_s1 + $0x310] sm:$0xff]  }
  0x39   :  { %1659 = vmatpush3.bf16.msra.mxu1 %v1817_v61  ;;  %1638 = vmatprep.subr.bf16.mxu0 %v1818_v62  ;;  %v1877_v61 = vld [vmem:[%s2336_s1 + $0x390] sm:$0xff]   ;;  %v1878_v62 = vld [vmem:[%s2336_s1 + $0x358] sm:$0xff]  }
  0x3a   :  { %1660 = vmatprep.subr.bf16.mxu1 %v1819_v63  ;;  %v1879_v63 = vld [vmem:[%s2336_s1 + $0x3d8] sm:$0xff]  }
  0x3c   :  { %1639 = vmatpush3.bf16.msra.mxu0 %v1820_v0  ;;  %v1880_v0 = vld [vmem:[%s2336_s1 + $0x318] sm:$0xff]  }
  0x3d   :  { %1661 = vmatpush3.bf16.msra.mxu1 %v1821_v1  ;;  %1640 = vmatprep.subr.bf16.mxu0 %v1822_v2  ;;  %v1881_v1 = vld [vmem:[%s2336_s1 + $0x398] sm:$0xff]   ;;  %v1882_v2 = vld [vmem:[%s2336_s1 + $0x360] sm:$0xff]  }
  0x3e   :  { %1662 = vmatprep.subr.bf16.mxu1 %v1823_v3  ;;  %v1883_v3 = vld [vmem:[%s2336_s1 + $0x3e0] sm:$0xff]  }
  0x40   :  { %1641 = vmatpush3.bf16.msra.mxu0 %v1824_v4  ;;  %v1884_v4 = vld [vmem:[%s2336_s1 + $0x320] sm:$0xff]  }
  0x41   :  { %1663 = vmatpush3.bf16.msra.mxu1 %v1825_v5  ;;  %1670 = vmatprep.subr.bf16.mxu0 %v1830_v12  ;;  %v1885_v5 = vld [vmem:[%s2336_s1 + $0x3a0] sm:$0xff]   ;;  %v1892_v12 = vld [vmem:[%s2336_s1 + $0x330] sm:$0xff]  }
  0x42   :  { %1692 = vmatprep.subr.bf16.mxu1 %v1831_v13  ;;  %v1893_v13 = vld [vmem:[%s2336_s1 + $0x3b0] sm:$0xff]  }
  0x43   :  { %1223 = vmatmul.mubr.bf16.vlgmr.msra.gmra.mrb[4].mxu0 %v1442_v7  ;;  %v1887_v7 = vld [vmem:[%s2336_s1 + $0x3e8] sm:$0xff]  }
  0x44   :  { %1263 = vmatmul.mubr.bf16.vlgmr.msra.gmra.mrb[4].mxu1 %v1444_v10  ;;  %1671 = vmatpush3.bf16.msra.mxu0 %v1832_v14  ;;  %v1890_v10 = vld [vmem:[%s2336_s1 + $0x370] sm:$0xff]   ;;  %v1894_v14 = vld [vmem:[%s2336_s1 + $0x378] sm:$0xff]  }
  0x45   :  { %1693 = vmatpush3.bf16.msra.mxu1 %v1833_v15  ;;  %1672 = vmatprep.subr.bf16.mxu0 %v1834_v16  ;;  %v1895_v15 = vld [vmem:[%s2336_s1 + $0x3f8] sm:$0xff]  }
  0x46   :  { %1694 = vmatprep.subr.bf16.mxu1 %v1835_v17  ;;  %1302 = vmatprep.mubr.bf16.mxu0 %v1447_v47  ;;  %v1896_v16 = vld [vmem:[%s2336_s1 + $0x338] sm:$0xff]  }
  0x47   :  { %1342 = vmatprep.mubr.bf16.mxu1 %v1449_v49  ;;  %v1897_v17 = vld [vmem:[%s2336_s1 + $0x3b8] sm:$0xff]  }
  0x48   :  { %1673 = vmatpush3.bf16.msra.mxu0 %v1836_v18  ;;  %v21_v18 = vld [vmem:[%s2337_s0 + $0x30] sm:$0xff] }
  0x49   :  { %1695 = vmatpush3.bf16.msra.mxu1 %v1837_v19  ;;  %1674 = vmatprep.subr.bf16.mxu0 %v1838_v20  ;;  %v22_v19 = vld [vmem:[%s2337_s0 + $0x38] sm:$0xff]  ;;  %v1450_v20 = vcombine.low %v21_v18, %v21_v18 }
  0x4a   :  { %1696 = vmatprep.subr.bf16.mxu1 %v1839_v21  ;;  %v1451_v21 = vcombine.high %v21_v18, %v21_v18 }
  0x4c   :  { %1675 = vmatpush3.bf16.msra.mxu0 %v1840_v22  ;;  %v1452_v22 = vcombine.low %v22_v19, %v22_v19 }
  0x4d   :  { %1697 = vmatpush3.bf16.msra.mxu1 %v1841_v23  ;;  %1676 = vmatprep.subr.bf16.mxu0 %v1842_v24  ;;  %v1453_v23 = vcombine.high %v22_v19, %v22_v19 }
  0x4e   :  { %1698 = vmatprep.subr.bf16.mxu1 %v1843_v25 }
  0x50   :  { %1677 = vmatpush3.bf16.msra.mxu0 %v1844_v26  ;;  %v1437_v26 = vld [vmem:[%s2338_s2] ss:$0 sm:$0xff] }
  0x51   :  { %1699 = vmatpush3.bf16.msra.mxu1 %v1845_v27  ;;  %1678 = vmatprep.subr.bf16.mxu0 %v1846_v28 }
  0x52   :  { %1700 = vmatprep.subr.bf16.mxu1 %v1847_v29 }
  0x54   :  { %1679 = vmatpush3.bf16.msra.mxu0 %v1848_v30 }
  0x55   :  { %1701 = vmatpush3.bf16.msra.mxu1 %v1849_v31  ;;  %1680 = vmatprep.subr.bf16.mxu0 %v1850_v32 }
  0x56   :  { %1702 = vmatprep.subr.bf16.mxu1 %v1851_v33 }
  0x58   :  { %1681 = vmatpush3.bf16.msra.mxu0 %v1852_v34 }
  0x59   :  { %1703 = vmatpush3.bf16.msra.mxu1 %v1853_v35  ;;  %1682 = vmatprep.subr.bf16.mxu0 %v1854_v36 }
  0x5a   :  { %1704 = vmatprep.subr.bf16.mxu1 %v1855_v37 }
  0x5c   :  { %1683 = vmatpush3.bf16.msra.mxu0 %v1856_v38 }
  0x5d   :  { %1705 = vmatpush3.bf16.msra.mxu1 %v1857_v39  ;;  %1684 = vmatprep.subr.bf16.mxu0 %v1858_v40 }
  0x5e   :  { %1706 = vmatprep.subr.bf16.mxu1 %v1859_v41 }
  0x60   :  { %1685 = vmatpush3.bf16.msra.mxu0 %v1860_v42 }
  0x61   :  { %1707 = vmatpush3.bf16.msra.mxu1 %v1861_v43  ;;  %1714 = vmatprep.subr.bf16.mxu0 %v1866_v50 }
  0x62   :  { %1736 = vmatprep.subr.bf16.mxu1 %v1867_v51 }
  0x63   :  { %1303 = vmatmul.mubr.bf16.vlgmr.msra.gmra.mrb[8].mxu0 %v1446_v46 }
  0x64   :  { %1343 = vmatmul.mubr.bf16.vlgmr.msra.gmra.mrb[8].mxu1 %v1448_v48  ;;  %1715 = vmatpush3.bf16.msra.mxu0 %v1868_v52 }
  0x65   :  { %1737 = vmatpush3.bf16.msra.mxu1 %v1869_v53  ;;  %1716 = vmatprep.subr.bf16.mxu0 %v1870_v54 }
  0x66   :  { %1738 = vmatprep.subr.bf16.mxu1 %v1871_v55  ;;  %1382 = vmatprep.mubr.bf16.mxu0 %v1451_v21 }
  0x67   :  { %1422 = vmatprep.mubr.bf16.mxu1 %v1453_v23 }
  0x68   :  { %1717 = vmatpush3.bf16.msra.mxu0 %v1872_v56 }
  0x69   :  { %1739 = vmatpush3.bf16.msra.mxu1 %v1873_v57  ;;  %1718 = vmatprep.subr.bf16.mxu0 %v1874_v58 }
  0x6a   :  { %1740 = vmatprep.subr.bf16.mxu1 %v1875_v59 }
  0x6c   :  { %1719 = vmatpush3.bf16.msra.mxu0 %v1876_v60 }
  0x6d   :  { %1741 = vmatpush3.bf16.msra.mxu1 %v1877_v61  ;;  %1720 = vmatprep.subr.bf16.mxu0 %v1878_v62 }
  0x6e   :  { %1742 = vmatprep.subr.bf16.mxu1 %v1879_v63 }
  0x70   :  { %1721 = vmatpush3.bf16.msra.mxu0 %v1880_v0 }
  0x71   :  { %1743 = vmatpush3.bf16.msra.mxu1 %v1881_v1  ;;  %1722 = vmatprep.subr.bf16.mxu0 %v1882_v2 }
  0x72   :  { %1744 = vmatprep.subr.bf16.mxu1 %v1883_v3 }
  0x74   :  { %1723 = vmatpush3.bf16.msra.mxu0 %v1884_v4 }
  0x75   :  { %1745 = vmatpush3.bf16.msra.mxu1 %v1885_v5  ;;  %1724 = vmatprep.subr.bf16.mxu0 %v1886_v6 }
  0x76   :  { %1746 = vmatprep.subr.bf16.mxu1 %v1887_v7 }
  0x78   :  { %1725 = vmatpush3.bf16.msra.mxu0 %v1888_v8 }
  0x79   :  { %1747 = vmatpush3.bf16.msra.mxu1 %v1889_v9  ;;  %1726 = vmatprep.subr.bf16.mxu0 %v1890_v10 }
  0x7a   :  { %1748 = vmatprep.subr.bf16.mxu1 %v1891_v11 }
  0x7c   :  { %1727 = vmatpush3.bf16.msra.mxu0 %v1892_v12 }
  0x7d   :  { %1749 = vmatpush3.bf16.msra.mxu1 %v1893_v13  ;;  %1728 = vmatprep.subr.bf16.mxu0 %v1894_v14 }
  0x7e   :  { %1750 = vmatprep.subr.bf16.mxu1 %v1895_v15 }
  0x80   :  { %1729 = vmatpush3.bf16.msra.mxu0 %v1896_v16 }
  0x81   :  { %1751 = vmatpush3.bf16.msra.mxu1 %v1897_v17 }
  0x83   :  { %1383 = vmatmul.mubr.bf16.vlgmr.msra.gmra.mrb[12].mxu0 %v1450_v20 }
  0x84   :  { %1423 = vmatmul.mubr.bf16.vlgmr.msra.gmra.mrb[12].mxu1 %v1452_v22 }
  0xf6   :  { %v1598_v24 = vpop.f32.mrb[0].mxu0 }
  0xf7   :  { %v1620_v25 = vpop.f32.mrb[0].mxu1  ;;  %v1599_v27 = vpop.f32.mrb[1].mxu0 }
  0xf8   :  { %v1621_v28 = vpop.f32.mrb[1].mxu1  ;;  %v1600_v29 = vadd.f32 %v1599_v27, %v1598_v24  ;;  %v1601_v31 = vpop.f32.mrb[2].mxu0 }
  0xf9   :  { %v1622_v30 = vadd.f32 %v1621_v28, %v1620_v25  ;;  %v1623_v32 = vpop.f32.mrb[2].mxu1  ;;  %v1602_v33 = vpop.f32.mrb[3].mxu0 }
  0xfa   :  { %v1624_v34 = vpop.f32.mrb[3].mxu1  ;;  %v1145_v35 = vadd.f32 %v1600_v29, %v1437_v26 }
  0xfc   :  { %v1185_v36 = vadd.f32 %v1622_v30, %v1145_v35 }
 0x116   :  { %v1642_v37 = vpop.f32.mrb[4].mxu0 }
 0x117   :  { %v1664_v38 = vpop.f32.mrb[4].mxu1  ;;  %v1643_v39 = vpop.f32.mrb[5].mxu0 }
 0x118   :  { %v1665_v40 = vpop.f32.mrb[5].mxu1  ;;  %v1644_v41 = vadd.f32 %v1643_v39, %v1642_v37  ;;  %v1645_v43 = vpop.f32.mrb[6].mxu0 }
 0x119   :  { %v1666_v42 = vadd.f32 %v1665_v40, %v1664_v38  ;;  %v1667_v44 = vpop.f32.mrb[6].mxu1  ;;  %v1646_v45 = vpop.f32.mrb[7].mxu0 }
 0x11a   :  { %v1668_v46 = vpop.f32.mrb[7].mxu1  ;;  %v1225_v47 = vadd.f32 %v1644_v41, %v1185_v36 }
 0x11c   :  { %v1265_v48 = vadd.f32 %v1666_v42, %v1225_v47 }
 0x136   :  { %v1686_v49 = vpop.f32.mrb[8].mxu0 }
 0x137   :  { %v1708_v50 = vpop.f32.mrb[8].mxu1  ;;  %v1687_v51 = vpop.f32.mrb[9].mxu0 }
 0x138   :  { %v1688_v52 = vadd.f32 %v1687_v51, %v1686_v49  ;;  %v1709_v53 = vpop.f32.mrb[9].mxu1  ;;  %v1689_v54 = vpop.f32.mrb[10].mxu0 }
 0x139   :  { %v1710_v55 = vadd.f32 %v1709_v53, %v1708_v50  ;;  %v1711_v56 = vpop.f32.mrb[10].mxu1  ;;  %v1690_v57 = vpop.f32.mrb[11].mxu0 }
 0x13a   :  { %v1305_v58 = vadd.f32 %v1688_v52, %v1265_v48  ;;  %v1712_v59 = vpop.f32.mrb[11].mxu1 }
 0x13c   :  { %v1345_v60 = vadd.f32 %v1710_v55, %v1305_v58 }
 0x156   :  { %v1730_v61 = vpop.f32.mrb[12].mxu0 }
 0x157   :  { %v1752_v62 = vpop.f32.mrb[12].mxu1  ;;  %v1731_v63 = vpop.f32.mrb[13].mxu0 }
 0x158   :  { %v1732_v0 = vadd.f32 %v1731_v63, %v1730_v61  ;;  %v1753_v1 = vpop.f32.mrb[13].mxu1  ;;  %v1733_v2 = vpop.f32.mrb[14].mxu0 }
 0x159   :  { %v1754_v3 = vadd.f32 %v1753_v1, %v1752_v62  ;;  %v1755_v4 = vpop.f32.mrb[14].mxu1  ;;  %v1734_v5 = vpop.f32.mrb[15].mxu0 }
 0x15a   :  { %v1385_v6 = vadd.f32 %v1732_v0, %v1345_v60  ;;  %v1756_v7 = vpop.f32.mrb[15].mxu1 }
 0x15c   :  { %v1425_v8 = vadd.f32 %v1754_v3, %v1385_v6 }
 0x15e   :  { %v1430_v9 = vmax.f32 %v1425_v8, 0.0 }
 0x160   :  { %v1431_v10 = vpack.c.bf16 %v1430_v9, %v1430_v9 }
 0x162   :  { %1432 = vst [vmem:[%s2339_s3] sm:$0xf] %v1431_v10 }

// kernel: encoder_forward.9
= control target key start
LH: loop header
LB: loop body
LE: loop exit
PB: predicated region body
PF: predicated region fallthrough
CT: control target
= control target key end

     0   :  { %v29_v39 = vlaneseq  ;;  %v2804_v40 = vmov 1966171168   ;;  %vm151_vm0 = vcmask 1041409   ;;  %s3700_s0 = inlined_call_operand.vmem [shape: bf16[2,1,1,256], index: 0, kind: input, shape index: {}]   ;;  %s3701_s1 = inlined_call_operand.vmem [shape: bf16[9,256,512], index: 1, kind: input, shape index: {}]   ;;  %s3702_s2 = inlined_call_operand.vmem [shape: f32[1,1,1,512], index: 2, kind: input, shape index: {}]   ;;  %s3703_s3 = inlined_call_operand.vmem [shape: bf16[9,512,512], index: 3, kind: input, shape index: {}]   ;;  %s3704_s4 = inlined_call_operand.vmem [shape: f32[1,1,1,512], index: 4, kind: input, shape index: {}]   ;;  %s3705_s5 = inlined_call_operand.vmem [shape: f32[512,2], index: 5, kind: input, shape index: {}]   ;;  %s3706_s6 = inlined_call_operand.vmem [shape: f32[1,2], index: 6, kind: input, shape index: {}]   ;;  %s3707_s7 = inlined_call_operand.hbm [shape: f32[2,2], index: 7, kind: output, shape index: {}]  }
   0x1   :  { %v2488_v0 = vld [vmem:[%s3701_s1 + $0x804] ss:$16 sps:$4 sm:$0xff]   ;;  %v2490_v1 = vld [vmem:[%s3701_s1 + $0x80c] ss:$16 sps:$4 sm:$0xff]   ;;  %v2492_v2 = vld [vmem:[%s3701_s1 + $0x800] ss:$16 sps:$4 sm:$0xff]   ;;  %v111_v41 = vunpack.c.l.s4 %v2804_v40 }
   0x2   :  { %479 = vmatprep.subr.bf16.mxu0 %v2488_v0  ;;  %v2493_v3 = vld [vmem:[%s3701_s1 + $0x808] ss:$16 sps:$4 sm:$0xff]   ;;  %520 = vmatprep.subr.bf16.mxu1 %v2490_v1  ;;  %v2494_v4 = vld [vmem:[%s3701_s1 + $0x824] ss:$16 sps:$4 sm:$0xff]   ;;  %v2496_v5 = vld [vmem:[%s3701_s1 + $0x82c] ss:$16 sps:$4 sm:$0xff]  }
   0x3   :  { %480 = vmatpush1.bf16.msra.mxu0 %v2492_v2  ;;  %521 = vmatpush1.bf16.msra.mxu1 %v2493_v3  ;;  %v2498_v6 = vld [vmem:[%s3701_s1 + $0x820] ss:$16 sps:$4 sm:$0xff]   ;;  %v2499_v7 = vld [vmem:[%s3701_s1 + $0x828] ss:$16 sps:$4 sm:$0xff]   ;;  %v2500_v8 = vld [vmem:[%s3701_s1 + $0x844] ss:$16 sps:$4 sm:$0xff]   ;;  %v112_v47 = vunpack.c.0.s8 %v111_v41 }
   0x4   :  { %481 = vmatprep.subr.bf16.mxu0 %v2494_v4  ;;  %522 = vmatprep.subr.bf16.mxu1 %v2496_v5  ;;  %v2502_v9 = vld [vmem:[%s3701_s1 + $0x84c] ss:$16 sps:$4 sm:$0xff]   ;;  %v2504_v10 = vld [vmem:[%s3701_s1 + $0x840] ss:$16 sps:$4 sm:$0xff]   ;;  %v2505_v11 = vld [vmem:[%s3701_s1 + $0x848] ss:$16 sps:$4 sm:$0xff]  }
   0x5   :  { %v2506_v12 = vld [vmem:[%s3701_s1 + $0x864] ss:$16 sps:$4 sm:$0xff]   ;;  %v2508_v13 = vld [vmem:[%s3701_s1 + $0x86c] ss:$16 sps:$4 sm:$0xff]   ;;  %v2510_v14 = vld [vmem:[%s3701_s1 + $0x860] ss:$16 sps:$4 sm:$0xff]  }
   0x6   :  { %v2511_v15 = vld [vmem:[%s3701_s1 + $0x868] ss:$16 sps:$4 sm:$0xff]   ;;  %v2512_v16 = vld [vmem:[%s3701_s1 + $0x884] ss:$16 sps:$4 sm:$0xff]   ;;  %v2514_v17 = vld [vmem:[%s3701_s1 + $0x88c] ss:$16 sps:$4 sm:$0xff]  }
   0x7   :  { %482 = vmatpush1.bf16.msra.mxu0 %v2498_v6  ;;  %523 = vmatpush1.bf16.msra.mxu1 %v2499_v7  ;;  %v2516_v18 = vld [vmem:[%s3701_s1 + $0x880] ss:$16 sps:$4 sm:$0xff]   ;;  %v2517_v19 = vld [vmem:[%s3701_s1 + $0x888] ss:$16 sps:$4 sm:$0xff]   ;;  %v2518_v20 = vld [vmem:[%s3701_s1 + $0x8a4] ss:$16 sps:$4 sm:$0xff]  }
   0x8   :  { %483 = vmatprep.subr.bf16.mxu0 %v2500_v8  ;;  %524 = vmatprep.subr.bf16.mxu1 %v2502_v9  ;;  %v2520_v21 = vld [vmem:[%s3701_s1 + $0x8ac] ss:$16 sps:$4 sm:$0xff]   ;;  %v2522_v22 = vld [vmem:[%s3701_s1 + $0x8a0] ss:$16 sps:$4 sm:$0xff]   ;;  %v2523_v23 = vld [vmem:[%s3701_s1 + $0x8a8] ss:$16 sps:$4 sm:$0xff]  }
   0x9   :  { %v2524_v24 = vld [vmem:[%s3701_s1 + $0x8c4] ss:$16 sps:$4 sm:$0xff]   ;;  %v2526_v25 = vld [vmem:[%s3701_s1 + $0x8cc] ss:$16 sps:$4 sm:$0xff]   ;;  %v2528_v26 = vld [vmem:[%s3701_s1 + $0x8c0] ss:$16 sps:$4 sm:$0xff]  }
   0xa   :  { %v2529_v27 = vld [vmem:[%s3701_s1 + $0x8c8] ss:$16 sps:$4 sm:$0xff]   ;;  %v2530_v28 = vld [vmem:[%s3701_s1 + $0x8e4] ss:$16 sps:$4 sm:$0xff]   ;;  %v2532_v29 = vld [vmem:[%s3701_s1 + $0x8ec] ss:$16 sps:$4 sm:$0xff]  }
   0xb   :  { %484 = vmatpush1.bf16.msra.mxu0 %v2504_v10  ;;  %525 = vmatpush1.bf16.msra.mxu1 %v2505_v11  ;;  %v2534_v30 = vld [vmem:[%s3701_s1 + $0x8e0] ss:$16 sps:$4 sm:$0xff]   ;;  %v2535_v31 = vld [vmem:[%s3701_s1 + $0x8e8] ss:$16 sps:$4 sm:$0xff]   ;;  %v2536_v32 = vld [vmem:[%s3701_s1 + $0x904] ss:$16 sps:$4 sm:$0xff]  }
   0xc   :  { %485 = vmatprep.subr.bf16.mxu0 %v2506_v12  ;;  %526 = vmatprep.subr.bf16.mxu1 %v2508_v13  ;;  %v2538_v33 = vld [vmem:[%s3701_s1 + $0x90c] ss:$16 sps:$4 sm:$0xff]   ;;  %v2540_v34 = vld [vmem:[%s3701_s1 + $0x900] ss:$16 sps:$4 sm:$0xff]   ;;  %v2541_v35 = vld [vmem:[%s3701_s1 + $0x908] ss:$16 sps:$4 sm:$0xff]  }
   0xd   :  { %v2542_v36 = vld [vmem:[%s3701_s1 + $0x924] ss:$16 sps:$4 sm:$0xff]   ;;  %v2544_v37 = vld [vmem:[%s3701_s1 + $0x92c] ss:$16 sps:$4 sm:$0xff]   ;;  %v2546_v38 = vld [vmem:[%s3701_s1 + $0x920] ss:$16 sps:$4 sm:$0xff]  }
   0xe   :  { %v2547_v42 = vld [vmem:[%s3701_s1 + $0x928] ss:$16 sps:$4 sm:$0xff]   ;;  %v2548_v43 = vld [vmem:[%s3701_s1 + $0x944] ss:$16 sps:$4 sm:$0xff]   ;;  %v2550_v44 = vld [vmem:[%s3701_s1 + $0x94c] ss:$16 sps:$4 sm:$0xff]  }
   0xf   :  { %486 = vmatpush1.bf16.msra.mxu0 %v2510_v14  ;;  %527 = vmatpush1.bf16.msra.mxu1 %v2511_v15  ;;  %v2552_v45 = vld [vmem:[%s3701_s1 + $0x940] ss:$16 sps:$4 sm:$0xff]   ;;  %v2553_v46 = vld [vmem:[%s3701_s1 + $0x948] ss:$16 sps:$4 sm:$0xff]   ;;  %v2980_v48 = vshrl.u32 %v29_v39, 7 }
  0x10   :  { %487 = vmatprep.subr.bf16.mxu0 %v2512_v16  ;;  %528 = vmatprep.subr.bf16.mxu1 %v2514_v17  ;;  %v2554_v49 = vld [vmem:[%s3701_s1 + $0x964] ss:$16 sps:$4 sm:$0xff]   ;;  %v2556_v50 = vld [vmem:[%s3701_s1 + $0x96c] ss:$16 sps:$4 sm:$0xff]   ;;  %v2558_v51 = vld [vmem:[%s3701_s1 + $0x960] ss:$16 sps:$4 sm:$0xff]  }
  0x11   :  { %v2020_v52 = vld.sshfl [vmem:[%s3700_s0] sm:$0x11 pattern:$0x75316420]  ;;  %v2995_v53 = vsub.s32 %v112_v47, %v2980_v48  ;;  %v2559_v54 = vld [vmem:[%s3701_s1 + $0x968] ss:$16 sps:$4 sm:$0xff]  }
  0x12   :  { %v2021_v55 = vld.sshfl [vmem:[%s3700_s0 + $0x2] sm:$0x11 pattern:$0x75316420]  ;;  %v109_v56 = vcombine.high %v2020_v52, %v2020_v52  ;;  %v2560_v57 = vld [vmem:[%s3701_s1 + $0x984] ss:$16 sps:$4 sm:$0xff]  }
  0x13   :  { %488 = vmatpush1.bf16.msra.mxu0 %v2516_v18  ;;  %529 = vmatpush1.bf16.msra.mxu1 %v2517_v19  ;;  %v2562_v58 = vld [vmem:[%s3701_s1 + $0x98c] ss:$16 sps:$4 sm:$0xff]   ;;  %v131_v59 = vcombine.high %v2021_v55, %v2021_v55  ;;  %v2564_v61 = vld [vmem:[%s3701_s1 + $0x980] ss:$16 sps:$4 sm:$0xff]   ;;  %v2565_v63 = vld [vmem:[%s3701_s1 + $0x988] ss:$16 sps:$4 sm:$0xff]   ;;  %v138_v1 = vrot.slane %v2021_v55, %v2995_v53  ;;  %v116_v9 = vrot.slane %v2020_v52, %v2995_v53 }
  0x14   :  { %489 = vmatprep.subr.bf16.mxu0 %v2518_v20  ;;  %530 = vmatprep.subr.bf16.mxu1 %v2520_v21  ;;  %v123_v60 = vrot.slane %v109_v56, %v2995_v53  ;;  %v2566_v0 = vld [vmem:[%s3701_s1 + $0x9a4] ss:$16 sps:$4 sm:$0xff]   ;;  %v2568_v2 = vld [vmem:[%s3701_s1 + $0x9ac] ss:$16 sps:$4 sm:$0xff]   ;;  %v2570_v5 = vld [vmem:[%s3701_s1 + $0x9a0] ss:$16 sps:$4 sm:$0xff]  }
  0x15   :  { %v145_v62 = vrot.slane %v131_v59, %v2995_v53  ;;  %v2571_v7 = vld [vmem:[%s3701_s1 + $0x9a8] ss:$16 sps:$4 sm:$0xff]   ;;  %v2572_v8 = vld [vmem:[%s3701_s1 + $0x9c4] ss:$16 sps:$4 sm:$0xff]   ;;  %v148_v10 = vunpack.c.l.b16 %v138_v1  ;;  %v2574_v11 = vld [vmem:[%s3701_s1 + $0x9cc] ss:$16 sps:$4 sm:$0xff]   ;;  %v146_v17 = vunpack.c.l.b16 %v116_v9 }
  0x16   :  { %v147_v3 = vunpack.c.l.b16 %v123_v60  ;;  %v2576_v14 = vld [vmem:[%s3701_s1 + $0x9c0] ss:$16 sps:$4 sm:$0xff]   ;;  %v2577_v15 = vld [vmem:[%s3701_s1 + $0x9c8] ss:$16 sps:$4 sm:$0xff]   ;;  %v2578_v16 = vld [vmem:[%s3701_s1 + $0x9e4] ss:$16 sps:$4 sm:$0xff]  }
  0x17   :  { %490 = vmatpush1.bf16.msra.mxu0 %v2522_v22  ;;  %531 = vmatpush1.bf16.msra.mxu1 %v2523_v23  ;;  %v149_v4 = vunpack.c.l.b16 %v145_v62  ;;  %v150_v18 = vrot.slane %v148_v10, 7  ;;  %v2580_v19 = vld [vmem:[%s3701_s1 + $0x9ec] ss:$16 sps:$4 sm:$0xff]   ;;  %v2582_v20 = vld [vmem:[%s3701_s1 + $0x9e0] ss:$16 sps:$4 sm:$0xff]  }
  0x18   :  { %491 = vmatprep.subr.bf16.mxu0 %v2524_v24  ;;  %532 = vmatprep.subr.bf16.mxu1 %v2526_v25  ;;  %v2583_v21 = vld [vmem:[%s3701_s1 + $0x9e8] ss:$16 sps:$4 sm:$0xff]   ;;  %v2586_v23 = vld [vmem:[%s3703_s3 + $0x1004] ss:$16 sps:$4 sm:$0xff]   ;;  %v2589_v24 = vld [vmem:[%s3703_s3 + $0x100c] ss:$16 sps:$4 sm:$0xff]  }
  0x19   :  { %v153_v6 = vrot.slane %v149_v4, 7  ;;  %v152_v22 = vsel %vm151_vm0, %v150_v18, %v146_v17  ;;  %v2605_v40 = vld [vmem:[%s3703_s3 + $0x1068] ss:$16 sps:$4 sm:$0xff]   ;;  %v2610_v41 = vld [vmem:[%s3703_s3 + $0x1084] ss:$16 sps:$4 sm:$0xff]  }
  0x1a   :  { %v155_v25 = vpack.c.b16 %v152_v22, %v152_v22  ;;  %v2614_v47 = vld [vmem:[%s3703_s3 + $0x10a0] ss:$16 sps:$4 sm:$0xff]   ;;  %v2628_v55 = vld [vmem:[%s3703_s3 + $0x10e4] ss:$16 sps:$4 sm:$0xff]   ;;  %v2631_v56 = vld [vmem:[%s3703_s3 + $0x10ec] ss:$16 sps:$4 sm:$0xff]  }
  0x1b   :  { %492 = vmatpush1.bf16.msra.mxu0 %v2528_v26  ;;  %533 = vmatpush1.bf16.msra.mxu1 %v2529_v27  ;;  %v154_v12 = vsel %vm151_vm0, %v153_v6, %v147_v3  ;;  %v2584_v26 = vld [vmem:[%s3703_s3 + $0x1000] ss:$16 sps:$4 sm:$0xff]   ;;  %v2587_v27 = vld [vmem:[%s3703_s3 + $0x1008] ss:$16 sps:$4 sm:$0xff]  }
  0x1c   :  { %493 = vmatprep.subr.bf16.mxu0 %v2530_v28  ;;  %534 = vmatprep.subr.bf16.mxu1 %v2532_v29  ;;  %v156_v13 = vpack.c.b16 %v154_v12, %v154_v12  ;;  %v2592_v28 = vld [vmem:[%s3703_s3 + $0x1024] ss:$16 sps:$4 sm:$0xff]   ;;  %v2595_v29 = vld [vmem:[%s3703_s3 + $0x102c] ss:$16 sps:$4 sm:$0xff]   ;;  %v2620_v52 = vld [vmem:[%s3703_s3 + $0x10c0] ss:$16 sps:$4 sm:$0xff]  }
  0x1e   :  { %511 = vmatprep.mubr.bf16.mxu0 %v156_v13  ;;  %552 = vmatprep.mubr.bf16.mxu1 %v156_v13 }
  0x1f   :  { %494 = vmatpush1.bf16.msra.mxu0 %v2534_v30  ;;  %535 = vmatpush1.bf16.msra.mxu1 %v2535_v31  ;;  %v2590_v30 = vld [vmem:[%s3703_s3 + $0x1020] ss:$16 sps:$4 sm:$0xff]   ;;  %v2593_v31 = vld [vmem:[%s3703_s3 + $0x1028] ss:$16 sps:$4 sm:$0xff]  }
  0x20   :  { %495 = vmatprep.subr.bf16.mxu0 %v2536_v32  ;;  %536 = vmatprep.subr.bf16.mxu1 %v2538_v33  ;;  %v2598_v32 = vld [vmem:[%s3703_s3 + $0x1044] ss:$16 sps:$4 sm:$0xff]   ;;  %v2601_v33 = vld [vmem:[%s3703_s3 + $0x104c] ss:$16 sps:$4 sm:$0xff]  }
  0x23   :  { %496 = vmatpush1.bf16.msra.mxu0 %v2540_v34  ;;  %537 = vmatpush1.bf16.msra.mxu1 %v2541_v35  ;;  %v2596_v34 = vld [vmem:[%s3703_s3 + $0x1040] ss:$16 sps:$4 sm:$0xff]   ;;  %v2599_v35 = vld [vmem:[%s3703_s3 + $0x1048] ss:$16 sps:$4 sm:$0xff]  }
  0x24   :  { %497 = vmatprep.subr.bf16.mxu0 %v2542_v36  ;;  %538 = vmatprep.subr.bf16.mxu1 %v2544_v37  ;;  %v2604_v36 = vld [vmem:[%s3703_s3 + $0x1064] ss:$16 sps:$4 sm:$0xff]   ;;  %v2607_v37 = vld [vmem:[%s3703_s3 + $0x106c] ss:$16 sps:$4 sm:$0xff]  }
  0x27   :  { %498 = vmatpush1.bf16.msra.mxu0 %v2546_v38  ;;  %539 = vmatpush1.bf16.msra.mxu1 %v2547_v42  ;;  %v2602_v38 = vld [vmem:[%s3703_s3 + $0x1060] ss:$16 sps:$4 sm:$0xff]   ;;  %v2613_v42 = vld [vmem:[%s3703_s3 + $0x108c] ss:$16 sps:$4 sm:$0xff]  }
  0x28   :  { %499 = vmatprep.subr.bf16.mxu0 %v2548_v43  ;;  %540 = vmatprep.subr.bf16.mxu1 %v2550_v44  ;;  %v2608_v43 = vld [vmem:[%s3703_s3 + $0x1080] ss:$16 sps:$4 sm:$0xff]   ;;  %v2611_v44 = vld [vmem:[%s3703_s3 + $0x1088] ss:$16 sps:$4 sm:$0xff]  }
  0x2b   :  { %500 = vmatpush1.bf16.msra.mxu0 %v2552_v45  ;;  %541 = vmatpush1.bf16.msra.mxu1 %v2553_v46  ;;  %v2616_v45 = vld [vmem:[%s3703_s3 + $0x10a4] ss:$16 sps:$4 sm:$0xff]   ;;  %v2619_v46 = vld [vmem:[%s3703_s3 + $0x10ac] ss:$16 sps:$4 sm:$0xff]  }
  0x2c   :  { %501 = vmatprep.subr.bf16.mxu0 %v2554_v49  ;;  %542 = vmatprep.subr.bf16.mxu1 %v2556_v50  ;;  %v2617_v49 = vld [vmem:[%s3703_s3 + $0x10a8] ss:$16 sps:$4 sm:$0xff]   ;;  %v2622_v50 = vld [vmem:[%s3703_s3 + $0x10c4] ss:$16 sps:$4 sm:$0xff]  }
  0x2f   :  { %502 = vmatpush1.bf16.msra.mxu0 %v2558_v51  ;;  %543 = vmatpush1.bf16.msra.mxu1 %v2559_v54  ;;  %v2625_v51 = vld [vmem:[%s3703_s3 + $0x10cc] ss:$16 sps:$4 sm:$0xff]   ;;  %v2623_v54 = vld [vmem:[%s3703_s3 + $0x10c8] ss:$16 sps:$4 sm:$0xff]  }
  0x30   :  { %503 = vmatprep.subr.bf16.mxu0 %v2560_v57  ;;  %544 = vmatprep.subr.bf16.mxu1 %v2562_v58  ;;  %v2626_v57 = vld [vmem:[%s3703_s3 + $0x10e0] ss:$16 sps:$4 sm:$0xff]   ;;  %v2629_v58 = vld [vmem:[%s3703_s3 + $0x10e8] ss:$16 sps:$4 sm:$0xff]  }
  0x33   :  { %504 = vmatpush1.bf16.msra.mxu0 %v2564_v61  ;;  %545 = vmatpush1.bf16.msra.mxu1 %v2565_v63 }
  0x34   :  { %505 = vmatprep.subr.bf16.mxu0 %v2566_v0  ;;  %546 = vmatprep.subr.bf16.mxu1 %v2568_v2 }
  0x37   :  { %506 = vmatpush1.bf16.msra.mxu0 %v2570_v5  ;;  %547 = vmatpush1.bf16.msra.mxu1 %v2571_v7 }
  0x38   :  { %507 = vmatprep.subr.bf16.mxu0 %v2572_v8  ;;  %548 = vmatprep.subr.bf16.mxu1 %v2574_v11 }
  0x3b   :  { %508 = vmatpush1.bf16.msra.mxu0 %v2576_v14  ;;  %549 = vmatpush1.bf16.msra.mxu1 %v2577_v15 }
  0x3c   :  { %509 = vmatprep.subr.bf16.mxu0 %v2578_v16  ;;  %550 = vmatprep.subr.bf16.mxu1 %v2580_v19 }
  0x3f   :  { %510 = vmatpush1.bf16.msra.mxu0 %v2582_v20  ;;  %551 = vmatpush1.bf16.msra.mxu1 %v2583_v21 }
  0x40   :  { %1465 = vmatprep.subr.bf16.mxu0 %v2586_v23  ;;  %1547 = vmatprep.subr.bf16.mxu1 %v2589_v24 }
  0x42   :  { %512 = vmatmul.mubr.bf16.vlgmr.msra.gmra.mrb[0].mxu0 %v155_v25  ;;  %553 = vmatmul.mubr.bf16.vlgmr.msra.gmra.mrb[0].mxu1 %v155_v25 }
  0x43   :  { %1466 = vmatpush1.bf16.msra.mxu0 %v2584_v26  ;;  %1548 = vmatpush1.bf16.msra.mxu1 %v2587_v27 }
  0x44   :  { %1467 = vmatprep.subr.bf16.mxu0 %v2592_v28  ;;  %1549 = vmatprep.subr.bf16.mxu1 %v2595_v29 }
  0x47   :  { %1468 = vmatpush1.bf16.msra.mxu0 %v2590_v30  ;;  %1550 = vmatpush1.bf16.msra.mxu1 %v2593_v31 }
  0x48   :  { %1469 = vmatprep.subr.bf16.mxu0 %v2598_v32  ;;  %1551 = vmatprep.subr.bf16.mxu1 %v2601_v33 }
  0x4b   :  { %1470 = vmatpush1.bf16.msra.mxu0 %v2596_v34  ;;  %1552 = vmatpush1.bf16.msra.mxu1 %v2599_v35 }
  0x4c   :  { %1471 = vmatprep.subr.bf16.mxu0 %v2604_v36  ;;  %1553 = vmatprep.subr.bf16.mxu1 %v2607_v37 }
  0x4f   :  { %1472 = vmatpush1.bf16.msra.mxu0 %v2602_v38  ;;  %1554 = vmatpush1.bf16.msra.mxu1 %v2605_v40 }
  0x50   :  { %1473 = vmatprep.subr.bf16.mxu0 %v2610_v41  ;;  %1555 = vmatprep.subr.bf16.mxu1 %v2613_v42 }
  0x53   :  { %1474 = vmatpush1.bf16.msra.mxu0 %v2608_v43  ;;  %1556 = vmatpush1.bf16.msra.mxu1 %v2611_v44 }
  0x54   :  { %1475 = vmatprep.subr.bf16.mxu0 %v2616_v45  ;;  %1557 = vmatprep.subr.bf16.mxu1 %v2619_v46 }
  0x57   :  { %1476 = vmatpush1.bf16.msra.mxu0 %v2614_v47  ;;  %1558 = vmatpush1.bf16.msra.mxu1 %v2617_v49 }
  0x58   :  { %1477 = vmatprep.subr.bf16.mxu0 %v2622_v50  ;;  %1559 = vmatprep.subr.bf16.mxu1 %v2625_v51 }
  0x5b   :  { %1478 = vmatpush1.bf16.msra.mxu0 %v2620_v52  ;;  %1560 = vmatpush1.bf16.msra.mxu1 %v2623_v54 }
  0x5c   :  { %1479 = vmatprep.subr.bf16.mxu0 %v2628_v55  ;;  %1561 = vmatprep.subr.bf16.mxu1 %v2631_v56 }
  0x5f   :  { %1480 = vmatpush1.bf16.msra.mxu0 %v2626_v57  ;;  %1562 = vmatpush1.bf16.msra.mxu1 %v2629_v58 }
  0x60   :  { %12 = vsyncpa [#allocation5], 0  ;;  %vm3154_vm1 = vcmp.lt.s32.totalorder %v29_v39, 512  ;;  %v2634_v60 = vld [vmem:[%s3703_s3 + $0x1104] ss:$16 sps:$4 sm:$0xff]   ;;  %v2805_v62 = vmov 0.0  }
  0x61   :  { %v2637_v61 = vld [vmem:[%s3703_s3 + $0x110c] ss:$16 sps:$4 sm:$0xff]   ;;  %33 = vst.msk [vmem:[#allocation2] sm:$0xf] %vm3154_vm1, %v2805_v62  ;;  %34 = vst.msk [vmem:[#allocation2 + $0x4] sm:$0xf] %vm3154_vm1, %v2805_v62  ;;  %1481 = vmatprep.subr.bf16.mxu0 %v2634_v60 }
  0x62   :  { %662 = vst.msk [vmem:[#allocation3] sm:$0xf] %vm3154_vm1, %v2805_v62  ;;  %663 = vst.msk [vmem:[#allocation3 + $0x4] sm:$0xf] %vm3154_vm1, %v2805_v62  ;;  %v2632_v39 = vld [vmem:[%s3703_s3 + $0x1100] ss:$16 sps:$4 sm:$0xff]   ;;  %1563 = vmatprep.subr.bf16.mxu1 %v2637_v61 }
  0x63   :  { %v2635_v63 = vld [vmem:[%s3703_s3 + $0x1108] ss:$16 sps:$4 sm:$0xff]   ;;  %1482 = vmatpush1.bf16.msra.mxu0 %v2632_v39  ;;  %v2640_v0 = vld [vmem:[%s3703_s3 + $0x1124] ss:$16 sps:$4 sm:$0xff]   ;;  %v2643_v1 = vld [vmem:[%s3703_s3 + $0x112c] ss:$16 sps:$4 sm:$0xff]  }
  0x64   :  { %1564 = vmatpush1.bf16.msra.mxu1 %v2635_v63  ;;  %v2638_v2 = vld [vmem:[%s3703_s3 + $0x1120] ss:$16 sps:$4 sm:$0xff]   ;;  %v2641_v3 = vld [vmem:[%s3703_s3 + $0x1128] ss:$16 sps:$4 sm:$0xff]   ;;  %1483 = vmatprep.subr.bf16.mxu0 %v2640_v0  ;;  %v2646_v4 = vld [vmem:[%s3703_s3 + $0x1144] ss:$16 sps:$4 sm:$0xff]  }
  0x65   :  { %1565 = vmatprep.subr.bf16.mxu1 %v2643_v1  ;;  %v2644_v5 = vld [vmem:[%s3703_s3 + $0x1140] ss:$16 sps:$4 sm:$0xff]   ;;  %v2647_v6 = vld [vmem:[%s3703_s3 + $0x1148] ss:$16 sps:$4 sm:$0xff]   ;;  %v2649_v7 = vld [vmem:[%s3703_s3 + $0x114c] ss:$16 sps:$4 sm:$0xff]  }
  0x66   :  { %v2650_v8 = vld [vmem:[%s3703_s3 + $0x1160] ss:$16 sps:$4 sm:$0xff]   ;;  %v2652_v9 = vld [vmem:[%s3703_s3 + $0x1164] ss:$16 sps:$4 sm:$0xff]   ;;  %v2653_v10 = vld [vmem:[%s3703_s3 + $0x1168] ss:$16 sps:$4 sm:$0xff]  }
  0x67   :  { %1484 = vmatpush1.bf16.msra.mxu0 %v2638_v2  ;;  %v2655_v11 = vld [vmem:[%s3703_s3 + $0x116c] ss:$16 sps:$4 sm:$0xff]   ;;  %v2658_v12 = vld [vmem:[%s3703_s3 + $0x1184] ss:$16 sps:$4 sm:$0xff]   ;;  %v2656_v14 = vld [vmem:[%s3703_s3 + $0x1180] ss:$16 sps:$4 sm:$0xff]  }
  0x68   :  { %1566 = vmatpush1.bf16.msra.mxu1 %v2641_v3  ;;  %1485 = vmatprep.subr.bf16.mxu0 %v2646_v4  ;;  %v2661_v13 = vld [vmem:[%s3703_s3 + $0x118c] ss:$16 sps:$4 sm:$0xff]   ;;  %v2659_v15 = vld [vmem:[%s3703_s3 + $0x1188] ss:$16 sps:$4 sm:$0xff]   ;;  %v2664_v16 = vld [vmem:[%s3703_s3 + $0x11a4] ss:$16 sps:$4 sm:$0xff]  }
  0x69   :  { %1567 = vmatprep.subr.bf16.mxu1 %v2649_v7  ;;  %v2667_v17 = vld [vmem:[%s3703_s3 + $0x11ac] ss:$16 sps:$4 sm:$0xff]   ;;  %v2662_v18 = vld [vmem:[%s3703_s3 + $0x11a0] ss:$16 sps:$4 sm:$0xff]   ;;  %v2665_v19 = vld [vmem:[%s3703_s3 + $0x11a8] ss:$16 sps:$4 sm:$0xff]  }
  0x6a   :  { %v2670_v20 = vld [vmem:[%s3703_s3 + $0x11c4] ss:$16 sps:$4 sm:$0xff]   ;;  %v2673_v21 = vld [vmem:[%s3703_s3 + $0x11cc] ss:$16 sps:$4 sm:$0xff]   ;;  %v2668_v22 = vld [vmem:[%s3703_s3 + $0x11c0] ss:$16 sps:$4 sm:$0xff]  }
  0x6b   :  { %1486 = vmatpush1.bf16.msra.mxu0 %v2644_v5  ;;  %v2671_v23 = vld [vmem:[%s3703_s3 + $0x11c8] ss:$16 sps:$4 sm:$0xff]   ;;  %v2676_v24 = vld [vmem:[%s3703_s3 + $0x11e4] ss:$16 sps:$4 sm:$0xff]   ;;  %v2679_v25 = vld [vmem:[%s3703_s3 + $0x11ec] ss:$16 sps:$4 sm:$0xff]  }
  0x6c   :  { %1568 = vmatpush1.bf16.msra.mxu1 %v2647_v6  ;;  %1487 = vmatprep.subr.bf16.mxu0 %v2652_v9  ;;  %v2674_v26 = vld [vmem:[%s3703_s3 + $0x11e0] ss:$16 sps:$4 sm:$0xff]   ;;  %v2677_v27 = vld [vmem:[%s3703_s3 + $0x11e8] ss:$16 sps:$4 sm:$0xff]   ;;  %v2682_v28 = vld [vmem:[%s3703_s3 + $0x1204] ss:$16 sps:$4 sm:$0xff]  }
  0x6d   :  { %1569 = vmatprep.subr.bf16.mxu1 %v2655_v11  ;;  %v2685_v29 = vld [vmem:[%s3703_s3 + $0x120c] ss:$16 sps:$4 sm:$0xff]   ;;  %v561_v45 = vld [vmem:[#allocation2] sm:$0xf]  ;;  %v562_v46 = vld [vmem:[#allocation2 + $0x4] sm:$0xf] }
  0x6e   :  { %v607_v52 = vld [vmem:[%s3702_s2] sm:$0xf]  ;;  %v620_v58 = vsub.s32 1, %v2980_v48  ;;  %v616_v60 = vsub.s32 0, %v2980_v48  ;;  %v628_v61 = vsub.s32 3, %v2980_v48  ;;  %v624_v62 = vsub.s32 2, %v2980_v48 }
  0x6f   :  { %1488 = vmatpush1.bf16.msra.mxu0 %v2650_v8  ;;  %vm1927_vm2 = vcmask 9216  }
  0x70   :  { %1570 = vmatpush1.bf16.msra.mxu1 %v2653_v10  ;;  %1489 = vmatprep.subr.bf16.mxu0 %v2658_v12 }
  0x71   :  { %1571 = vmatprep.subr.bf16.mxu1 %v2661_v13 }
  0x73   :  { %1490 = vmatpush1.bf16.msra.mxu0 %v2656_v14 }
  0x74   :  { %1572 = vmatpush1.bf16.msra.mxu1 %v2659_v15  ;;  %1491 = vmatprep.subr.bf16.mxu0 %v2664_v16 }
  0x75   :  { %1573 = vmatprep.subr.bf16.mxu1 %v2667_v17 }
  0x77   :  { %1492 = vmatpush1.bf16.msra.mxu0 %v2662_v18 }
  0x78   :  { %1574 = vmatpush1.bf16.msra.mxu1 %v2665_v19  ;;  %1493 = vmatprep.subr.bf16.mxu0 %v2670_v20 }
  0x79   :  { %1575 = vmatprep.subr.bf16.mxu1 %v2673_v21 }
  0x7b   :  { %1494 = vmatpush1.bf16.msra.mxu0 %v2668_v22 }
  0x7c   :  { %1576 = vmatpush1.bf16.msra.mxu1 %v2671_v23  ;;  %1495 = vmatprep.subr.bf16.mxu0 %v2676_v24 }
  0x7d   :  { %1577 = vmatprep.subr.bf16.mxu1 %v2679_v25 }
  0x7f   :  { %1496 = vmatpush1.bf16.msra.mxu0 %v2674_v26 }
  0x80   :  { %1578 = vmatpush1.bf16.msra.mxu1 %v2677_v27  ;;  %1506 = vmatprep.subr.bf16.mxu0 %v2682_v28 }
  0x81   :  { %1588 = vmatprep.subr.bf16.mxu1 %v2685_v29 }
 0x115   :  { %v513_v30 = vpop.f32.mrb[0].mxu0  ;;  %v554_v31 = vpop.f32.mrb[0].mxu1 }
 0x116   :  { %v515_v32 = vpop.f32.mrb[1].mxu0  ;;  %v556_v33 = vpop.f32.mrb[1].mxu1 }
 0x117   :  { %v567_v34 = vcombine.low %v513_v30, %v515_v32  ;;  %v568_v35 = vcombine.low %v554_v31, %v556_v33  ;;  %v517_v36 = vpop.f32.mrb[2].mxu0  ;;  %v558_v37 = vpop.f32.mrb[2].mxu1  ;;  %v2680_v30 = vld [vmem:[%s3703_s3 + $0x1200] ss:$16 sps:$4 sm:$0xff]   ;;  %v2683_v31 = vld [vmem:[%s3703_s3 + $0x1208] ss:$16 sps:$4 sm:$0xff]  }
 0x118   :  { %v518_v38 = vpop.f32.mrb[3].mxu0  ;;  %v559_v40 = vpop.f32.mrb[3].mxu1  ;;  %v2691_v36 = vld [vmem:[%s3703_s3 + $0x122c] ss:$16 sps:$4 sm:$0xff]  }
 0x119   :  { %v575_v41 = vrot.slane %v567_v34, %v2995_v53  ;;  %v582_v42 = vrot.slane %v568_v35, %v2995_v53  ;;  %v2688_v35 = vld [vmem:[%s3703_s3 + $0x1224] ss:$16 sps:$4 sm:$0xff]   ;;  %v2686_v38 = vld [vmem:[%s3703_s3 + $0x1220] ss:$16 sps:$4 sm:$0xff]   ;;  %v2689_v40 = vld [vmem:[%s3703_s3 + $0x1228] ss:$16 sps:$4 sm:$0xff]  }
 0x11b   :  { %v583_v43 = vcombine.low %v575_v41, %v582_v42  ;;  %v584_v44 = vcombine.high %v575_v41, %v582_v42  ;;  %v2694_v41 = vld [vmem:[%s3703_s3 + $0x1244] ss:$16 sps:$4 sm:$0xff]   ;;  %v2697_v42 = vld [vmem:[%s3703_s3 + $0x124c] ss:$16 sps:$4 sm:$0xff]  }
 0x11d   :  { %v591_v47 = vrot.slane %v583_v43, %v2995_v53  ;;  %v598_v49 = vrot.slane %v584_v44, %v2995_v53  ;;  %v2692_v43 = vld [vmem:[%s3703_s3 + $0x1240] ss:$16 sps:$4 sm:$0xff]   ;;  %v2695_v44 = vld [vmem:[%s3703_s3 + $0x1248] ss:$16 sps:$4 sm:$0xff]  }
 0x11f   :  { %v601_v50 = vadd.f32 %v591_v47, %v561_v45  ;;  %v602_v51 = vadd.f32 %v598_v49, %v562_v46  ;;  %v2700_v45 = vld [vmem:[%s3703_s3 + $0x1264] ss:$16 sps:$4 sm:$0xff]   ;;  %v2703_v46 = vld [vmem:[%s3703_s3 + $0x126c] ss:$16 sps:$4 sm:$0xff]   ;;  %v2698_v47 = vld [vmem:[%s3703_s3 + $0x1260] ss:$16 sps:$4 sm:$0xff]  }
 0x120   :  { %v2701_v49 = vld [vmem:[%s3703_s3 + $0x1268] ss:$16 sps:$4 sm:$0xff]  }
 0x121   :  { %603 = vst.msk [vmem:[#allocation2] sm:$0xf] %vm3154_vm1, %v601_v50  ;;  %604 = vst.msk [vmem:[#allocation2 + $0x4] sm:$0xf] %vm3154_vm1, %v602_v51  ;;  %v2706_v50 = vld [vmem:[%s3703_s3 + $0x1284] ss:$16 sps:$4 sm:$0xff]  }
 0x122   :  { %v2709_v51 = vld [vmem:[%s3703_s3 + $0x128c] ss:$16 sps:$4 sm:$0xff]  }
 0x128   :  { %v605_v54 = vld [vmem:[#allocation2] sm:$0xf]  ;;  %v606_v55 = vld [vmem:[#allocation2 + $0x4] sm:$0xf] }
 0x129   :  { %v608_v56 = vadd.f32 %v607_v52, %v605_v54  ;;  %v609_v57 = vadd.f32 %v607_v52, %v606_v55  ;;  %v2704_v52 = vld [vmem:[%s3703_s3 + $0x1280] ss:$16 sps:$4 sm:$0xff]   ;;  %v2707_v54 = vld [vmem:[%s3703_s3 + $0x1288] ss:$16 sps:$4 sm:$0xff]   ;;  %v2712_v55 = vld [vmem:[%s3703_s3 + $0x12a4] ss:$16 sps:$4 sm:$0xff]  }
 0x12b   :  { %v610_v39 = vmax.f32 %v608_v56, 0.0  ;;  %v611_v63 = vmax.f32 %v609_v57, 0.0  ;;  %v2715_v56 = vld [vmem:[%s3703_s3 + $0x12ac] ss:$16 sps:$4 sm:$0xff]   ;;  %v2710_v57 = vld [vmem:[%s3703_s3 + $0x12a0] ss:$16 sps:$4 sm:$0xff]  }
 0x12d   :  { %v621_v0 = vrot.slane %v610_v39, %v620_v58  ;;  %v637_v1 = vrot.slane %v611_v63, %v620_v58  ;;  %v617_v2 = vrot.slane %v610_v39, %v616_v60  ;;  %v633_v3 = vrot.slane %v611_v63, %v616_v60  ;;  %v2713_v58 = vld [vmem:[%s3703_s3 + $0x12a8] ss:$16 sps:$4 sm:$0xff]   ;;  %v2718_v60 = vld [vmem:[%s3703_s3 + $0x12c4] ss:$16 sps:$4 sm:$0xff]  }
 0x12e   :  { %v629_v4 = vrot.slane %v610_v39, %v628_v61  ;;  %v645_v5 = vrot.slane %v611_v63, %v628_v61  ;;  %v625_v6 = vrot.slane %v610_v39, %v624_v62  ;;  %v641_v7 = vrot.slane %v611_v63, %v624_v62  ;;  %v2721_v61 = vld [vmem:[%s3703_s3 + $0x12cc] ss:$16 sps:$4 sm:$0xff]   ;;  %v2716_v62 = vld [vmem:[%s3703_s3 + $0x12c0] ss:$16 sps:$4 sm:$0xff]   ;;  %v2719_v39 = vld [vmem:[%s3703_s3 + $0x12c8] ss:$16 sps:$4 sm:$0xff]  }
 0x12f   :  { %v655_v8 = vpack.c.bf16 %v621_v0, %v621_v0  ;;  %v659_v9 = vpack.c.bf16 %v637_v1, %v637_v1  ;;  %v654_v10 = vpack.c.bf16 %v617_v2, %v617_v2  ;;  %v658_v11 = vpack.c.bf16 %v633_v3, %v633_v3  ;;  %v2724_v63 = vld [vmem:[%s3703_s3 + $0x12e4] ss:$16 sps:$4 sm:$0xff]   ;;  %v2727_v0 = vld [vmem:[%s3703_s3 + $0x12ec] ss:$16 sps:$4 sm:$0xff]   ;;  %v2722_v1 = vld [vmem:[%s3703_s3 + $0x12e0] ss:$16 sps:$4 sm:$0xff]  }
 0x130   :  { %v657_v12 = vpack.c.bf16 %v629_v4, %v629_v4  ;;  %v661_v13 = vpack.c.bf16 %v645_v5, %v645_v5  ;;  %v656_v14 = vpack.c.bf16 %v625_v6, %v625_v6  ;;  %v660_v15 = vpack.c.bf16 %v641_v7, %v641_v7  ;;  %v2725_v2 = vld [vmem:[%s3703_s3 + $0x12e8] ss:$16 sps:$4 sm:$0xff]   ;;  %v2730_v3 = vld [vmem:[%s3703_s3 + $0x1304] ss:$16 sps:$4 sm:$0xff]   ;;  %v2733_v4 = vld [vmem:[%s3703_s3 + $0x130c] ss:$16 sps:$4 sm:$0xff]  }
 0x131   :  { %v806_v16 = vunpack.c.l.b16 %v659_v9  ;;  %v805_v48 = vunpack.c.l.b16 %v658_v11  ;;  %v802_v19 = vunpack.c.l.b16 %v655_v8  ;;  %v801_v21 = vunpack.c.l.b16 %v654_v10  ;;  %v2728_v5 = vld [vmem:[%s3703_s3 + $0x1300] ss:$16 sps:$4 sm:$0xff]   ;;  %v2731_v6 = vld [vmem:[%s3703_s3 + $0x1308] ss:$16 sps:$4 sm:$0xff]   ;;  %v2736_v7 = vld [vmem:[%s3703_s3 + $0x1324] ss:$16 sps:$4 sm:$0xff]  }
 0x132   :  { %v808_v17 = vunpack.c.l.b16 %v661_v13  ;;  %v807_v18 = vunpack.c.l.b16 %v660_v15  ;;  %v804_v23 = vunpack.c.l.b16 %v657_v12  ;;  %v803_v25 = vunpack.c.l.b16 %v656_v14  ;;  %v2739_v8 = vld [vmem:[%s3703_s3 + $0x132c] ss:$16 sps:$4 sm:$0xff]   ;;  %v2734_v9 = vld [vmem:[%s3703_s3 + $0x1320] ss:$16 sps:$4 sm:$0xff]   ;;  %v2737_v10 = vld [vmem:[%s3703_s3 + $0x1328] ss:$16 sps:$4 sm:$0xff]  }
 0x133   :  { %v811_v20 = vrot.slane %v806_v16, 7  ;;  %v809_v22 = vrot.slane %v805_v48, 7  ;;  %v2742_v11 = vld [vmem:[%s3703_s3 + $0x1344] ss:$16 sps:$4 sm:$0xff]   ;;  %v2745_v12 = vld [vmem:[%s3703_s3 + $0x134c] ss:$16 sps:$4 sm:$0xff]  }
 0x134   :  { %v815_v24 = vrot.slane %v808_v17, 7  ;;  %v813_v26 = vrot.slane %v807_v18, 7  ;;  %v2740_v13 = vld [vmem:[%s3703_s3 + $0x1340] ss:$16 sps:$4 sm:$0xff]   ;;  %v2743_v14 = vld [vmem:[%s3703_s3 + $0x1348] ss:$16 sps:$4 sm:$0xff]  }
 0x135   :  { %v812_v27 = vsel %vm151_vm0, %v811_v20, %v802_v19  ;;  %v810_v28 = vsel %vm151_vm0, %v809_v22, %v801_v21  ;;  %v2748_v15 = vld [vmem:[%s3703_s3 + $0x1364] ss:$16 sps:$4 sm:$0xff]   ;;  %v2751_v16 = vld [vmem:[%s3703_s3 + $0x136c] ss:$16 sps:$4 sm:$0xff]   ;;  %v2746_v48 = vld [vmem:[%s3703_s3 + $0x1360] ss:$16 sps:$4 sm:$0xff]  }
 0x136   :  { %v818_v29 = vpack.c.b16 %v812_v27, %v812_v27  ;;  %v817_v32 = vpack.c.b16 %v810_v28, %v810_v28  ;;  %v816_v33 = vsel %vm151_vm0, %v815_v24, %v804_v23  ;;  %v3293_v34 = vsel %vm151_vm0, %v813_v26, %v803_v25  ;;  %v2749_v17 = vld [vmem:[%s3703_s3 + $0x1368] ss:$16 sps:$4 sm:$0xff]   ;;  %v2754_v18 = vld [vmem:[%s3703_s3 + $0x1384] ss:$16 sps:$4 sm:$0xff]   ;;  %v2757_v19 = vld [vmem:[%s3703_s3 + $0x138c] ss:$16 sps:$4 sm:$0xff]  }
 0x137   :  { %v820_v37 = vpack.c.b16 %v816_v33, %v816_v33  ;;  %v2752_v20 = vld [vmem:[%s3703_s3 + $0x1380] ss:$16 sps:$4 sm:$0xff]   ;;  %v2755_v21 = vld [vmem:[%s3703_s3 + $0x1388] ss:$16 sps:$4 sm:$0xff]   ;;  %v2760_v22 = vld [vmem:[%s3703_s3 + $0x13a4] ss:$16 sps:$4 sm:$0xff]  }
 0x138   :  { %1497 = vmatprep.mubr.bf16.mxu0 %v818_v29  ;;  %1579 = vmatprep.mubr.bf16.mxu1 %v818_v29  ;;  %v2763_v23 = vld [vmem:[%s3703_s3 + $0x13ac] ss:$16 sps:$4 sm:$0xff]   ;;  %v2758_v24 = vld [vmem:[%s3703_s3 + $0x13a0] ss:$16 sps:$4 sm:$0xff]   ;;  %v2761_v25 = vld [vmem:[%s3703_s3 + $0x13a8] ss:$16 sps:$4 sm:$0xff]  }
 0x139   :  { %1498 = vmatmul.mubr.bf16.vlgmr.msra.gmra.mrb[4].mxu0 %v817_v32  ;;  %1580 = vmatmul.mubr.bf16.vlgmr.msra.gmra.mrb[4].mxu1 %v817_v32  ;;  %v2766_v26 = vld [vmem:[%s3703_s3 + $0x13c4] ss:$16 sps:$4 sm:$0xff]   ;;  %v2769_v27 = vld [vmem:[%s3703_s3 + $0x13cc] ss:$16 sps:$4 sm:$0xff]   ;;  %v2764_v28 = vld [vmem:[%s3703_s3 + $0x13c0] ss:$16 sps:$4 sm:$0xff]  }
 0x13a   :  { %1507 = vmatpush1.bf16.msra.mxu0 %v2680_v30  ;;  %1589 = vmatpush1.bf16.msra.mxu1 %v2683_v31  ;;  %v2767_v29 = vld [vmem:[%s3703_s3 + $0x13c8] ss:$16 sps:$4 sm:$0xff]   ;;  %v2772_v30 = vld [vmem:[%s3703_s3 + $0x13e4] ss:$16 sps:$4 sm:$0xff]   ;;  %v2775_v31 = vld [vmem:[%s3703_s3 + $0x13ec] ss:$16 sps:$4 sm:$0xff]  }
 0x13b   :  { %1538 = vmatprep.mubr.bf16.mxu0 %v820_v37  ;;  %1620 = vmatprep.mubr.bf16.mxu1 %v820_v37  ;;  %v2770_v32 = vld [vmem:[%s3703_s3 + $0x13e0] ss:$16 sps:$4 sm:$0xff]   ;;  %v2773_v33 = vld [vmem:[%s3703_s3 + $0x13e8] ss:$16 sps:$4 sm:$0xff]  }
 0x13c   :  { %1508 = vmatprep.subr.bf16.mxu0 %v2688_v35  ;;  %1590 = vmatprep.subr.bf16.mxu1 %v2691_v36  ;;  %v819_v35 = vpack.c.b16 %v3293_v34, %v3293_v34  ;;  %v1700_v36 = vld [vmem:[%s3705_s5 + $0x80] sm:$0xff]  ;;  %v1701_v37 = vld [vmem:[%s3705_s5 + $0x88] sm:$0xff] }
 0x13e   :  { %1509 = vmatpush1.bf16.msra.mxu0 %v2686_v38  ;;  %1591 = vmatpush1.bf16.msra.mxu1 %v2689_v40  ;;  %v2413_v38 = vpack.c.bf16 %v1701_v37, %v1700_v36  ;;  %v1684_v40 = vld [vmem:[%s3705_s5] sm:$0xff] }
 0x13f   :  { %1510 = vmatprep.subr.bf16.mxu0 %v2694_v41  ;;  %1592 = vmatprep.subr.bf16.mxu1 %v2697_v42  ;;  %v1685_v41 = vld [vmem:[%s3705_s5 + $0x8] sm:$0xff]  ;;  %v1732_v42 = vld [vmem:[%s3705_s5 + $0x180] sm:$0xff] }
 0x140   :  { %v2415_v34 = vpack.c.bf16 %v1685_v41, %v1684_v40  ;;  %v1742_v40 = vld [vmem:[%s3705_s5 + $0x1d0] sm:$0xff]  ;;  %v1743_v41 = vld [vmem:[%s3705_s5 + $0x1d8] sm:$0xff] }
 0x142   :  { %1511 = vmatpush1.bf16.msra.mxu0 %v2692_v43  ;;  %1593 = vmatpush1.bf16.msra.mxu1 %v2695_v44  ;;  %v1733_v43 = vld [vmem:[%s3705_s5 + $0x188] sm:$0xff] }
 0x143   :  { %1512 = vmatprep.subr.bf16.mxu0 %v2700_v45  ;;  %1594 = vmatprep.subr.bf16.mxu1 %v2703_v46  ;;  %v2445_v44 = vpack.c.bf16 %v1733_v43, %v1732_v42  ;;  %v1716_v45 = vld [vmem:[%s3705_s5 + $0x100] sm:$0xff]  ;;  %v1717_v46 = vld [vmem:[%s3705_s5 + $0x108] sm:$0xff]  ;;  %v2465_v42 = vpack.c.bf16 %v1743_v41, %v1742_v40  ;;  %v1726_v43 = vld [vmem:[%s3705_s5 + $0x150] sm:$0xff] }
 0x146   :  { %1513 = vmatpush1.bf16.msra.mxu0 %v2698_v47  ;;  %1595 = vmatpush1.bf16.msra.mxu1 %v2701_v49  ;;  %v2447_v47 = vpack.c.bf16 %v1717_v46, %v1716_v45  ;;  %v1702_v49 = vld [vmem:[%s3705_s5 + $0x90] sm:$0xff]  ;;  %v1712_v45 = vld [vmem:[%s3705_s5 + $0xe0] sm:$0xff]  ;;  %v1713_v46 = vld [vmem:[%s3705_s5 + $0xe8] sm:$0xff] }
 0x147   :  { %1514 = vmatprep.subr.bf16.mxu0 %v2706_v50  ;;  %1596 = vmatprep.subr.bf16.mxu1 %v2709_v51  ;;  %v1703_v50 = vld [vmem:[%s3705_s5 + $0x98] sm:$0xff] }
 0x148   :  { %v2417_v51 = vpack.c.bf16 %v1703_v50, %v1702_v49  ;;  %v1697_v49 = vld [vmem:[%s3705_s5 + $0x68] sm:$0xff]  ;;  %v2437_v50 = vpack.c.bf16 %v1713_v46, %v1712_v45 }
 0x14a   :  { %1515 = vmatpush1.bf16.msra.mxu0 %v2704_v52  ;;  %1597 = vmatpush1.bf16.msra.mxu1 %v2707_v54  ;;  %v1686_v52 = vld [vmem:[%s3705_s5 + $0x10] sm:$0xff]  ;;  %v1687_v54 = vld [vmem:[%s3705_s5 + $0x18] sm:$0xff] }
 0x14b   :  { %1516 = vmatprep.subr.bf16.mxu0 %v2712_v55  ;;  %1598 = vmatprep.subr.bf16.mxu1 %v2715_v56  ;;  %v2419_v55 = vpack.c.bf16 %v1687_v54, %v1686_v52  ;;  %v1734_v56 = vld [vmem:[%s3705_s5 + $0x190] sm:$0xff]  ;;  %v1745_v52 = vld [vmem:[%s3705_s5 + $0x1e8] sm:$0xff] }
 0x14e   :  { %1517 = vmatpush1.bf16.msra.mxu0 %v2710_v57  ;;  %1599 = vmatpush1.bf16.msra.mxu1 %v2713_v58  ;;  %v1735_v57 = vld [vmem:[%s3705_s5 + $0x198] sm:$0xff]  ;;  %v1718_v58 = vld [vmem:[%s3705_s5 + $0x110] sm:$0xff] }
 0x14f   :  { %1518 = vmatprep.subr.bf16.mxu0 %v2718_v60  ;;  %1600 = vmatprep.subr.bf16.mxu1 %v2721_v61  ;;  %v1719_v60 = vld [vmem:[%s3705_s5 + $0x118] sm:$0xff]  ;;  %v2449_v61 = vpack.c.bf16 %v1735_v57, %v1734_v56 }
 0x150   :  { %v1715_v56 = vld [vmem:[%s3705_s5 + $0xf8] sm:$0xff] }
 0x152   :  { %1519 = vmatpush1.bf16.msra.mxu0 %v2716_v62  ;;  %1601 = vmatpush1.bf16.msra.mxu1 %v2719_v39  ;;  %v2451_v62 = vpack.c.bf16 %v1719_v60, %v1718_v58  ;;  %v1704_v39 = vld [vmem:[%s3705_s5 + $0xa0] sm:$0xff] }
 0x153   :  { %1520 = vmatprep.subr.bf16.mxu0 %v2724_v63  ;;  %1602 = vmatprep.subr.bf16.mxu1 %v2727_v0  ;;  %v1705_v63 = vld [vmem:[%s3705_s5 + $0xa8] sm:$0xff]  ;;  %v1728_v60 = vld [vmem:[%s3705_s5 + $0x160] sm:$0xff] }
 0x154   :  { %v2421_v0 = vpack.c.bf16 %v1705_v63, %v1704_v39  ;;  %v1699_v63 = vld [vmem:[%s3705_s5 + $0x78] sm:$0xff] }
 0x156   :  { %1521 = vmatpush1.bf16.msra.mxu0 %v2722_v1  ;;  %1603 = vmatpush1.bf16.msra.mxu1 %v2725_v2  ;;  %v1688_v1 = vld [vmem:[%s3705_s5 + $0x20] sm:$0xff]  ;;  %v1689_v2 = vld [vmem:[%s3705_s5 + $0x28] sm:$0xff] }
 0x157   :  { %1522 = vmatprep.subr.bf16.mxu0 %v2730_v3  ;;  %1604 = vmatprep.subr.bf16.mxu1 %v2733_v4  ;;  %v2423_v3 = vpack.c.bf16 %v1689_v2, %v1688_v1  ;;  %v1736_v4 = vld [vmem:[%s3705_s5 + $0x1a0] sm:$0xff]  ;;  %v1747_v1 = vld [vmem:[%s3705_s5 + $0x1f8] sm:$0xff] }
 0x15a   :  { %1523 = vmatpush1.bf16.msra.mxu0 %v2728_v5  ;;  %1605 = vmatpush1.bf16.msra.mxu1 %v2731_v6  ;;  %v1737_v5 = vld [vmem:[%s3705_s5 + $0x1a8] sm:$0xff] }
 0x15b   :  { %1524 = vmatprep.subr.bf16.mxu0 %v2736_v7  ;;  %1606 = vmatprep.subr.bf16.mxu1 %v2739_v8  ;;  %v2453_v6 = vpack.c.bf16 %v1737_v5, %v1736_v4  ;;  %v1720_v7 = vld [vmem:[%s3705_s5 + $0x120] sm:$0xff]  ;;  %v1721_v8 = vld [vmem:[%s3705_s5 + $0x128] sm:$0xff]  ;;  %v1730_v5 = vld [vmem:[%s3705_s5 + $0x170] sm:$0xff] }
 0x15e   :  { %1525 = vmatpush1.bf16.msra.mxu0 %v2734_v9  ;;  %1607 = vmatpush1.bf16.msra.mxu1 %v2737_v10  ;;  %v2455_v9 = vpack.c.bf16 %v1721_v8, %v1720_v7  ;;  %v1706_v10 = vld [vmem:[%s3705_s5 + $0xb0] sm:$0xff] }
 0x15f   :  { %1526 = vmatprep.subr.bf16.mxu0 %v2742_v11  ;;  %1608 = vmatprep.subr.bf16.mxu1 %v2745_v12  ;;  %v1707_v11 = vld [vmem:[%s3705_s5 + $0xb8] sm:$0xff] }
 0x160   :  { %v2425_v12 = vpack.c.bf16 %v1707_v11, %v1706_v10 }
 0x162   :  { %1527 = vmatpush1.bf16.msra.mxu0 %v2740_v13  ;;  %1609 = vmatpush1.bf16.msra.mxu1 %v2743_v14  ;;  %v1690_v13 = vld [vmem:[%s3705_s5 + $0x30] sm:$0xff]  ;;  %v1691_v14 = vld [vmem:[%s3705_s5 + $0x38] sm:$0xff] }
 0x163   :  { %1528 = vmatprep.subr.bf16.mxu0 %v2748_v15  ;;  %1610 = vmatprep.subr.bf16.mxu1 %v2751_v16  ;;  %v2427_v15 = vpack.c.bf16 %v1691_v14, %v1690_v13  ;;  %v1738_v16 = vld [vmem:[%s3705_s5 + $0x1b0] sm:$0xff] }
 0x166   :  { %1529 = vmatpush1.bf16.msra.mxu0 %v2746_v48  ;;  %1611 = vmatpush1.bf16.msra.mxu1 %v2749_v17  ;;  %v1739_v48 = vld [vmem:[%s3705_s5 + $0x1b8] sm:$0xff]  ;;  %v1722_v17 = vld [vmem:[%s3705_s5 + $0x130] sm:$0xff] }
 0x167   :  { %1530 = vmatprep.subr.bf16.mxu0 %v2754_v18  ;;  %1612 = vmatprep.subr.bf16.mxu1 %v2757_v19  ;;  %v2457_v18 = vpack.c.bf16 %v1739_v48, %v1738_v16  ;;  %v1723_v19 = vld [vmem:[%s3705_s5 + $0x138] sm:$0xff] }
 0x16a   :  { %1531 = vmatpush1.bf16.msra.mxu0 %v2752_v20  ;;  %1613 = vmatpush1.bf16.msra.mxu1 %v2755_v21  ;;  %v1708_v20 = vld [vmem:[%s3705_s5 + $0xc0] sm:$0xff]  ;;  %v1709_v21 = vld [vmem:[%s3705_s5 + $0xc8] sm:$0xff] }
 0x16b   :  { %1532 = vmatprep.subr.bf16.mxu0 %v2760_v22  ;;  %1614 = vmatprep.subr.bf16.mxu1 %v2763_v23  ;;  %v2459_v22 = vpack.c.bf16 %v1723_v19, %v1722_v17  ;;  %v2429_v23 = vpack.c.bf16 %v1709_v21, %v1708_v20  ;;  %v1629_v21 = vld [vmem:[#allocation3] sm:$0xf] }
 0x16e   :  { %1533 = vmatpush1.bf16.msra.mxu0 %v2758_v24  ;;  %1615 = vmatpush1.bf16.msra.mxu1 %v2761_v25  ;;  %v1692_v24 = vld [vmem:[%s3705_s5 + $0x40] sm:$0xff]  ;;  %v1693_v25 = vld [vmem:[%s3705_s5 + $0x48] sm:$0xff] }
 0x16f   :  { %1534 = vmatprep.subr.bf16.mxu0 %v2766_v26  ;;  %1616 = vmatprep.subr.bf16.mxu1 %v2769_v27  ;;  %v1740_v26 = vld [vmem:[%s3705_s5 + $0x1c0] sm:$0xff]  ;;  %v2431_v27 = vpack.c.bf16 %v1693_v25, %v1692_v24 }
 0x172   :  { %1535 = vmatpush1.bf16.msra.mxu0 %v2764_v28  ;;  %1617 = vmatpush1.bf16.msra.mxu1 %v2767_v29  ;;  %v1741_v28 = vld [vmem:[%s3705_s5 + $0x1c8] sm:$0xff]  ;;  %v1724_v29 = vld [vmem:[%s3705_s5 + $0x140] sm:$0xff] }
 0x173   :  { %1536 = vmatprep.subr.bf16.mxu0 %v2772_v30  ;;  %1618 = vmatprep.subr.bf16.mxu1 %v2775_v31  ;;  %v1725_v30 = vld [vmem:[%s3705_s5 + $0x148] sm:$0xff]  ;;  %v2461_v31 = vpack.c.bf16 %v1741_v28, %v1740_v26 }
 0x174   :  { %v2463_v36 = vpack.c.bf16 %v1725_v30, %v1724_v29 }
 0x176   :  { %1537 = vmatpush1.bf16.msra.mxu0 %v2770_v32  ;;  %1619 = vmatpush1.bf16.msra.mxu1 %v2773_v33  ;;  %v1710_v32 = vld [vmem:[%s3705_s5 + $0xd0] sm:$0xff]  ;;  %v1711_v33 = vld [vmem:[%s3705_s5 + $0xd8] sm:$0xff] }
 0x177   :  { %2414 = vmatprep.subr.bf16.mxu0 %v2413_v38  ;;  %2446 = vmatprep.subr.bf16.mxu1 %v2445_v44  ;;  %v2433_v37 = vpack.c.bf16 %v1711_v33, %v1710_v32  ;;  %v1695_v38 = vld [vmem:[%s3705_s5 + $0x58] sm:$0xff] }
 0x178   :  { %v1727_v44 = vld [vmem:[%s3705_s5 + $0x158] sm:$0xff] }
 0x179   :  { %1539 = vmatmul.mubr.bf16.vlgmr.msra.gmra.mrb[4].mxu0 %v819_v35  ;;  %1621 = vmatmul.mubr.bf16.vlgmr.msra.gmra.mrb[4].mxu1 %v819_v35  ;;  %v1694_v35 = vld [vmem:[%s3705_s5 + $0x50] sm:$0xff]  ;;  %v2467_v54 = vpack.c.bf16 %v1727_v44, %v1726_v43 }
 0x17a   :  { %2416 = vmatpush3.bf16.msra.mxu0 %v2415_v34  ;;  %2448 = vmatpush3.bf16.msra.mxu1 %v2447_v47  ;;  %v2435_v34 = vpack.c.bf16 %v1695_v38, %v1694_v35  ;;  %v1696_v47 = vld [vmem:[%s3705_s5 + $0x60] sm:$0xff] }
 0x17b   :  { %2418 = vmatprep.subr.bf16.mxu0 %v2417_v51  ;;  %2450 = vmatprep.subr.bf16.mxu1 %v2449_v61  ;;  %v1744_v51 = vld [vmem:[%s3705_s5 + $0x1e0] sm:$0xff]  ;;  %v2439_v57 = vpack.c.bf16 %v1697_v49, %v1696_v47  ;;  %v1729_v61 = vld [vmem:[%s3705_s5 + $0x168] sm:$0xff] }
 0x17c   :  { %v2469_v58 = vpack.c.bf16 %v1745_v52, %v1744_v51  ;;  %v2471_v2 = vpack.c.bf16 %v1729_v61, %v1728_v60 }
 0x17e   :  { %2420 = vmatpush3.bf16.msra.mxu0 %v2419_v55  ;;  %2452 = vmatpush3.bf16.msra.mxu1 %v2451_v62  ;;  %v1714_v55 = vld [vmem:[%s3705_s5 + $0xf0] sm:$0xff] }
 0x17f   :  { %2422 = vmatprep.subr.bf16.mxu0 %v2421_v0  ;;  %2454 = vmatprep.subr.bf16.mxu1 %v2453_v6  ;;  %v1698_v62 = vld [vmem:[%s3705_s5 + $0x70] sm:$0xff]  ;;  %v2441_v39 = vpack.c.bf16 %v1715_v56, %v1714_v55  ;;  %v1731_v6 = vld [vmem:[%s3705_s5 + $0x178] sm:$0xff] }
 0x180   :  { %v1746_v0 = vld [vmem:[%s3705_s5 + $0x1f0] sm:$0xff]  ;;  %v2475_v7 = vpack.c.bf16 %v1731_v6, %v1730_v5 }
 0x181   :  { %v2473_v4 = vpack.c.bf16 %v1747_v1, %v1746_v0 }
 0x182   :  { %2424 = vmatpush3.bf16.msra.mxu0 %v2423_v3  ;;  %2456 = vmatpush3.bf16.msra.mxu1 %v2455_v9  ;;  %v2443_v3 = vpack.c.bf16 %v1699_v63, %v1698_v62 }
 0x183   :  { %2426 = vmatprep.subr.bf16.mxu0 %v2425_v12  ;;  %2458 = vmatprep.subr.bf16.mxu1 %v2457_v18 }
 0x186   :  { %2428 = vmatpush3.bf16.msra.mxu0 %v2427_v15  ;;  %2460 = vmatpush3.bf16.msra.mxu1 %v2459_v22  ;;  %v1630_v22 = vld [vmem:[#allocation3 + $0x4] sm:$0xf] }
 0x187   :  { %2430 = vmatprep.subr.bf16.mxu0 %v2429_v23  ;;  %2462 = vmatprep.subr.bf16.mxu1 %v2461_v31 }
 0x18a   :  { %2432 = vmatpush3.bf16.msra.mxu0 %v2431_v27  ;;  %2464 = vmatpush3.bf16.msra.mxu1 %v2463_v36  ;;  %v1675_v27 = vld [vmem:[%s3704_s4] sm:$0xf] }
 0x18b   :  { %2434 = vmatprep.subr.bf16.mxu0 %v2433_v37  ;;  %2466 = vmatprep.subr.bf16.mxu1 %v2465_v42  ;;  %v2342_v42 = vld [vmem:[%s3706_s6] ss:$0 sm:$0xff]  ;;  %s2806_s6 = smov [#allocation4]  }
 0x18c   :  { %s1948_s0 = sshll.u32 %s2806_s6, 4  ;;  %s1949_s0 = int_to_ptr.vmem [resolvable:$true] %s1948_s0 }
 0x18d   :  { %s2780_s15 = scalar_lea.vmem %s1949_s0, 32  ;;  %p2785_p1 = scmp.lt.s32.totalorder %s1949_s0, %s1949_s0 }
 0x18e   :  { %2436 = vmatpush3.bf16.msra.mxu0 %v2435_v34  ;;  %2468 = vmatpush3.bf16.msra.mxu1 %v2467_v54  ;;  %p2781_p0 = scmp.ne.s32.totalorder %s1949_s0, %s2780_s15  ;;  %p2786_p2 = scmp.lt.s32.totalorder %s2780_s15, %s2780_s15 }
 0x18f   :  { %2438 = vmatprep.subr.bf16.mxu0 %v2437_v50  ;;  %2470 = vmatprep.subr.bf16.mxu1 %v2469_v58 }
 0x190   :  { %p2787_p3 = por %p2786_p2, %p2785_p1 }
 0x192   :  { %2440 = vmatpush3.bf16.msra.mxu0 %v2439_v57  ;;  %2472 = vmatpush3.bf16.msra.mxu1 %v2471_v2  ;;  %p2788_p4 = pnand %p2787_p3, %p2781_p0 }
 0x193   :  { %2442 = vmatprep.subr.bf16.mxu0 %v2441_v39  ;;  %2474 = vmatprep.subr.bf16.mxu1 %v2473_v4 }
 0x196   :  { %2444 = vmatpush3.bf16.msra.mxu0 %v2443_v3  ;;  %2476 = vmatpush3.bf16.msra.mxu1 %v2475_v7 }
 0x24c   :  { %v1540_v8 = vpop.f32.mrb[4].mxu0  ;;  %v1622_v9 = vpop.f32.mrb[4].mxu1 }
 0x24d   :  { %v1542_v10 = vpop.f32.mrb[5].mxu0  ;;  %v1624_v11 = vpop.f32.mrb[5].mxu1 }
 0x24e   :  { %v1635_v12 = vcombine.low %v1540_v8, %v1542_v10  ;;  %v1636_v13 = vcombine.low %v1622_v9, %v1624_v11  ;;  %v1544_v14 = vpop.f32.mrb[6].mxu0  ;;  %v1626_v15 = vpop.f32.mrb[6].mxu1 }
 0x24f   :  { %v1545_v16 = vpop.f32.mrb[7].mxu0  ;;  %v1627_v48 = vpop.f32.mrb[7].mxu1 }
 0x250   :  { %v1643_v17 = vrot.slane %v1635_v12, %v2995_v53  ;;  %v1650_v18 = vrot.slane %v1636_v13, %v2995_v53 }
 0x252   :  { %v1651_v19 = vcombine.low %v1643_v17, %v1650_v18  ;;  %v1652_v20 = vcombine.high %v1643_v17, %v1650_v18 }
 0x254   :  { %v1659_v23 = vrot.slane %v1651_v19, %v2995_v53  ;;  %v1666_v24 = vrot.slane %v1652_v20, %v2995_v53 }
 0x256   :  { %v1669_v25 = vadd.f32 %v1659_v23, %v1629_v21  ;;  %v1670_v26 = vadd.f32 %v1666_v24, %v1630_v22 }
 0x258   :  { %1671 = vst.msk [vmem:[#allocation3] sm:$0xf] %vm3154_vm1, %v1669_v25  ;;  %1672 = vst.msk [vmem:[#allocation3 + $0x4] sm:$0xf] %vm3154_vm1, %v1670_v26 }
 0x25f   :  { %v1673_v28 = vld [vmem:[#allocation3] sm:$0xf]  ;;  %v1674_v29 = vld [vmem:[#allocation3 + $0x4] sm:$0xf] }
 0x260   :  { %v1676_v30 = vadd.f32 %v1675_v27, %v1673_v28  ;;  %v1677_v31 = vadd.f32 %v1675_v27, %v1674_v29 }
 0x262   :  { %v1678_v32 = vmax.f32 %v1676_v30, 0.0  ;;  %v1679_v33 = vmax.f32 %v1677_v31, 0.0 }
 0x264   :  { %v1757_v35 = vcombine.low %v1678_v32, %v1679_v33 }
 0x266   :  { %v1764_v36 = vrot.slane %v1757_v35, %v2995_v53 }
 0x268   :  { %v1765_v37 = vcombine.high %v1764_v36, %v1764_v36  ;;  %v1772_v38 = vrot.slane %v1764_v36, %v2995_v53 }
 0x26a   :  { %v1779_v40 = vrot.slane %v1765_v37, %v2995_v53  ;;  %v1780_v41 = vcombine.high %v1772_v38, %v1772_v38 }
 0x26c   :  { %1850 = vmatprep.mubr.f32.mxu0 %v1779_v40  ;;  %v1781_v59 = vcombine.high %v1779_v40, %v1779_v40 }
 0x26d   :  { %1851 = vmatmul.mubr.f32.vlgmr.msra.gmra.mrb[8].mxu0 %v1772_v38 }
 0x26e   :  { %1920 = vmatprep.mubr.f32.mxu1 %v1781_v59 }
 0x26f   :  { %1921 = vmatmul.mubr.f32.vlgmr.msra.gmra.mrb[8].mxu1 %v1780_v41 }
 0x340   :  { %v2375_v34 = vpop.f32.mrb[8].mxu0 }
 0x341   :  { %v2376_v43 = vpop.f32.mrb[9].mxu0 }
 0x342   :  { %v2377_v44 = vadd.f32 %v2376_v43, %v2375_v34  ;;  %v2410_v45 = vpop.f32.mrb[8].mxu1 }
 0x343   :  { %v2411_v46 = vpop.f32.mrb[9].mxu1 }
 0x344   :  { %v1853_v47 = vadd.f32 %v2377_v44, %v2342_v42  ;;  %v2412_v49 = vadd.f32 %v2411_v46, %v2410_v45 }
 0x346   :  { %v1923_v50 = vadd.f32 %v2412_v49, %v1853_v47 }
 0x348   :  { %v1926_v53 = vmul.f32 %v1923_v50, %v1923_v50 }
 0x34a   :  { %v1928_v51 = vsel %vm1927_vm2, %v1926_v53, 0.0 }
 0x34b   :  { %1929 = vadd.xlane.f32.xlu0 %v1928_v51 }
 0x3d8   :  { %v1930_v52 = vpop.xlane.xlu0 %1929 }
 0x3d9   :  { %2776 = vrsqrt.f32 %v1930_v52  ;;  %vm1933_vm3 = vcmp.eq.f32.partialorder %v1930_v52, inf  ;;  %v1936_v56 = vand.u32 2147483648, %v1930_v52  ;;  %vm1935_vm4 = vcmp.eq.f32.partialorder %v1930_v52, 0.0 }
 0x3e3   :  { %v2777_v54 = vpop.eup %2776 }
 0x3e4   :  { %v1932_v55 = vmul.f32 %v2777_v54, %v1930_v52 }
 0x3e6   :  { %v1934_v57 = vsel %vm1933_vm3, %v1930_v52, %v1932_v55 }
 0x3e7   :  { %v1937_v58 = vsel %vm1935_vm4, %v1936_v56, %v1934_v57 }
 0x3e8   :  { %v1938_v60 = vmax.f32 %v1937_v58, 1e-12 }
 0x3ea   :  { %2778 = vrcp.f32 %v1938_v60 }
 0x3f4   :  { %v2779_v61 = vpop.eup %2778 }
 0x3f5   :  { %v1940_v62 = vmul.f32 %v2779_v61, %v1923_v50 }
 0x3f7   :  { %1941 = vst.msk [vmem:[#allocation4] sm:$0x3] %vm1927_vm2, %v1940_v62 }
 0x3f8   :  { %2791 = shalt.err (!%p2788_p4)
}
 0x3f9   :  { %s2792_s18 = scalar_lea.hbm %s3707_s7, 32 }
 0x3fa   :  { %p2793_p5 = scmp.ne.s32.totalorder %s3707_s7, %s2792_s18  ;;  %p2796_p6 = scmp.lt.u32.totalorder %s2792_s18, %s3707_s7 }
 0x3fc   :  { %p2798_p7 = pnand %p2796_p6, %p2793_p5 }
 0x3fe   :  { %2801 = shalt.err (!%p2798_p7)
}
 0x3ff   :  { %1951 = dma.vmem_to_hbm [thread:$0]  %s1949_s0, 32, %s3707_s7, [#allocation5]  }
 0x400   :  { %2802 = dma.done.wait [#allocation5], 32  }
 0x401   :  { %2803 = vsyncadd [#allocation5], 4294967264 }
 0x402   :  { %1955 = vsyncpa [#allocation5], 1 }

// kernel: encoder_forward.8
= control target key start
LH: loop header
LB: loop body
LE: loop exit
PB: predicated region body
PF: predicated region fallthrough
CT: control target
= control target key end

     0   :  { %8 = vsyncpa [#allocation3], 0  ;;  %s2750_s12 = smov [#allocation2]   ;;  %s2868_s0 = inlined_call_operand.vmem [shape: bf16[2,2048], index: 0, kind: input, shape index: {}]   ;;  %s2869_s1 = inlined_call_operand.hbm [shape: bf16[2048,256], index: 1, kind: input, shape index: {}]   ;;  %s2870_s2 = inlined_call_operand.vmem [shape: f32[1,256], index: 2, kind: input, shape index: {}]   ;;  %s2871_s3 = inlined_call_operand.vmem [shape: bf16[2,256], index: 3, kind: output, shape index: {}]  }
   0x1   :  { %s16_s13 = sshll.u32 %s2750_s12, 4  ;;  %s2726_s16 = scalar_lea.hbm %s2869_s1, 32768  ;;  %s17_s13 = int_to_ptr.vmem [resolvable:$true] %s16_s13 }
   0x2   :  { %p2727_p0 = scmp.ne.s32.totalorder %s2869_s1, %s2726_s16  ;;  %p2730_p1 = scmp.lt.u32.totalorder %s2726_s16, %s2869_s1 }
   0x4   :  { %p2732_p2 = pnand %p2730_p1, %p2727_p0 }
   0x6   :  { %2735 = shalt.err (!%p2732_p2)
}
   0x7   :  { %s2736_s21 = scalar_lea.vmem %s17_s13, 32768  ;;  %p2741_p4 = scmp.lt.s32.totalorder %s17_s13, %s17_s13 }
   0x8   :  { %p2737_p3 = scmp.ne.s32.totalorder %s17_s13, %s2736_s21  ;;  %p2742_p5 = scmp.lt.s32.totalorder %s2736_s21, %s2736_s21 }
   0xa   :  { %p2743_p6 = por %p2742_p5, %p2741_p4 }
   0xc   :  { %p2744_p7 = pnand %p2743_p6, %p2737_p3 }
   0xe   :  { %2747 = shalt.err (!%p2744_p7)
}
   0xf   :  { %s2751_s22 = smov 128   ;;  %s2752_s23 = smov 8  }
  0x10   :  { %22 = dma.hbm_to_vmem [thread:$0]  %s2869_s1, 32768, %s17_s13, [#allocation3], %s2751_s22, %s2751_s22, %s2752_s23  }
  0x11   :  { %2748 = dma.done.wait [#allocation3], 32768  }
  0x12   :  { %2749 = vsyncadd [#allocation3], 4294934528  ;;  %v2340_v0 = vld [vmem:[#allocation2 + $0x4] ss:$8 sps:$4 sm:$0xff]   ;;  %v2344_v2 = vld [vmem:[#allocation2] ss:$8 sps:$4 sm:$0xff]   ;;  %v288_v36 = vlaneseq }
  0x13   :  { %v2342_v1 = vld [vmem:[#allocation2 + $0x404] ss:$8 sps:$4 sm:$0xff]   ;;  %1694 = vmatprep.subr.bf16.mxu1 %v2340_v0  ;;  %v2345_v3 = vld [vmem:[#allocation2 + $0x400] ss:$8 sps:$4 sm:$0xff]   ;;  %v2346_v4 = vld [vmem:[#allocation2 + $0x14] ss:$8 sps:$4 sm:$0xff]  }
  0x14   :  { %1858 = vmatprep.subr.bf16.mxu0 %v2342_v1  ;;  %1695 = vmatpush1.bf16.msra.mxu1 %v2344_v2  ;;  %v2348_v5 = vld [vmem:[#allocation2 + $0x414] ss:$8 sps:$4 sm:$0xff]   ;;  %v2350_v6 = vld [vmem:[#allocation2 + $0x10] ss:$8 sps:$4 sm:$0xff]   ;;  %v2352_v8 = vld [vmem:[#allocation2 + $0x24] ss:$8 sps:$4 sm:$0xff]  }
  0x15   :  { %1859 = vmatpush1.bf16.msra.mxu0 %v2345_v3  ;;  %1696 = vmatprep.subr.bf16.mxu1 %v2346_v4  ;;  %v2351_v7 = vld [vmem:[#allocation2 + $0x410] ss:$8 sps:$4 sm:$0xff]   ;;  %v2354_v9 = vld [vmem:[#allocation2 + $0x424] ss:$8 sps:$4 sm:$0xff]   ;;  %v2356_v10 = vld [vmem:[#allocation2 + $0x20] ss:$8 sps:$4 sm:$0xff]  }
  0x16   :  { %1860 = vmatprep.subr.bf16.mxu0 %v2348_v5  ;;  %v2357_v11 = vld [vmem:[#allocation2 + $0x420] ss:$8 sps:$4 sm:$0xff]   ;;  %v2358_v12 = vld [vmem:[#allocation2 + $0x34] ss:$8 sps:$4 sm:$0xff]   ;;  %v2362_v14 = vld [vmem:[#allocation2 + $0x30] ss:$8 sps:$4 sm:$0xff]  }
  0x17   :  { %v2360_v13 = vld [vmem:[#allocation2 + $0x434] ss:$8 sps:$4 sm:$0xff]   ;;  %v2363_v15 = vld [vmem:[#allocation2 + $0x430] ss:$8 sps:$4 sm:$0xff]   ;;  %v2364_v16 = vld [vmem:[#allocation2 + $0x44] ss:$8 sps:$4 sm:$0xff]  }
  0x18   :  { %1697 = vmatpush1.bf16.msra.mxu1 %v2350_v6  ;;  %v2366_v17 = vld [vmem:[#allocation2 + $0x444] ss:$8 sps:$4 sm:$0xff]   ;;  %v2368_v18 = vld [vmem:[#allocation2 + $0x40] ss:$8 sps:$4 sm:$0xff]   ;;  %v2370_v20 = vld [vmem:[#allocation2 + $0x54] ss:$8 sps:$4 sm:$0xff]  }
  0x19   :  { %1861 = vmatpush1.bf16.msra.mxu0 %v2351_v7  ;;  %1698 = vmatprep.subr.bf16.mxu1 %v2352_v8  ;;  %v2369_v19 = vld [vmem:[#allocation2 + $0x440] ss:$8 sps:$4 sm:$0xff]   ;;  %v2372_v21 = vld [vmem:[#allocation2 + $0x454] ss:$8 sps:$4 sm:$0xff]   ;;  %v2374_v22 = vld [vmem:[#allocation2 + $0x50] ss:$8 sps:$4 sm:$0xff]  }
  0x1a   :  { %1862 = vmatprep.subr.bf16.mxu0 %v2354_v9  ;;  %v2375_v23 = vld [vmem:[#allocation2 + $0x450] ss:$8 sps:$4 sm:$0xff]   ;;  %v2376_v24 = vld [vmem:[#allocation2 + $0x64] ss:$8 sps:$4 sm:$0xff]   ;;  %v2380_v26 = vld [vmem:[#allocation2 + $0x60] ss:$8 sps:$4 sm:$0xff]  }
  0x1b   :  { %v2378_v25 = vld [vmem:[#allocation2 + $0x464] ss:$8 sps:$4 sm:$0xff]   ;;  %v2381_v27 = vld [vmem:[#allocation2 + $0x460] ss:$8 sps:$4 sm:$0xff]   ;;  %v2382_v28 = vld [vmem:[#allocation2 + $0x74] ss:$8 sps:$4 sm:$0xff]  }
  0x1c   :  { %1699 = vmatpush1.bf16.msra.mxu1 %v2356_v10  ;;  %v2384_v29 = vld [vmem:[#allocation2 + $0x474] ss:$8 sps:$4 sm:$0xff]   ;;  %v2386_v30 = vld [vmem:[#allocation2 + $0x70] ss:$8 sps:$4 sm:$0xff]   ;;  %v2388_v32 = vld [vmem:[#allocation2 + $0x84] ss:$8 sps:$4 sm:$0xff]  }
  0x1d   :  { %1863 = vmatpush1.bf16.msra.mxu0 %v2357_v11  ;;  %1700 = vmatprep.subr.bf16.mxu1 %v2358_v12  ;;  %v2387_v31 = vld [vmem:[#allocation2 + $0x470] ss:$8 sps:$4 sm:$0xff]   ;;  %v2390_v33 = vld [vmem:[#allocation2 + $0x484] ss:$8 sps:$4 sm:$0xff]   ;;  %v2392_v34 = vld [vmem:[#allocation2 + $0x80] ss:$8 sps:$4 sm:$0xff]  }
  0x1e   :  { %1864 = vmatprep.subr.bf16.mxu0 %v2360_v13  ;;  %v2393_v35 = vld [vmem:[#allocation2 + $0x480] ss:$8 sps:$4 sm:$0xff]   ;;  %v2753_v37 = vmov 1966171168   ;;  %v2394_v39 = vld [vmem:[#allocation2 + $0x94] ss:$8 sps:$4 sm:$0xff]  }
  0x1f   :  { %v302_v38 = vunpack.c.l.s4 %v2753_v37  ;;  %v2396_v40 = vld [vmem:[#allocation2 + $0x494] ss:$8 sps:$4 sm:$0xff]   ;;  %v2398_v41 = vld [vmem:[#allocation2 + $0x90] ss:$8 sps:$4 sm:$0xff]   ;;  %v2786_v42 = vshrl.u32 %v288_v36, 7  ;;  %v2794_v52 = vld [vmem:[%s2868_s0] sm:$0xff] }
  0x20   :  { %1701 = vmatpush1.bf16.msra.mxu1 %v2362_v14  ;;  %v2399_v44 = vld [vmem:[#allocation2 + $0x490] ss:$8 sps:$4 sm:$0xff]   ;;  %v2400_v45 = vld [vmem:[#allocation2 + $0xa4] ss:$8 sps:$4 sm:$0xff]   ;;  %v2404_v47 = vld [vmem:[#allocation2 + $0xa0] ss:$8 sps:$4 sm:$0xff]  }
  0x21   :  { %1865 = vmatpush1.bf16.msra.mxu0 %v2363_v15  ;;  %1702 = vmatprep.subr.bf16.mxu1 %v2364_v16  ;;  %v303_v43 = vunpack.c.0.s8 %v302_v38  ;;  %v2402_v46 = vld [vmem:[#allocation2 + $0x4a4] ss:$8 sps:$4 sm:$0xff]   ;;  %v2405_v48 = vld [vmem:[#allocation2 + $0x4a0] ss:$8 sps:$4 sm:$0xff]   ;;  %v2406_v50 = vld [vmem:[#allocation2 + $0xb4] ss:$8 sps:$4 sm:$0xff]  }
  0x22   :  { %1866 = vmatprep.subr.bf16.mxu0 %v2366_v17  ;;  %v2408_v51 = vld [vmem:[#allocation2 + $0x4b4] ss:$8 sps:$4 sm:$0xff]   ;;  %v2410_v53 = vld [vmem:[#allocation2 + $0xb0] ss:$8 sps:$4 sm:$0xff]   ;;  %v2801_v56 = vld [vmem:[%s2868_s0 + $0x8] sm:$0xff] }
  0x23   :  { %v2789_v49 = vsub.s32 %v303_v43, %v2786_v42  ;;  %v2411_v55 = vld [vmem:[#allocation2 + $0x4b0] ss:$8 sps:$4 sm:$0xff]   ;;  %v2412_v57 = vld [vmem:[#allocation2 + $0xc4] ss:$8 sps:$4 sm:$0xff]   ;;  %v2416_v63 = vld [vmem:[#allocation2 + $0xc0] ss:$8 sps:$4 sm:$0xff]  }
  0x24   :  { %1703 = vmatpush1.bf16.msra.mxu1 %v2368_v18  ;;  %v2414_v58 = vld [vmem:[#allocation2 + $0x4c4] ss:$8 sps:$4 sm:$0xff]   ;;  %v2417_v0 = vld [vmem:[#allocation2 + $0x4c0] ss:$8 sps:$4 sm:$0xff]   ;;  %v2418_v1 = vld [vmem:[#allocation2 + $0xd4] ss:$8 sps:$4 sm:$0xff]  }
  0x25   :  { %1867 = vmatpush1.bf16.msra.mxu0 %v2369_v19  ;;  %1704 = vmatprep.subr.bf16.mxu1 %v2370_v20  ;;  %v307_v54 = vrot.slane %v2794_v52, %v2789_v49  ;;  %v356_v60 = vrot.slane %v2801_v56, %v2789_v49  ;;  %v2420_v2 = vld [vmem:[#allocation2 + $0x4d4] ss:$8 sps:$4 sm:$0xff]   ;;  %v2422_v4 = vld [vmem:[#allocation2 + $0xd0] ss:$8 sps:$4 sm:$0xff]   ;;  %v2424_v6 = vld [vmem:[#allocation2 + $0xe4] ss:$8 sps:$4 sm:$0xff]  }
  0x26   :  { %1868 = vmatprep.subr.bf16.mxu0 %v2372_v21  ;;  %v2423_v5 = vld [vmem:[#allocation2 + $0x4d0] ss:$8 sps:$4 sm:$0xff]   ;;  %v2426_v7 = vld [vmem:[#allocation2 + $0x4e4] ss:$8 sps:$4 sm:$0xff]   ;;  %v2428_v8 = vld [vmem:[#allocation2 + $0xe0] ss:$8 sps:$4 sm:$0xff]  }
  0x27   :  { %v315_v59 = vcombine.high %v307_v54, %v307_v54  ;;  %v364_v62 = vcombine.high %v356_v60, %v356_v60  ;;  %v2429_v9 = vld [vmem:[#allocation2 + $0x4e0] ss:$8 sps:$4 sm:$0xff]   ;;  %v2430_v10 = vld [vmem:[#allocation2 + $0xf4] ss:$8 sps:$4 sm:$0xff]   ;;  %v2434_v12 = vld [vmem:[#allocation2 + $0xf0] ss:$8 sps:$4 sm:$0xff]   ;;  %v2808_v16 = vrot.slane %v307_v54, %v2789_v49  ;;  %v2811_v17 = vrot.slane %v356_v60, %v2789_v49 }
  0x28   :  { %1705 = vmatpush1.bf16.msra.mxu1 %v2374_v22  ;;  %v2432_v11 = vld [vmem:[#allocation2 + $0x4f4] ss:$8 sps:$4 sm:$0xff]   ;;  %v2435_v13 = vld [vmem:[#allocation2 + $0x4f0] ss:$8 sps:$4 sm:$0xff]   ;;  %v2439_v14 = vld [vmem:[#allocation2 + $0x104] ss:$8 sps:$4 sm:$0xff]  }
  0x29   :  { %1869 = vmatpush1.bf16.msra.mxu0 %v2375_v23  ;;  %1706 = vmatprep.subr.bf16.mxu1 %v2376_v24  ;;  %v337_v61 = vrot.slane %v315_v59, %v2789_v49  ;;  %v386_v3 = vrot.slane %v364_v62, %v2789_v49  ;;  %v2443_v15 = vld [vmem:[#allocation2 + $0x504] ss:$8 sps:$4 sm:$0xff]   ;;  %v2437_v18 = vld [vmem:[#allocation2 + $0x100] ss:$8 sps:$4 sm:$0xff]   ;;  %v2446_v20 = vld [vmem:[#allocation2 + $0x114] ss:$8 sps:$4 sm:$0xff]  }
  0x2a   :  { %1870 = vmatprep.subr.bf16.mxu0 %v2378_v25  ;;  %v2441_v19 = vld [vmem:[#allocation2 + $0x500] ss:$8 sps:$4 sm:$0xff]   ;;  %v2449_v21 = vld [vmem:[#allocation2 + $0x514] ss:$8 sps:$4 sm:$0xff]   ;;  %v2444_v24 = vld [vmem:[#allocation2 + $0x110] ss:$8 sps:$4 sm:$0xff]  }
  0x2b   :  { %1726 = vmatprep.mubr.bf16.mxu1 %v337_v61  ;;  %1890 = vmatprep.mubr.bf16.mxu0 %v386_v3  ;;  %v347_v22 = vcombine.high %v337_v61, %v337_v61  ;;  %v396_v23 = vcombine.high %v386_v3, %v386_v3  ;;  %v2447_v25 = vld [vmem:[#allocation2 + $0x510] ss:$8 sps:$4 sm:$0xff]   ;;  %v2462_v36 = vld [vmem:[#allocation2 + $0x140] ss:$8 sps:$4 sm:$0xff]   ;;  %v2470_v38 = vld [vmem:[#allocation2 + $0x154] ss:$8 sps:$4 sm:$0xff]  }
  0x2c   :  { %1707 = vmatpush1.bf16.msra.mxu1 %v2380_v26  ;;  %v2452_v26 = vld [vmem:[#allocation2 + $0x124] ss:$8 sps:$4 sm:$0xff]   ;;  %v2465_v37 = vld [vmem:[#allocation2 + $0x540] ss:$8 sps:$4 sm:$0xff]   ;;  %v2497_v59 = vld [vmem:[#allocation2 + $0x594] ss:$8 sps:$4 sm:$0xff]  }
  0x2d   :  { %1871 = vmatpush1.bf16.msra.mxu0 %v2381_v27  ;;  %1708 = vmatprep.subr.bf16.mxu1 %v2382_v28  ;;  %v2455_v27 = vld [vmem:[#allocation2 + $0x524] ss:$8 sps:$4 sm:$0xff]   ;;  %v2450_v28 = vld [vmem:[#allocation2 + $0x120] ss:$8 sps:$4 sm:$0xff]   ;;  %v2492_v60 = vld [vmem:[#allocation2 + $0x190] ss:$8 sps:$4 sm:$0xff]  }
  0x2e   :  { %1872 = vmatprep.subr.bf16.mxu0 %v2384_v29  ;;  %v2453_v29 = vld [vmem:[#allocation2 + $0x520] ss:$8 sps:$4 sm:$0xff]   ;;  %v2476_v43 = vld [vmem:[#allocation2 + $0x164] ss:$8 sps:$4 sm:$0xff]   ;;  %v2495_v61 = vld [vmem:[#allocation2 + $0x590] ss:$8 sps:$4 sm:$0xff]  }
  0x2f   :  { %v2491_v54 = vld [vmem:[#allocation2 + $0x584] ss:$8 sps:$4 sm:$0xff]   ;;  %v2509_v3 = vld [vmem:[#allocation2 + $0x5b4] ss:$8 sps:$4 sm:$0xff]  }
  0x30   :  { %1709 = vmatpush1.bf16.msra.mxu1 %v2386_v30  ;;  %v2458_v30 = vld [vmem:[#allocation2 + $0x134] ss:$8 sps:$4 sm:$0xff]   ;;  %v2500_v62 = vld [vmem:[#allocation2 + $0x1a4] ss:$8 sps:$4 sm:$0xff]  }
  0x31   :  { %1873 = vmatpush1.bf16.msra.mxu0 %v2387_v31  ;;  %1710 = vmatprep.subr.bf16.mxu1 %v2388_v32  ;;  %v2461_v31 = vld [vmem:[#allocation2 + $0x534] ss:$8 sps:$4 sm:$0xff]   ;;  %v2456_v32 = vld [vmem:[#allocation2 + $0x130] ss:$8 sps:$4 sm:$0xff]  }
  0x32   :  { %1874 = vmatprep.subr.bf16.mxu0 %v2390_v33  ;;  %v2459_v33 = vld [vmem:[#allocation2 + $0x530] ss:$8 sps:$4 sm:$0xff]  }
  0x34   :  { %1711 = vmatpush1.bf16.msra.mxu1 %v2392_v34  ;;  %v2464_v34 = vld [vmem:[#allocation2 + $0x144] ss:$8 sps:$4 sm:$0xff]  }
  0x35   :  { %1875 = vmatpush1.bf16.msra.mxu0 %v2393_v35  ;;  %1712 = vmatprep.subr.bf16.mxu1 %v2394_v39  ;;  %v2467_v35 = vld [vmem:[#allocation2 + $0x544] ss:$8 sps:$4 sm:$0xff]   ;;  %v2473_v39 = vld [vmem:[#allocation2 + $0x554] ss:$8 sps:$4 sm:$0xff]  }
  0x36   :  { %1876 = vmatprep.subr.bf16.mxu0 %v2396_v40  ;;  %v2468_v40 = vld [vmem:[#allocation2 + $0x150] ss:$8 sps:$4 sm:$0xff]  }
  0x38   :  { %1713 = vmatpush1.bf16.msra.mxu1 %v2398_v41  ;;  %v2471_v41 = vld [vmem:[#allocation2 + $0x550] ss:$8 sps:$4 sm:$0xff]  }
  0x39   :  { %1877 = vmatpush1.bf16.msra.mxu0 %v2399_v44  ;;  %1714 = vmatprep.subr.bf16.mxu1 %v2400_v45  ;;  %v2479_v44 = vld [vmem:[#allocation2 + $0x564] ss:$8 sps:$4 sm:$0xff]   ;;  %v2474_v45 = vld [vmem:[#allocation2 + $0x160] ss:$8 sps:$4 sm:$0xff]  }
  0x3a   :  { %1878 = vmatprep.subr.bf16.mxu0 %v2402_v46  ;;  %v2477_v46 = vld [vmem:[#allocation2 + $0x560] ss:$8 sps:$4 sm:$0xff]  }
  0x3c   :  { %1715 = vmatpush1.bf16.msra.mxu1 %v2404_v47  ;;  %v2482_v47 = vld [vmem:[#allocation2 + $0x174] ss:$8 sps:$4 sm:$0xff]  }
  0x3d   :  { %1879 = vmatpush1.bf16.msra.mxu0 %v2405_v48  ;;  %1716 = vmatprep.subr.bf16.mxu1 %v2406_v50  ;;  %v2485_v48 = vld [vmem:[#allocation2 + $0x574] ss:$8 sps:$4 sm:$0xff]   ;;  %v2480_v50 = vld [vmem:[#allocation2 + $0x170] ss:$8 sps:$4 sm:$0xff]  }
  0x3e   :  { %1880 = vmatprep.subr.bf16.mxu0 %v2408_v51  ;;  %v2483_v51 = vld [vmem:[#allocation2 + $0x570] ss:$8 sps:$4 sm:$0xff]  }
  0x40   :  { %1717 = vmatpush1.bf16.msra.mxu1 %v2410_v53  ;;  %v2488_v53 = vld [vmem:[#allocation2 + $0x184] ss:$8 sps:$4 sm:$0xff]  }
  0x41   :  { %1881 = vmatpush1.bf16.msra.mxu0 %v2411_v55  ;;  %1718 = vmatprep.subr.bf16.mxu1 %v2412_v57  ;;  %v2486_v55 = vld [vmem:[#allocation2 + $0x180] ss:$8 sps:$4 sm:$0xff]  }
  0x42   :  { %1882 = vmatprep.subr.bf16.mxu0 %v2414_v58  ;;  %v2489_v57 = vld [vmem:[#allocation2 + $0x580] ss:$8 sps:$4 sm:$0xff]   ;;  %v2494_v58 = vld [vmem:[#allocation2 + $0x194] ss:$8 sps:$4 sm:$0xff]  }
  0x44   :  { %1719 = vmatpush1.bf16.msra.mxu1 %v2416_v63  ;;  %v2503_v63 = vld [vmem:[#allocation2 + $0x5a4] ss:$8 sps:$4 sm:$0xff]  }
  0x45   :  { %1883 = vmatpush1.bf16.msra.mxu0 %v2417_v0  ;;  %1720 = vmatprep.subr.bf16.mxu1 %v2418_v1  ;;  %v2498_v0 = vld [vmem:[#allocation2 + $0x1a0] ss:$8 sps:$4 sm:$0xff]  }
  0x46   :  { %1884 = vmatprep.subr.bf16.mxu0 %v2420_v2  ;;  %v2501_v1 = vld [vmem:[#allocation2 + $0x5a0] ss:$8 sps:$4 sm:$0xff]   ;;  %v2506_v2 = vld [vmem:[#allocation2 + $0x1b4] ss:$8 sps:$4 sm:$0xff]  }
  0x48   :  { %1721 = vmatpush1.bf16.msra.mxu1 %v2422_v4  ;;  %v2504_v4 = vld [vmem:[#allocation2 + $0x1b0] ss:$8 sps:$4 sm:$0xff]  }
  0x49   :  { %1885 = vmatpush1.bf16.msra.mxu0 %v2423_v5  ;;  %1722 = vmatprep.subr.bf16.mxu1 %v2424_v6  ;;  %v2507_v5 = vld [vmem:[#allocation2 + $0x5b0] ss:$8 sps:$4 sm:$0xff]   ;;  %v2512_v6 = vld [vmem:[#allocation2 + $0x1c4] ss:$8 sps:$4 sm:$0xff]  }
  0x4a   :  { %1886 = vmatprep.subr.bf16.mxu0 %v2426_v7  ;;  %v2515_v7 = vld [vmem:[#allocation2 + $0x5c4] ss:$8 sps:$4 sm:$0xff]  }
  0x4c   :  { %1723 = vmatpush1.bf16.msra.mxu1 %v2428_v8  ;;  %v2510_v8 = vld [vmem:[#allocation2 + $0x1c0] ss:$8 sps:$4 sm:$0xff]  }
  0x4d   :  { %1887 = vmatpush1.bf16.msra.mxu0 %v2429_v9  ;;  %1724 = vmatprep.subr.bf16.mxu1 %v2430_v10  ;;  %v2513_v9 = vld [vmem:[#allocation2 + $0x5c0] ss:$8 sps:$4 sm:$0xff]   ;;  %v2518_v10 = vld [vmem:[#allocation2 + $0x1d4] ss:$8 sps:$4 sm:$0xff]  }
  0x4e   :  { %1888 = vmatprep.subr.bf16.mxu0 %v2432_v11  ;;  %v2521_v11 = vld [vmem:[#allocation2 + $0x5d4] ss:$8 sps:$4 sm:$0xff]  }
  0x50   :  { %1725 = vmatpush1.bf16.msra.mxu1 %v2434_v12  ;;  %v2516_v12 = vld [vmem:[#allocation2 + $0x1d0] ss:$8 sps:$4 sm:$0xff]  }
  0x51   :  { %1889 = vmatpush1.bf16.msra.mxu0 %v2435_v13  ;;  %1735 = vmatprep.subr.bf16.mxu1 %v2439_v14  ;;  %v2519_v13 = vld [vmem:[#allocation2 + $0x5d0] ss:$8 sps:$4 sm:$0xff]   ;;  %v2524_v14 = vld [vmem:[#allocation2 + $0x1e4] ss:$8 sps:$4 sm:$0xff]  }
  0x52   :  { %1899 = vmatprep.subr.bf16.mxu0 %v2443_v15  ;;  %v2527_v15 = vld [vmem:[#allocation2 + $0x5e4] ss:$8 sps:$4 sm:$0xff]  }
  0x53   :  { %1727 = vmatmul.mubr.bf16.vlgmr.msra.gmra.mrb[0].mxu1 %v2808_v16 }
  0x54   :  { %1891 = vmatmul.mubr.bf16.vlgmr.msra.gmra.mrb[0].mxu0 %v2811_v17  ;;  %1736 = vmatpush1.bf16.msra.mxu1 %v2437_v18  ;;  %v300_v18 = vcombine.high %v2794_v52, %v2794_v52  ;;  %v2528_v52 = vld [vmem:[#allocation2 + $0x1f0] ss:$8 sps:$4 sm:$0xff]  }
  0x55   :  { %1900 = vmatpush1.bf16.msra.mxu0 %v2441_v19  ;;  %1737 = vmatprep.subr.bf16.mxu1 %v2446_v20  ;;  %v349_v19 = vcombine.high %v2801_v56, %v2801_v56  ;;  %v2522_v20 = vld [vmem:[#allocation2 + $0x1e0] ss:$8 sps:$4 sm:$0xff]   ;;  %v2536_v56 = vld [vmem:[#allocation2 + $0x204] ss:$8 sps:$4 sm:$0xff]  }
  0x56   :  { %1901 = vmatprep.subr.bf16.mxu0 %v2449_v21  ;;  %1767 = vmatprep.mubr.bf16.mxu1 %v347_v22  ;;  %v2525_v21 = vld [vmem:[#allocation2 + $0x5e0] ss:$8 sps:$4 sm:$0xff]   ;;  %v2530_v22 = vld [vmem:[#allocation2 + $0x1f4] ss:$8 sps:$4 sm:$0xff]  }
  0x57   :  { %1931 = vmatprep.mubr.bf16.mxu0 %v396_v23  ;;  %v2533_v23 = vld [vmem:[#allocation2 + $0x5f4] ss:$8 sps:$4 sm:$0xff]  }
  0x58   :  { %1738 = vmatpush1.bf16.msra.mxu1 %v2444_v24  ;;  %v2820_v24 = vrot.slane %v300_v18, %v2789_v49  ;;  %v2600_v18 = vld [vmem:[#allocation2 + $0x2b0] ss:$8 sps:$4 sm:$0xff]  }
  0x59   :  { %1902 = vmatpush1.bf16.msra.mxu0 %v2447_v25  ;;  %1739 = vmatprep.subr.bf16.mxu1 %v2452_v26  ;;  %v2823_v25 = vrot.slane %v349_v19, %v2789_v49  ;;  %v2531_v26 = vld [vmem:[#allocation2 + $0x5f0] ss:$8 sps:$4 sm:$0xff]  }
  0x5a   :  { %1903 = vmatprep.subr.bf16.mxu0 %v2455_v27  ;;  %v2539_v27 = vld [vmem:[#allocation2 + $0x604] ss:$8 sps:$4 sm:$0xff]   ;;  %v2603_v19 = vld [vmem:[#allocation2 + $0x6b0] ss:$8 sps:$4 sm:$0xff]  }
  0x5c   :  { %1740 = vmatpush1.bf16.msra.mxu1 %v2450_v28  ;;  %v316_v28 = vcombine.high %v2820_v24, %v2820_v24 }
  0x5d   :  { %1904 = vmatpush1.bf16.msra.mxu0 %v2453_v29  ;;  %1741 = vmatprep.subr.bf16.mxu1 %v2458_v30  ;;  %v365_v29 = vcombine.high %v2823_v25, %v2823_v25  ;;  %v345_v30 = vcombine.high %v2808_v16, %v2808_v16  ;;  %v2540_v16 = vld [vmem:[#allocation2 + $0x210] ss:$8 sps:$4 sm:$0xff]  }
  0x5e   :  { %1905 = vmatprep.subr.bf16.mxu0 %v2461_v31  ;;  %v394_v31 = vcombine.high %v2811_v17, %v2811_v17  ;;  %v2543_v17 = vld [vmem:[#allocation2 + $0x610] ss:$8 sps:$4 sm:$0xff]  }
  0x60   :  { %1742 = vmatpush1.bf16.msra.mxu1 %v2456_v32  ;;  %v2534_v32 = vld [vmem:[#allocation2 + $0x200] ss:$8 sps:$4 sm:$0xff]  }
  0x61   :  { %1906 = vmatpush1.bf16.msra.mxu0 %v2459_v33  ;;  %1743 = vmatprep.subr.bf16.mxu1 %v2464_v34  ;;  %v2537_v33 = vld [vmem:[#allocation2 + $0x600] ss:$8 sps:$4 sm:$0xff]   ;;  %v2542_v34 = vld [vmem:[#allocation2 + $0x214] ss:$8 sps:$4 sm:$0xff]  }
  0x62   :  { %1907 = vmatprep.subr.bf16.mxu0 %v2467_v35  ;;  %v2545_v35 = vld [vmem:[#allocation2 + $0x614] ss:$8 sps:$4 sm:$0xff]  }
  0x64   :  { %1744 = vmatpush1.bf16.msra.mxu1 %v2462_v36  ;;  %v2834_v36 = vrot.slane %v316_v28, %v2789_v49  ;;  %v2620_v28 = vld [vmem:[#allocation2 + $0x2e4] ss:$8 sps:$4 sm:$0xff]  }
  0x65   :  { %1908 = vmatpush1.bf16.msra.mxu0 %v2465_v37  ;;  %1745 = vmatprep.subr.bf16.mxu1 %v2470_v38  ;;  %v2837_v37 = vrot.slane %v365_v29, %v2789_v49  ;;  %v2548_v38 = vld [vmem:[#allocation2 + $0x224] ss:$8 sps:$4 sm:$0xff]  }
  0x66   :  { %1909 = vmatprep.subr.bf16.mxu0 %v2473_v39  ;;  %v2551_v39 = vld [vmem:[#allocation2 + $0x624] ss:$8 sps:$4 sm:$0xff]  }
  0x67   :  { %v2623_v29 = vld [vmem:[#allocation2 + $0x6e4] ss:$8 sps:$4 sm:$0xff]  }
  0x68   :  { %1746 = vmatpush1.bf16.msra.mxu1 %v2468_v40  ;;  %v2546_v40 = vld [vmem:[#allocation2 + $0x220] ss:$8 sps:$4 sm:$0xff]  }
  0x69   :  { %1910 = vmatpush1.bf16.msra.mxu0 %v2471_v41  ;;  %1747 = vmatprep.subr.bf16.mxu1 %v2476_v43  ;;  %v2549_v41 = vld [vmem:[#allocation2 + $0x620] ss:$8 sps:$4 sm:$0xff]   ;;  %v2554_v43 = vld [vmem:[#allocation2 + $0x234] ss:$8 sps:$4 sm:$0xff]  }
  0x6a   :  { %1911 = vmatprep.subr.bf16.mxu0 %v2479_v44  ;;  %v2557_v44 = vld [vmem:[#allocation2 + $0x634] ss:$8 sps:$4 sm:$0xff]  }
  0x6c   :  { %1748 = vmatpush1.bf16.msra.mxu1 %v2474_v45  ;;  %v2552_v45 = vld [vmem:[#allocation2 + $0x230] ss:$8 sps:$4 sm:$0xff]  }
  0x6d   :  { %1912 = vmatpush1.bf16.msra.mxu0 %v2477_v46  ;;  %1749 = vmatprep.subr.bf16.mxu1 %v2482_v47  ;;  %v2555_v46 = vld [vmem:[#allocation2 + $0x630] ss:$8 sps:$4 sm:$0xff]   ;;  %v2560_v47 = vld [vmem:[#allocation2 + $0x244] ss:$8 sps:$4 sm:$0xff]  }
  0x6e   :  { %1913 = vmatprep.subr.bf16.mxu0 %v2485_v48  ;;  %v2563_v48 = vld [vmem:[#allocation2 + $0x644] ss:$8 sps:$4 sm:$0xff]  }
  0x70   :  { %1750 = vmatpush1.bf16.msra.mxu1 %v2480_v50  ;;  %v2558_v50 = vld [vmem:[#allocation2 + $0x240] ss:$8 sps:$4 sm:$0xff]  }
  0x71   :  { %1914 = vmatpush1.bf16.msra.mxu0 %v2483_v51  ;;  %1751 = vmatprep.subr.bf16.mxu1 %v2488_v53  ;;  %v2561_v51 = vld [vmem:[#allocation2 + $0x640] ss:$8 sps:$4 sm:$0xff]   ;;  %v2566_v53 = vld [vmem:[#allocation2 + $0x254] ss:$8 sps:$4 sm:$0xff]  }
  0x72   :  { %1915 = vmatprep.subr.bf16.mxu0 %v2491_v54  ;;  %v2569_v54 = vld [vmem:[#allocation2 + $0x654] ss:$8 sps:$4 sm:$0xff]  }
  0x74   :  { %1752 = vmatpush1.bf16.msra.mxu1 %v2486_v55  ;;  %v2564_v55 = vld [vmem:[#allocation2 + $0x250] ss:$8 sps:$4 sm:$0xff]  }
  0x75   :  { %1916 = vmatpush1.bf16.msra.mxu0 %v2489_v57  ;;  %1753 = vmatprep.subr.bf16.mxu1 %v2494_v58  ;;  %v2567_v57 = vld [vmem:[#allocation2 + $0x650] ss:$8 sps:$4 sm:$0xff]   ;;  %v2572_v58 = vld [vmem:[#allocation2 + $0x264] ss:$8 sps:$4 sm:$0xff]  }
  0x76   :  { %1917 = vmatprep.subr.bf16.mxu0 %v2497_v59  ;;  %v2575_v59 = vld [vmem:[#allocation2 + $0x664] ss:$8 sps:$4 sm:$0xff]  }
  0x78   :  { %1754 = vmatpush1.bf16.msra.mxu1 %v2492_v60  ;;  %v2570_v60 = vld [vmem:[#allocation2 + $0x260] ss:$8 sps:$4 sm:$0xff]  }
  0x79   :  { %1918 = vmatpush1.bf16.msra.mxu0 %v2495_v61  ;;  %1755 = vmatprep.subr.bf16.mxu1 %v2500_v62  ;;  %v2573_v61 = vld [vmem:[#allocation2 + $0x660] ss:$8 sps:$4 sm:$0xff]   ;;  %v2578_v62 = vld [vmem:[#allocation2 + $0x274] ss:$8 sps:$4 sm:$0xff]  }
  0x7a   :  { %1919 = vmatprep.subr.bf16.mxu0 %v2503_v63  ;;  %v2581_v63 = vld [vmem:[#allocation2 + $0x674] ss:$8 sps:$4 sm:$0xff]  }
  0x7c   :  { %1756 = vmatpush1.bf16.msra.mxu1 %v2498_v0  ;;  %v2576_v0 = vld [vmem:[#allocation2 + $0x270] ss:$8 sps:$4 sm:$0xff]  }
  0x7d   :  { %1920 = vmatpush1.bf16.msra.mxu0 %v2501_v1  ;;  %1757 = vmatprep.subr.bf16.mxu1 %v2506_v2  ;;  %v2579_v1 = vld [vmem:[#allocation2 + $0x670] ss:$8 sps:$4 sm:$0xff]   ;;  %v2584_v2 = vld [vmem:[#allocation2 + $0x284] ss:$8 sps:$4 sm:$0xff]  }
  0x7e   :  { %1921 = vmatprep.subr.bf16.mxu0 %v2509_v3  ;;  %v2587_v3 = vld [vmem:[#allocation2 + $0x684] ss:$8 sps:$4 sm:$0xff]  }
  0x80   :  { %1758 = vmatpush1.bf16.msra.mxu1 %v2504_v4  ;;  %v2582_v4 = vld [vmem:[#allocation2 + $0x280] ss:$8 sps:$4 sm:$0xff]  }
  0x81   :  { %1922 = vmatpush1.bf16.msra.mxu0 %v2507_v5  ;;  %1759 = vmatprep.subr.bf16.mxu1 %v2512_v6  ;;  %v2585_v5 = vld [vmem:[#allocation2 + $0x680] ss:$8 sps:$4 sm:$0xff]   ;;  %v2590_v6 = vld [vmem:[#allocation2 + $0x294] ss:$8 sps:$4 sm:$0xff]  }
  0x82   :  { %1923 = vmatprep.subr.bf16.mxu0 %v2515_v7  ;;  %v2593_v7 = vld [vmem:[#allocation2 + $0x694] ss:$8 sps:$4 sm:$0xff]  }
  0x84   :  { %1760 = vmatpush1.bf16.msra.mxu1 %v2510_v8  ;;  %v2588_v8 = vld [vmem:[#allocation2 + $0x290] ss:$8 sps:$4 sm:$0xff]  }
  0x85   :  { %1924 = vmatpush1.bf16.msra.mxu0 %v2513_v9  ;;  %1761 = vmatprep.subr.bf16.mxu1 %v2518_v10  ;;  %v2591_v9 = vld [vmem:[#allocation2 + $0x690] ss:$8 sps:$4 sm:$0xff]   ;;  %v2596_v10 = vld [vmem:[#allocation2 + $0x2a4] ss:$8 sps:$4 sm:$0xff]  }
  0x86   :  { %1925 = vmatprep.subr.bf16.mxu0 %v2521_v11  ;;  %v2599_v11 = vld [vmem:[#allocation2 + $0x6a4] ss:$8 sps:$4 sm:$0xff]  }
  0x88   :  { %1762 = vmatpush1.bf16.msra.mxu1 %v2516_v12  ;;  %v2594_v12 = vld [vmem:[#allocation2 + $0x2a0] ss:$8 sps:$4 sm:$0xff]  }
  0x89   :  { %1926 = vmatpush1.bf16.msra.mxu0 %v2519_v13  ;;  %1763 = vmatprep.subr.bf16.mxu1 %v2524_v14  ;;  %v2597_v13 = vld [vmem:[#allocation2 + $0x6a0] ss:$8 sps:$4 sm:$0xff]   ;;  %v2602_v14 = vld [vmem:[#allocation2 + $0x2b4] ss:$8 sps:$4 sm:$0xff]  }
  0x8a   :  { %1927 = vmatprep.subr.bf16.mxu0 %v2527_v15  ;;  %v2605_v15 = vld [vmem:[#allocation2 + $0x6b4] ss:$8 sps:$4 sm:$0xff]  }
  0x8c   :  { %1764 = vmatpush1.bf16.msra.mxu1 %v2522_v20  ;;  %v2608_v20 = vld [vmem:[#allocation2 + $0x2c4] ss:$8 sps:$4 sm:$0xff]  }
  0x8d   :  { %1928 = vmatpush1.bf16.msra.mxu0 %v2525_v21  ;;  %1765 = vmatprep.subr.bf16.mxu1 %v2530_v22  ;;  %v2611_v21 = vld [vmem:[#allocation2 + $0x6c4] ss:$8 sps:$4 sm:$0xff]   ;;  %v2606_v22 = vld [vmem:[#allocation2 + $0x2c0] ss:$8 sps:$4 sm:$0xff]  }
  0x8e   :  { %1929 = vmatprep.subr.bf16.mxu0 %v2533_v23  ;;  %v2609_v23 = vld [vmem:[#allocation2 + $0x6c0] ss:$8 sps:$4 sm:$0xff]  }
  0x90   :  { %1766 = vmatpush1.bf16.msra.mxu1 %v2528_v52  ;;  %v2614_v52 = vld [vmem:[#allocation2 + $0x2d4] ss:$8 sps:$4 sm:$0xff]  }
  0x91   :  { %1930 = vmatpush1.bf16.msra.mxu0 %v2531_v26  ;;  %1776 = vmatprep.subr.bf16.mxu1 %v2536_v56  ;;  %v2617_v26 = vld [vmem:[#allocation2 + $0x6d4] ss:$8 sps:$4 sm:$0xff]   ;;  %v2612_v56 = vld [vmem:[#allocation2 + $0x2d0] ss:$8 sps:$4 sm:$0xff]  }
  0x92   :  { %1940 = vmatprep.subr.bf16.mxu0 %v2539_v27  ;;  %v2615_v27 = vld [vmem:[#allocation2 + $0x6d0] ss:$8 sps:$4 sm:$0xff]  }
  0x93   :  { %1768 = vmatmul.mubr.bf16.vlgmr.msra.gmra.mrb[0].mxu1 %v345_v30  ;;  %v2618_v30 = vld [vmem:[#allocation2 + $0x2e0] ss:$8 sps:$4 sm:$0xff]  }
  0x94   :  { %1932 = vmatmul.mubr.bf16.vlgmr.msra.gmra.mrb[0].mxu0 %v394_v31  ;;  %1777 = vmatpush1.bf16.msra.mxu1 %v2534_v32  ;;  %v2621_v31 = vld [vmem:[#allocation2 + $0x6e0] ss:$8 sps:$4 sm:$0xff]   ;;  %v2626_v32 = vld [vmem:[#allocation2 + $0x2f4] ss:$8 sps:$4 sm:$0xff]  }
  0x95   :  { %1941 = vmatpush1.bf16.msra.mxu0 %v2537_v33  ;;  %1778 = vmatprep.subr.bf16.mxu1 %v2542_v34  ;;  %v2629_v33 = vld [vmem:[#allocation2 + $0x6f4] ss:$8 sps:$4 sm:$0xff]   ;;  %v2624_v34 = vld [vmem:[#allocation2 + $0x2f0] ss:$8 sps:$4 sm:$0xff]  }
  0x96   :  { %1942 = vmatprep.subr.bf16.mxu0 %v2545_v35  ;;  %1808 = vmatprep.mubr.bf16.mxu1 %v2834_v36  ;;  %v2627_v35 = vld [vmem:[#allocation2 + $0x6f0] ss:$8 sps:$4 sm:$0xff]  }
  0x97   :  { %1972 = vmatprep.mubr.bf16.mxu0 %v2837_v37 }
  0x98   :  { %1779 = vmatpush1.bf16.msra.mxu1 %v2540_v16  ;;  %v2632_v16 = vld [vmem:[#allocation2 + $0x304] ss:$8 sps:$4 sm:$0xff]  }
  0x99   :  { %1943 = vmatpush1.bf16.msra.mxu0 %v2543_v17  ;;  %1780 = vmatprep.subr.bf16.mxu1 %v2548_v38  ;;  %v2635_v17 = vld [vmem:[#allocation2 + $0x704] ss:$8 sps:$4 sm:$0xff]   ;;  %v2843_v38 = vrot.slane %v2820_v24, %v2789_v49  ;;  %v2636_v24 = vld [vmem:[#allocation2 + $0x310] ss:$8 sps:$4 sm:$0xff]  }
  0x9a   :  { %1944 = vmatprep.subr.bf16.mxu0 %v2551_v39  ;;  %v2847_v39 = vrot.slane %v2823_v25, %v2789_v49  ;;  %v2639_v25 = vld [vmem:[#allocation2 + $0x710] ss:$8 sps:$4 sm:$0xff]  }
  0x9c   :  { %1781 = vmatpush1.bf16.msra.mxu1 %v2546_v40  ;;  %v2630_v40 = vld [vmem:[#allocation2 + $0x300] ss:$8 sps:$4 sm:$0xff]  }
  0x9d   :  { %1945 = vmatpush1.bf16.msra.mxu0 %v2549_v41  ;;  %1782 = vmatprep.subr.bf16.mxu1 %v2554_v43  ;;  %v2633_v41 = vld [vmem:[#allocation2 + $0x700] ss:$8 sps:$4 sm:$0xff]   ;;  %v2638_v43 = vld [vmem:[#allocation2 + $0x314] ss:$8 sps:$4 sm:$0xff]  }
  0x9e   :  { %1946 = vmatprep.subr.bf16.mxu0 %v2557_v44  ;;  %v2641_v44 = vld [vmem:[#allocation2 + $0x714] ss:$8 sps:$4 sm:$0xff]  }
  0xa0   :  { %1783 = vmatpush1.bf16.msra.mxu1 %v2552_v45  ;;  %v348_v45 = vcombine.high %v2834_v36, %v2834_v36  ;;  %v2642_v36 = vld [vmem:[#allocation2 + $0x320] ss:$8 sps:$4 sm:$0xff]  }
  0xa1   :  { %1947 = vmatpush1.bf16.msra.mxu0 %v2555_v46  ;;  %1784 = vmatprep.subr.bf16.mxu1 %v2560_v47  ;;  %v397_v46 = vcombine.high %v2837_v37, %v2837_v37  ;;  %v2644_v47 = vld [vmem:[#allocation2 + $0x324] ss:$8 sps:$4 sm:$0xff]   ;;  %v2650_v37 = vld [vmem:[#allocation2 + $0x334] ss:$8 sps:$4 sm:$0xff]  }
  0xa2   :  { %1948 = vmatprep.subr.bf16.mxu0 %v2563_v48  ;;  %v2647_v48 = vld [vmem:[#allocation2 + $0x724] ss:$8 sps:$4 sm:$0xff]  }
  0xa4   :  { %1785 = vmatpush1.bf16.msra.mxu1 %v2558_v50  ;;  %v2645_v50 = vld [vmem:[#allocation2 + $0x720] ss:$8 sps:$4 sm:$0xff]  }
  0xa5   :  { %1949 = vmatpush1.bf16.msra.mxu0 %v2561_v51  ;;  %1786 = vmatprep.subr.bf16.mxu1 %v2566_v53  ;;  %v2653_v51 = vld [vmem:[#allocation2 + $0x734] ss:$8 sps:$4 sm:$0xff]   ;;  %v2648_v53 = vld [vmem:[#allocation2 + $0x330] ss:$8 sps:$4 sm:$0xff]  }
  0xa6   :  { %1950 = vmatprep.subr.bf16.mxu0 %v2569_v54  ;;  %v2651_v54 = vld [vmem:[#allocation2 + $0x730] ss:$8 sps:$4 sm:$0xff]  }
  0xa8   :  { %1787 = vmatpush1.bf16.msra.mxu1 %v2564_v55  ;;  %v2656_v55 = vld [vmem:[#allocation2 + $0x344] ss:$8 sps:$4 sm:$0xff]  }
  0xa9   :  { %1951 = vmatpush1.bf16.msra.mxu0 %v2567_v57  ;;  %1788 = vmatprep.subr.bf16.mxu1 %v2572_v58  ;;  %v2659_v57 = vld [vmem:[#allocation2 + $0x744] ss:$8 sps:$4 sm:$0xff]   ;;  %v2654_v58 = vld [vmem:[#allocation2 + $0x340] ss:$8 sps:$4 sm:$0xff]  }
  0xaa   :  { %1952 = vmatprep.subr.bf16.mxu0 %v2575_v59  ;;  %v2657_v59 = vld [vmem:[#allocation2 + $0x740] ss:$8 sps:$4 sm:$0xff]  }
  0xac   :  { %1789 = vmatpush1.bf16.msra.mxu1 %v2570_v60  ;;  %v2662_v60 = vld [vmem:[#allocation2 + $0x354] ss:$8 sps:$4 sm:$0xff]  }
  0xad   :  { %1953 = vmatpush1.bf16.msra.mxu0 %v2573_v61  ;;  %1790 = vmatprep.subr.bf16.mxu1 %v2578_v62  ;;  %v2665_v61 = vld [vmem:[#allocation2 + $0x754] ss:$8 sps:$4 sm:$0xff]   ;;  %v2660_v62 = vld [vmem:[#allocation2 + $0x350] ss:$8 sps:$4 sm:$0xff]  }
  0xae   :  { %1954 = vmatprep.subr.bf16.mxu0 %v2581_v63  ;;  %v2663_v63 = vld [vmem:[#allocation2 + $0x750] ss:$8 sps:$4 sm:$0xff]  }
  0xb0   :  { %1791 = vmatpush1.bf16.msra.mxu1 %v2576_v0  ;;  %v2668_v0 = vld [vmem:[#allocation2 + $0x364] ss:$8 sps:$4 sm:$0xff]  }
  0xb1   :  { %1955 = vmatpush1.bf16.msra.mxu0 %v2579_v1  ;;  %1792 = vmatprep.subr.bf16.mxu1 %v2584_v2  ;;  %v2671_v1 = vld [vmem:[#allocation2 + $0x764] ss:$8 sps:$4 sm:$0xff]   ;;  %v2666_v2 = vld [vmem:[#allocation2 + $0x360] ss:$8 sps:$4 sm:$0xff]  }
  0xb2   :  { %1956 = vmatprep.subr.bf16.mxu0 %v2587_v3  ;;  %v2669_v3 = vld [vmem:[#allocation2 + $0x760] ss:$8 sps:$4 sm:$0xff]  }
  0xb4   :  { %1793 = vmatpush1.bf16.msra.mxu1 %v2582_v4  ;;  %v2674_v4 = vld [vmem:[#allocation2 + $0x374] ss:$8 sps:$4 sm:$0xff]  }
  0xb5   :  { %1957 = vmatpush1.bf16.msra.mxu0 %v2585_v5  ;;  %1794 = vmatprep.subr.bf16.mxu1 %v2590_v6  ;;  %v2677_v5 = vld [vmem:[#allocation2 + $0x774] ss:$8 sps:$4 sm:$0xff]   ;;  %v2672_v6 = vld [vmem:[#allocation2 + $0x370] ss:$8 sps:$4 sm:$0xff]  }
  0xb6   :  { %1958 = vmatprep.subr.bf16.mxu0 %v2593_v7  ;;  %v2675_v7 = vld [vmem:[#allocation2 + $0x770] ss:$8 sps:$4 sm:$0xff]  }
  0xb8   :  { %1795 = vmatpush1.bf16.msra.mxu1 %v2588_v8  ;;  %v2680_v8 = vld [vmem:[#allocation2 + $0x384] ss:$8 sps:$4 sm:$0xff]  }
  0xb9   :  { %1959 = vmatpush1.bf16.msra.mxu0 %v2591_v9  ;;  %1796 = vmatprep.subr.bf16.mxu1 %v2596_v10  ;;  %v2683_v9 = vld [vmem:[#allocation2 + $0x784] ss:$8 sps:$4 sm:$0xff]   ;;  %v2678_v10 = vld [vmem:[#allocation2 + $0x380] ss:$8 sps:$4 sm:$0xff]  }
  0xba   :  { %1960 = vmatprep.subr.bf16.mxu0 %v2599_v11  ;;  %v2681_v11 = vld [vmem:[#allocation2 + $0x780] ss:$8 sps:$4 sm:$0xff]  }
  0xbc   :  { %1797 = vmatpush1.bf16.msra.mxu1 %v2594_v12  ;;  %v2686_v12 = vld [vmem:[#allocation2 + $0x394] ss:$8 sps:$4 sm:$0xff]  }
  0xbd   :  { %1961 = vmatpush1.bf16.msra.mxu0 %v2597_v13  ;;  %1798 = vmatprep.subr.bf16.mxu1 %v2602_v14  ;;  %v2689_v13 = vld [vmem:[#allocation2 + $0x794] ss:$8 sps:$4 sm:$0xff]   ;;  %v2684_v14 = vld [vmem:[#allocation2 + $0x390] ss:$8 sps:$4 sm:$0xff]  }
  0xbe   :  { %1962 = vmatprep.subr.bf16.mxu0 %v2605_v15  ;;  %v2687_v15 = vld [vmem:[#allocation2 + $0x790] ss:$8 sps:$4 sm:$0xff]  }
  0xc0   :  { %1799 = vmatpush1.bf16.msra.mxu1 %v2600_v18  ;;  %v2692_v18 = vld [vmem:[#allocation2 + $0x3a4] ss:$8 sps:$4 sm:$0xff]  }
  0xc1   :  { %1963 = vmatpush1.bf16.msra.mxu0 %v2603_v19  ;;  %1800 = vmatprep.subr.bf16.mxu1 %v2608_v20  ;;  %v2695_v19 = vld [vmem:[#allocation2 + $0x7a4] ss:$8 sps:$4 sm:$0xff]   ;;  %v2690_v20 = vld [vmem:[#allocation2 + $0x3a0] ss:$8 sps:$4 sm:$0xff]  }
  0xc2   :  { %1964 = vmatprep.subr.bf16.mxu0 %v2611_v21  ;;  %v2693_v21 = vld [vmem:[#allocation2 + $0x7a0] ss:$8 sps:$4 sm:$0xff]  }
  0xc4   :  { %1801 = vmatpush1.bf16.msra.mxu1 %v2606_v22  ;;  %v2698_v22 = vld [vmem:[#allocation2 + $0x3b4] ss:$8 sps:$4 sm:$0xff]  }
  0xc5   :  { %1965 = vmatpush1.bf16.msra.mxu0 %v2609_v23  ;;  %1802 = vmatprep.subr.bf16.mxu1 %v2614_v52  ;;  %v2701_v23 = vld [vmem:[#allocation2 + $0x7b4] ss:$8 sps:$4 sm:$0xff]   ;;  %v2696_v52 = vld [vmem:[#allocation2 + $0x3b0] ss:$8 sps:$4 sm:$0xff]  }
  0xc6   :  { %1966 = vmatprep.subr.bf16.mxu0 %v2617_v26  ;;  %v2699_v26 = vld [vmem:[#allocation2 + $0x7b0] ss:$8 sps:$4 sm:$0xff]  }
  0xc8   :  { %1803 = vmatpush1.bf16.msra.mxu1 %v2612_v56  ;;  %v2704_v56 = vld [vmem:[#allocation2 + $0x3c4] ss:$8 sps:$4 sm:$0xff]  }
  0xc9   :  { %1967 = vmatpush1.bf16.msra.mxu0 %v2615_v27  ;;  %1804 = vmatprep.subr.bf16.mxu1 %v2620_v28  ;;  %v2707_v27 = vld [vmem:[#allocation2 + $0x7c4] ss:$8 sps:$4 sm:$0xff]   ;;  %v2702_v28 = vld [vmem:[#allocation2 + $0x3c0] ss:$8 sps:$4 sm:$0xff]  }
  0xca   :  { %1968 = vmatprep.subr.bf16.mxu0 %v2623_v29  ;;  %v2705_v29 = vld [vmem:[#allocation2 + $0x7c0] ss:$8 sps:$4 sm:$0xff]  }
  0xcc   :  { %1805 = vmatpush1.bf16.msra.mxu1 %v2618_v30  ;;  %v2710_v30 = vld [vmem:[#allocation2 + $0x3d4] ss:$8 sps:$4 sm:$0xff]  }
  0xcd   :  { %1969 = vmatpush1.bf16.msra.mxu0 %v2621_v31  ;;  %1806 = vmatprep.subr.bf16.mxu1 %v2626_v32  ;;  %v2713_v31 = vld [vmem:[#allocation2 + $0x7d4] ss:$8 sps:$4 sm:$0xff]   ;;  %v2708_v32 = vld [vmem:[#allocation2 + $0x3d0] ss:$8 sps:$4 sm:$0xff]  }
  0xce   :  { %1970 = vmatprep.subr.bf16.mxu0 %v2629_v33  ;;  %v2711_v33 = vld [vmem:[#allocation2 + $0x7d0] ss:$8 sps:$4 sm:$0xff]  }
  0xd0   :  { %1807 = vmatpush1.bf16.msra.mxu1 %v2624_v34  ;;  %v2716_v34 = vld [vmem:[#allocation2 + $0x3e4] ss:$8 sps:$4 sm:$0xff]  }
  0xd1   :  { %1971 = vmatpush1.bf16.msra.mxu0 %v2627_v35  ;;  %1817 = vmatprep.subr.bf16.mxu1 %v2632_v16  ;;  %v2719_v35 = vld [vmem:[#allocation2 + $0x7e4] ss:$8 sps:$4 sm:$0xff]   ;;  %v2714_v16 = vld [vmem:[#allocation2 + $0x3e0] ss:$8 sps:$4 sm:$0xff]  }
  0xd2   :  { %1981 = vmatprep.subr.bf16.mxu0 %v2635_v17  ;;  %v2717_v17 = vld [vmem:[#allocation2 + $0x7e0] ss:$8 sps:$4 sm:$0xff]  }
  0xd3   :  { %1809 = vmatmul.mubr.bf16.vlgmr.msra.gmra.mrb[0].mxu1 %v2843_v38 }
  0xd4   :  { %1973 = vmatmul.mubr.bf16.vlgmr.msra.gmra.mrb[0].mxu0 %v2847_v39  ;;  %1818 = vmatpush1.bf16.msra.mxu1 %v2630_v40  ;;  %v2722_v40 = vld [vmem:[#allocation2 + $0x3f4] ss:$8 sps:$4 sm:$0xff]  }
  0xd5   :  { %1982 = vmatpush1.bf16.msra.mxu0 %v2633_v41  ;;  %1819 = vmatprep.subr.bf16.mxu1 %v2638_v43  ;;  %v2725_v41 = vld [vmem:[#allocation2 + $0x7f4] ss:$8 sps:$4 sm:$0xff]   ;;  %v2720_v43 = vld [vmem:[#allocation2 + $0x3f0] ss:$8 sps:$4 sm:$0xff]  }
  0xd6   :  { %1983 = vmatprep.subr.bf16.mxu0 %v2641_v44  ;;  %1849 = vmatprep.mubr.bf16.mxu1 %v348_v45  ;;  %v2723_v44 = vld [vmem:[#allocation2 + $0x7f0] ss:$8 sps:$4 sm:$0xff]   ;;  %v346_v45 = vcombine.high %v2843_v38, %v2843_v38 }
  0xd7   :  { %2013 = vmatprep.mubr.bf16.mxu0 %v397_v46  ;;  %v395_v46 = vcombine.high %v2847_v39, %v2847_v39 }
  0xd8   :  { %1820 = vmatpush1.bf16.msra.mxu1 %v2636_v24  ;;  %v290_v24 = vsub.s32 0, %v2786_v42 }
  0xd9   :  { %1984 = vmatpush1.bf16.msra.mxu0 %v2639_v25  ;;  %1821 = vmatprep.subr.bf16.mxu1 %v2644_v47  ;;  %v286_v25 = vld [vmem:[%s2870_s2] sm:$0x3]  ;;  %v294_v47 = vsub.s32 1, %v2786_v42 }
  0xda   :  { %1985 = vmatprep.subr.bf16.mxu0 %v2647_v48  ;;  %v291_v48 = vrot.slane %v286_v25, %v290_v24 }
  0xdc   :  { %1822 = vmatpush1.bf16.msra.mxu1 %v2642_v36  ;;  %v295_v36 = vrot.slane %v286_v25, %v294_v47 }
  0xdd   :  { %1986 = vmatpush1.bf16.msra.mxu0 %v2645_v50  ;;  %1823 = vmatprep.subr.bf16.mxu1 %v2650_v37 }
  0xde   :  { %1987 = vmatprep.subr.bf16.mxu0 %v2653_v51 }
  0xe0   :  { %1824 = vmatpush1.bf16.msra.mxu1 %v2648_v53 }
  0xe1   :  { %1988 = vmatpush1.bf16.msra.mxu0 %v2651_v54  ;;  %1825 = vmatprep.subr.bf16.mxu1 %v2656_v55 }
  0xe2   :  { %1989 = vmatprep.subr.bf16.mxu0 %v2659_v57 }
  0xe4   :  { %1826 = vmatpush1.bf16.msra.mxu1 %v2654_v58 }
  0xe5   :  { %1990 = vmatpush1.bf16.msra.mxu0 %v2657_v59  ;;  %1827 = vmatprep.subr.bf16.mxu1 %v2662_v60 }
  0xe6   :  { %1991 = vmatprep.subr.bf16.mxu0 %v2665_v61 }
  0xe8   :  { %1828 = vmatpush1.bf16.msra.mxu1 %v2660_v62 }
  0xe9   :  { %1992 = vmatpush1.bf16.msra.mxu0 %v2663_v63  ;;  %1829 = vmatprep.subr.bf16.mxu1 %v2668_v0 }
  0xea   :  { %1993 = vmatprep.subr.bf16.mxu0 %v2671_v1 }
  0xec   :  { %1830 = vmatpush1.bf16.msra.mxu1 %v2666_v2 }
  0xed   :  { %1994 = vmatpush1.bf16.msra.mxu0 %v2669_v3  ;;  %1831 = vmatprep.subr.bf16.mxu1 %v2674_v4 }
  0xee   :  { %1995 = vmatprep.subr.bf16.mxu0 %v2677_v5 }
  0xf0   :  { %1832 = vmatpush1.bf16.msra.mxu1 %v2672_v6 }
  0xf1   :  { %1996 = vmatpush1.bf16.msra.mxu0 %v2675_v7  ;;  %1833 = vmatprep.subr.bf16.mxu1 %v2680_v8 }
  0xf2   :  { %1997 = vmatprep.subr.bf16.mxu0 %v2683_v9 }
  0xf4   :  { %1834 = vmatpush1.bf16.msra.mxu1 %v2678_v10 }
  0xf5   :  { %1998 = vmatpush1.bf16.msra.mxu0 %v2681_v11  ;;  %1835 = vmatprep.subr.bf16.mxu1 %v2686_v12 }
  0xf6   :  { %1999 = vmatprep.subr.bf16.mxu0 %v2689_v13 }
  0xf8   :  { %1836 = vmatpush1.bf16.msra.mxu1 %v2684_v14 }
  0xf9   :  { %2000 = vmatpush1.bf16.msra.mxu0 %v2687_v15  ;;  %1837 = vmatprep.subr.bf16.mxu1 %v2692_v18 }
  0xfa   :  { %2001 = vmatprep.subr.bf16.mxu0 %v2695_v19 }
  0xfc   :  { %1838 = vmatpush1.bf16.msra.mxu1 %v2690_v20 }
  0xfd   :  { %2002 = vmatpush1.bf16.msra.mxu0 %v2693_v21  ;;  %1839 = vmatprep.subr.bf16.mxu1 %v2698_v22 }
  0xfe   :  { %2003 = vmatprep.subr.bf16.mxu0 %v2701_v23 }
 0x100   :  { %1840 = vmatpush1.bf16.msra.mxu1 %v2696_v52 }
 0x101   :  { %2004 = vmatpush1.bf16.msra.mxu0 %v2699_v26  ;;  %1841 = vmatprep.subr.bf16.mxu1 %v2704_v56 }
 0x102   :  { %2005 = vmatprep.subr.bf16.mxu0 %v2707_v27 }
 0x104   :  { %1842 = vmatpush1.bf16.msra.mxu1 %v2702_v28 }
 0x105   :  { %2006 = vmatpush1.bf16.msra.mxu0 %v2705_v29  ;;  %1843 = vmatprep.subr.bf16.mxu1 %v2710_v30 }
 0x106   :  { %2007 = vmatprep.subr.bf16.mxu0 %v2713_v31 }
 0x108   :  { %1844 = vmatpush1.bf16.msra.mxu1 %v2708_v32 }
 0x109   :  { %2008 = vmatpush1.bf16.msra.mxu0 %v2711_v33  ;;  %1845 = vmatprep.subr.bf16.mxu1 %v2716_v34 }
 0x10a   :  { %2009 = vmatprep.subr.bf16.mxu0 %v2719_v35 }
 0x10c   :  { %1846 = vmatpush1.bf16.msra.mxu1 %v2714_v16 }
 0x10d   :  { %2010 = vmatpush1.bf16.msra.mxu0 %v2717_v17  ;;  %1847 = vmatprep.subr.bf16.mxu1 %v2722_v40 }
 0x10e   :  { %2011 = vmatprep.subr.bf16.mxu0 %v2725_v41 }
 0x110   :  { %1848 = vmatpush1.bf16.msra.mxu1 %v2720_v43 }
 0x111   :  { %2012 = vmatpush1.bf16.msra.mxu0 %v2723_v44 }
 0x113   :  { %1850 = vmatmul.mubr.bf16.vlgmr.msra.gmra.mrb[0].mxu1 %v346_v45 }
 0x114   :  { %2014 = vmatmul.mubr.bf16.vlgmr.msra.gmra.mrb[0].mxu0 %v395_v46 }
 0x1e6   :  { %v1851_v50 = vpop.f32.mrb[0].mxu1 }
 0x1e7   :  { %v2015_v37 = vpop.f32.mrb[0].mxu0  ;;  %v2308_v38 = vadd.f32 %v1851_v50, %v291_v48  ;;  %v1853_v51 = vpop.f32.mrb[1].mxu1 }
 0x1e8   :  { %v2017_v53 = vpop.f32.mrb[1].mxu0  ;;  %v2310_v39 = vadd.f32 %v1853_v51, %v295_v36  ;;  %v1855_v54 = vpop.f32.mrb[2].mxu1 }
 0x1e9   :  { %v2019_v55 = vpop.f32.mrb[2].mxu0  ;;  %v2309_v57 = vadd.f32 %v2308_v38, %v2015_v37  ;;  %v1856_v58 = vpop.f32.mrb[3].mxu1 }
 0x1ea   :  { %v2020_v59 = vpop.f32.mrb[3].mxu0  ;;  %v2311_v60 = vadd.f32 %v2310_v39, %v2017_v53 }
 0x1eb   :  { %v2022_v61 = vmax.f32 %v2309_v57, 0.0 }
 0x1ec   :  { %v2023_v62 = vmax.f32 %v2311_v60, 0.0 }
 0x1ee   :  { %v2306_v63 = vpack.c.bf16 %v2023_v62, %v2022_v61 }
 0x1f0   :  { %v2035_v0 = vrot.slane %v2306_v63, %v2789_v49 }
 0x1f2   :  { %2307 = vst.sshfl [vmem:[%s2871_s3] sm:$0x5 pattern:$0x73625140] %v2035_v0 }
 0x1f3   :  { %2049 = vsyncpa [#allocation3], 1 }

</bundles_post_ra>
